<compile_context>
chip_gen: v7x
topology: tpu7x:2x2x1
jax: 0.10.0
libtpu: 0.0.40
codegen_flags: <defaults>
</compile_context>

<pallas_src>
import functools

import jax
import jax.numpy as jnp
from jax.experimental import pallas as pl
from jax.experimental.pallas import tpu as pltpu

D_HIDDEN = 2560       # 2 * 1280
N_CLASSES = 101
CLS_PAD = 128         # classifier output padded to one lane tile
LEAKY_SLOPE = 0.01    # torch.nn.LeakyReLU default


def _round_up(x, m):
    return ((x + m - 1) // m) * m


def _vmem_limit_bytes():
    """Generation-aware VMEM limit: ~3/4 of physical, capped at 64 MiB."""
    try:
        phys = int(pltpu.get_tpu_info().vmem_capacity_bytes)
    except Exception:
        phys = 64 * 1024 * 1024   # conservative fallback (v7x per-TensorCore size)
    return min(64 * 1024 * 1024, (phys * 3) // 4)


# ---------------------------------------------------------------------------
# Fused Pallas kernel: [Linear(2560,2560)+LeakyReLU] * L  ->  Linear(2560,101)
# ---------------------------------------------------------------------------
def _fused_mlp_kernel(x_ref, w_ref, b_ref, wc_ref, bc_ref, out_ref,
                      act_in, act_out, *, tn, n_tiles):
    # grid = (m_tile i, layer l, n_tile j)
    l = pl.program_id(1)
    j = pl.program_id(2)
    n_layers = pl.num_programs(1)

    # Stage this layer's input once per (m-tile, layer).
    @pl.when((l == 0) & (j == 0))
    def _():
        act_in[...] = x_ref[...]            # layer 0 input = activation tile from HBM

    @pl.when((l > 0) & (j == 0))
    def _():
        act_in[...] = act_out[...]          # layer l input = previous layer's output

    # (tm, tn) tile of hidden layer l: bf16 x bf16 -> f32 accumulate on the MXU.
    acc = jnp.dot(act_in[...], w_ref[0], preferred_element_type=jnp.float32)
    acc = acc + b_ref[0]                    # (1, tn) broadcast
    acc = jnp.where(acc > 0, acc, LEAKY_SLOPE * acc)
    acc_bf16 = acc.astype(act_out.dtype)

    # Static-unrolled column-tile store into the resident activation buffer
    # (keeps all lane offsets static -> guaranteed lowering).
    for jj in range(n_tiles):
        @pl.when(j == jj)
        def _(jj=jj):
            act_out[:, jj * tn:(jj + 1) * tn] = acc_bf16

    # After the last tile of the last hidden layer, apply the classifier directly
    # from VMEM (the activation never round-trips HBM).
    @pl.when((l == n_layers - 1) & (j == n_tiles - 1))
    def _():
        cls = jnp.dot(act_out[...], wc_ref[...], preferred_element_type=jnp.float32)
        out_ref[...] = (cls + bc_ref[...]).astype(out_ref.dtype)


# ---------------------------------------------------------------------------
# Model glue (parameters, frame pairing, reshapes)
# ---------------------------------------------------------------------------
def generate_frame_pairs(x):
    """(B, S, F) -> (B, S-1, 2F): concat consecutive frames along features."""
    return jnp.concatenate([x[:, :-1, :], x[:, 1:, :]], axis=-1)


def init_params(key, num_layer):
    """PyTorch-default-style init. Weights stored bf16 (streamed), biases f32.
    Classifier is padded to 128 lanes here, once, not per forward call."""
    assert num_layer >= 1
    bound = 1.0 / (D_HIDDEN ** 0.5)
    ws, bs = [], []
    for _ in range(num_layer):
        key, kw, kb = jax.random.split(key, 3)
        ws.append(jax.random.uniform(kw, (D_HIDDEN, D_HIDDEN), jnp.float32, -bound, bound))
        bs.append(jax.random.uniform(kb, (1, D_HIDDEN), jnp.float32, -bound, bound))
    key, kw, kb = jax.random.split(key, 3)
    wc = jax.random.uniform(kw, (D_HIDDEN, N_CLASSES), jnp.float32, -bound, bound)
    bc = jax.random.uniform(kb, (N_CLASSES,), jnp.float32, -bound, bound)
    return {
        "w_stack": jnp.stack(ws).astype(jnp.bfloat16),                        # (L, 2560, 2560) bf16
        "b_stack": jnp.stack(bs),                                             # (L, 1, 2560)   f32
        "wc": jnp.pad(wc, ((0, 0), (0, CLS_PAD - N_CLASSES))).astype(jnp.bfloat16),  # (2560, 128) bf16
        "bc": jnp.pad(bc, ((0, CLS_PAD - N_CLASSES),)).reshape(1, CLS_PAD),   # (1, 128) f32
    }


def _choose_token_tile(M, tm_max):
    """Minimal #M-tiles, padding balanced across them (8-sublane aligned)."""
    num_m_tiles = pl.cdiv(M, tm_max)
    tm = _round_up(pl.cdiv(M, num_m_tiles), 8)
    return tm, tm * num_m_tiles


def mlp_forward(params, x, *, tn=512, tm_max=512):
    """x: (B, S, 1280) float32 -> (B, 101, S-1) float32."""
    x = generate_frame_pairs(x)                        # (B, S', 2560)
    B, S, F = x.shape
    assert F == D_HIDDEN
    h = x.reshape(B * S, F)                            # '(b s) f'

    # Token tiling: 8-sublane aligned, capped at tm_max so VMEM is independent of B*S.
    M = h.shape[0]
    tm, Mp = _choose_token_tile(M, tm_max)
    h = jnp.pad(h, ((0, Mp - M), (0, 0))).astype(jnp.bfloat16)

    w_stack, b_stack = params["w_stack"], params["b_stack"]
    wc, bc = params["wc"], params["bc"]
    num_layers = w_stack.shape[0]
    assert D_HIDDEN % tn == 0 and tn % 128 == 0
    n_tiles = D_HIDDEN // tn

    kernel = functools.partial(_fused_mlp_kernel, tn=tn, n_tiles=n_tiles)
    out = pl.pallas_call(
        kernel,
        out_shape=jax.ShapeDtypeStruct((Mp, CLS_PAD), jnp.float32),
        grid_spec=pltpu.PrefetchScalarGridSpec(
            num_scalar_prefetch=0,
            grid=(Mp // tm, num_layers, n_tiles),
            in_specs=[
                # Activation tile: resident across the (layer, N) axes, loaded once per i.
                pl.BlockSpec((tm, D_HIDDEN), lambda i, l, j: (i, 0)),
                # Hidden weight tile: streamed (double-buffered) over (layer, N).
                pl.BlockSpec((1, D_HIDDEN, tn), lambda i, l, j: (l, 0, j)),
                # Hidden bias tile.
                pl.BlockSpec((1, 1, tn), lambda i, l, j: (l, 0, j)),
                # Classifier weight / bias: constant block index -> loaded once.
                pl.BlockSpec((D_HIDDEN, CLS_PAD), lambda i, l, j: (0, 0)),
                pl.BlockSpec((1, CLS_PAD), lambda i, l, j: (0, 0)),
            ],
            out_specs=pl.BlockSpec((tm, CLS_PAD), lambda i, l, j: (i, 0)),
            scratch_shapes=[
                pltpu.VMEM((tm, D_HIDDEN), jnp.bfloat16),   # current layer input
                pltpu.VMEM((tm, D_HIDDEN), jnp.bfloat16),   # current layer output
            ],
        ),
        compiler_params=pltpu.CompilerParams(
            dimension_semantics=("parallel", "arbitrary", "arbitrary"),
            vmem_limit_bytes=_vmem_limit_bytes(),
        ),
    )(h, w_stack, b_stack, wc, bc)

    out = out[:M, :N_CLASSES]                          # drop M / class padding
    out = out.reshape(B, S, N_CLASSES)
    return jnp.transpose(out, (0, 2, 1))               # '(b s) c -> b c s'


# Pure-JAX reference mirroring the kernel's numerics (bf16 weights/activations,
# f32 accumulation) for a tight correctness check.
def mlp_reference(params, x):
    x = generate_frame_pairs(x)
    b, s, f = x.shape
    h = x.reshape(b * s, f).astype(jnp.bfloat16)
    num_layers = params["w_stack"].shape[0]
    for l in range(num_layers):
        acc = jnp.dot(h, params["w_stack"][l], preferred_element_type=jnp.float32)
        acc = acc + params["b_stack"][l]
        acc = jnp.where(acc > 0, acc, LEAKY_SLOPE * acc)
        h = acc.astype(jnp.bfloat16)
    out = jnp.dot(h, params["wc"], preferred_element_type=jnp.float32) + params["bc"]
    out = out[:, :N_CLASSES]
    return jnp.transpose(out.reshape(b, s, N_CLASSES), (0, 2, 1))


if __name__ == "__main__":
    key = jax.random.PRNGKey(0)
    kparams, kx = jax.random.split(key)

    num_layer = 2
    params = init_params(kparams, num_layer)

    # Small input: batch=2, seq=8 frames of 1280-dim features -> 7 frame pairs.
    x = jax.random.normal(kx, (2, 8, 1280), dtype=jnp.float32)

    fwd = jax.jit(functools.partial(mlp_forward, params))
    out = jax.block_until_ready(fwd(x))

    ref = mlp_reference(params, x)
    assert out.shape == (2, N_CLASSES, 7), out.shape
    assert jnp.allclose(out, ref, atol=2e-3, rtol=2e-3), float(jnp.max(jnp.abs(out - ref)))

    print("KERNEL_OK")
</pallas_src>

<mosaic_0001>
module attributes {stable_mosaic.version = 11 : i64} {
  func.func @_fused_mlp_kernel(%arg0: i32, %arg1: i32, %arg2: i32, %arg3: memref<16x2560xbf16, #tpu.memory_space<vmem>>, %arg4: memref<1x2560x512xbf16, #tpu.memory_space<vmem>>, %arg5: memref<1x1x512xf32, #tpu.memory_space<vmem>>, %arg6: memref<2560x128xbf16, #tpu.memory_space<vmem>>, %arg7: memref<1x128xf32, #tpu.memory_space<vmem>>, %arg8: memref<16x128xf32, #tpu.memory_space<vmem>>, %arg9: memref<16x2560xbf16, #tpu.memory_space<vmem>>, %arg10: memref<16x2560xbf16, #tpu.memory_space<vmem>>) attributes {dimension_semantics = [#tpu.dimension_semantics<parallel>, #tpu.dimension_semantics<arbitrary>, #tpu.dimension_semantics<arbitrary>], iteration_bounds = array<i64: 1, 2, 5>, scalar_prefetch = 0 : i64, scratch_operands = 2 : i64, tpu.core_type = #tpu.core_type<tc>, window_params = [{transform_indices = @transform_0, window_bounds = array<i64: 16, 2560>}, {transform_indices = @transform_1, window_bounds = array<i64: 1, 2560, 512>}, {transform_indices = @transform_2, window_bounds = array<i64: 1, 1, 512>}, {pipeline_mode = #tpu.pipeline_mode<synchronous>, transform_indices = @transform_3, window_bounds = array<i64: 2560, 128>}, {pipeline_mode = #tpu.pipeline_mode<synchronous>, transform_indices = @transform_4, window_bounds = array<i64: 1, 128>}, {transform_indices = @transform_5, window_bounds = array<i64: 16, 128>}]} {
    %c0_i32 = arith.constant 0 : i32
    %0 = arith.cmpi eq, %arg1, %c0_i32 : i32
    %c0_i32_0 = arith.constant 0 : i32
    %1 = arith.cmpi eq, %arg2, %c0_i32_0 : i32
    %2 = arith.andi %0, %1 : i1
    %3 = arith.extui %2 : i1 to i32
    %c0_i32_1 = arith.constant 0 : i32
    %4 = arith.cmpi ne, %3, %c0_i32_1 : i32
    scf.if %4 {
      %c0_23 = arith.constant 0 : index
      %c0_24 = arith.constant 0 : index
      %44 = vector.load %arg3[%c0_23, %c0_24] : memref<16x2560xbf16, #tpu.memory_space<vmem>>, vector<16x2560xbf16>
      %c0_25 = arith.constant 0 : index
      %c0_26 = arith.constant 0 : index
      %45 = vector.load %arg9[%c0_25, %c0_26] : memref<16x2560xbf16, #tpu.memory_space<vmem>>, vector<16x2560xbf16>
      tpu.vector_store %arg9[%c0_25, %c0_26], %44 {strides = array<i32>} : memref<16x2560xbf16, #tpu.memory_space<vmem>>, vector<16x2560xbf16>,
    } else {
    }
    %c0_i32_2 = arith.constant 0 : i32
    %5 = arith.cmpi sgt, %arg1, %c0_i32_2 : i32
    %c0_i32_3 = arith.constant 0 : i32
    %6 = arith.cmpi eq, %arg2, %c0_i32_3 : i32
    %7 = arith.andi %5, %6 : i1
    %8 = arith.extui %7 : i1 to i32
    %c0_i32_4 = arith.constant 0 : i32
    %9 = arith.cmpi ne, %8, %c0_i32_4 : i32
    scf.if %9 {
      %c0_23 = arith.constant 0 : index
      %c0_24 = arith.constant 0 : index
      %44 = vector.load %arg10[%c0_23, %c0_24] : memref<16x2560xbf16, #tpu.memory_space<vmem>>, vector<16x2560xbf16>
      %c0_25 = arith.constant 0 : index
      %c0_26 = arith.constant 0 : index
      %45 = vector.load %arg9[%c0_25, %c0_26] : memref<16x2560xbf16, #tpu.memory_space<vmem>>, vector<16x2560xbf16>
      tpu.vector_store %arg9[%c0_25, %c0_26], %44 {strides = array<i32>} : memref<16x2560xbf16, #tpu.memory_space<vmem>>, vector<16x2560xbf16>,
    } else {
    }
    %c0 = arith.constant 0 : index
    %c0_5 = arith.constant 0 : index
    %10 = vector.load %arg9[%c0, %c0_5] : memref<16x2560xbf16, #tpu.memory_space<vmem>>, vector<16x2560xbf16>
    %c0_6 = arith.constant 0 : index
    %c0_7 = arith.constant 0 : index
    %c0_8 = arith.constant 0 : index
    %11 = vector.load %arg4[%c0_6, %c0_7, %c0_8] : memref<1x2560x512xbf16, #tpu.memory_space<vmem>>, vector<1x2560x512xbf16>
    %12 = vector.shape_cast %11 : vector<1x2560x512xbf16> to vector<2560x512xbf16>
    %cst = arith.constant dense<0.000000e+00> : vector<16x512xf32>
    %13 = tpu.matmul %10, %12, %cst {dimension_numbers = #tpu.dot_dimension_numbers<[1], [0], [0], [1], [0, 0, 1, 1], [], []>} : vector<16x2560xbf16>, vector<2560x512xbf16>, vector<16x512xf32> -> vector<16x512xf32>
    %c0_9 = arith.constant 0 : index
    %c0_10 = arith.constant 0 : index
    %c0_11 = arith.constant 0 : index
    %14 = vector.load %arg5[%c0_9, %c0_10, %c0_11] : memref<1x1x512xf32, #tpu.memory_space<vmem>>, vector<1x1x512xf32>
    %15 = vector.shape_cast %14 : vector<1x1x512xf32> to vector<1x512xf32>
    %16 = vector.broadcast %15 : vector<1x512xf32> to vector<16x512xf32>
    %17 = arith.addf %13, %16 : vector<16x512xf32>
    %cst_12 = arith.constant 0.000000e+00 : f32
    %18 = vector.broadcast %cst_12 : f32 to vector<16x512xf32>
    %19 = arith.cmpf ogt, %17, %18 : vector<16x512xf32>
    %cst_13 = arith.constant 0.00999999977 : f32
    %20 = vector.broadcast %cst_13 : f32 to vector<16x512xf32>
    %21 = arith.mulf %20, %17 : vector<16x512xf32>
    %22 = arith.select %19, %17, %21 : vector<16x512xi1>, vector<16x512xf32>
    %23 = arith.truncf %22 : vector<16x512xf32> to vector<16x512xbf16>
    %c0_i32_14 = arith.constant 0 : i32
    %24 = arith.cmpi eq, %arg2, %c0_i32_14 : i32
    %25 = arith.extui %24 : i1 to i32
    %c0_i32_15 = arith.constant 0 : i32
    %26 = arith.cmpi ne, %25, %c0_i32_15 : i32
    scf.if %26 {
      %c0_23 = arith.constant 0 : index
      %c0_24 = arith.constant 0 : index
      %44 = vector.load %arg10[%c0_23, %c0_24] : memref<16x2560xbf16, #tpu.memory_space<vmem>>, vector<16x512xbf16>
      tpu.vector_store %arg10[%c0_23, %c0_24], %23 {strides = array<i32>} : memref<16x2560xbf16, #tpu.memory_space<vmem>>, vector<16x512xbf16>,
    } else {
    }
    %c1_i32 = arith.constant 1 : i32
    %27 = arith.cmpi eq, %arg2, %c1_i32 : i32
    %28 = arith.extui %27 : i1 to i32
    %c0_i32_16 = arith.constant 0 : i32
    %29 = arith.cmpi ne, %28, %c0_i32_16 : i32
    scf.if %29 {
      %c0_23 = arith.constant 0 : index
      %c512 = arith.constant 512 : index
      %44 = vector.load %arg10[%c0_23, %c512] : memref<16x2560xbf16, #tpu.memory_space<vmem>>, vector<16x512xbf16>
      tpu.vector_store %arg10[%c0_23, %c512], %23 {strides = array<i32>} : memref<16x2560xbf16, #tpu.memory_space<vmem>>, vector<16x512xbf16>,
    } else {
    }
    %c2_i32 = arith.constant 2 : i32
    %30 = arith.cmpi eq, %arg2, %c2_i32 : i32
    %31 = arith.extui %30 : i1 to i32
    %c0_i32_17 = arith.constant 0 : i32
    %32 = arith.cmpi ne, %31, %c0_i32_17 : i32
    scf.if %32 {
      %c0_23 = arith.constant 0 : index
      %c1024 = arith.constant 1024 : index
      %44 = vector.load %arg10[%c0_23, %c1024] : memref<16x2560xbf16, #tpu.memory_space<vmem>>, vector<16x512xbf16>
      tpu.vector_store %arg10[%c0_23, %c1024], %23 {strides = array<i32>} : memref<16x2560xbf16, #tpu.memory_space<vmem>>, vector<16x512xbf16>,
    } else {
    }
    %c3_i32 = arith.constant 3 : i32
    %33 = arith.cmpi eq, %arg2, %c3_i32 : i32
    %34 = arith.extui %33 : i1 to i32
    %c0_i32_18 = arith.constant 0 : i32
    %35 = arith.cmpi ne, %34, %c0_i32_18 : i32
    scf.if %35 {
      %c0_23 = arith.constant 0 : index
      %c1536 = arith.constant 1536 : index
      %44 = vector.load %arg10[%c0_23, %c1536] : memref<16x2560xbf16, #tpu.memory_space<vmem>>, vector<16x512xbf16>
      tpu.vector_store %arg10[%c0_23, %c1536], %23 {strides = array<i32>} : memref<16x2560xbf16, #tpu.memory_space<vmem>>, vector<16x512xbf16>,
    } else {
    }
    %c4_i32 = arith.constant 4 : i32
    %36 = arith.cmpi eq, %arg2, %c4_i32 : i32
    %37 = arith.extui %36 : i1 to i32
    %c0_i32_19 = arith.constant 0 : i32
    %38 = arith.cmpi ne, %37, %c0_i32_19 : i32
    scf.if %38 {
      %c0_23 = arith.constant 0 : index
      %c2048 = arith.constant 2048 : index
      %44 = vector.load %arg10[%c0_23, %c2048] : memref<16x2560xbf16, #tpu.memory_space<vmem>>, vector<16x512xbf16>
      tpu.vector_store %arg10[%c0_23, %c2048], %23 {strides = array<i32>} : memref<16x2560xbf16, #tpu.memory_space<vmem>>, vector<16x512xbf16>,
    } else {
    }
    %c1_i32_20 = arith.constant 1 : i32
    %39 = arith.cmpi eq, %arg1, %c1_i32_20 : i32
    %c4_i32_21 = arith.constant 4 : i32
    %40 = arith.cmpi eq, %arg2, %c4_i32_21 : i32
    %41 = arith.andi %39, %40 : i1
    %42 = arith.extui %41 : i1 to i32
    %c0_i32_22 = arith.constant 0 : i32
    %43 = arith.cmpi ne, %42, %c0_i32_22 : i32
    scf.if %43 {
      %c0_23 = arith.constant 0 : index
      %c0_24 = arith.constant 0 : index
      %44 = vector.load %arg10[%c0_23, %c0_24] : memref<16x2560xbf16, #tpu.memory_space<vmem>>, vector<16x2560xbf16>
      %c0_25 = arith.constant 0 : index
      %c0_26 = arith.constant 0 : index
      %45 = vector.load %arg6[%c0_25, %c0_26] : memref<2560x128xbf16, #tpu.memory_space<vmem>>, vector<2560x128xbf16>
      %cst_27 = arith.constant dense<0.000000e+00> : vector<16x128xf32>
      %46 = tpu.matmul %44, %45, %cst_27 {dimension_numbers = #tpu.dot_dimension_numbers<[1], [0], [0], [1], [0, 0, 1, 1], [], []>} : vector<16x2560xbf16>, vector<2560x128xbf16>, vector<16x128xf32> -> vector<16x128xf32>
      %c0_28 = arith.constant 0 : index
      %c0_29 = arith.constant 0 : index
      %47 = vector.load %arg7[%c0_28, %c0_29] : memref<1x128xf32, #tpu.memory_space<vmem>>, vector<1x128xf32>
      %48 = vector.broadcast %47 : vector<1x128xf32> to vector<16x128xf32>
      %49 = arith.addf %46, %48 : vector<16x128xf32>
      %c0_30 = arith.constant 0 : index
      %c0_31 = arith.constant 0 : index
      %50 = vector.load %arg8[%c0_30, %c0_31] : memref<16x128xf32, #tpu.memory_space<vmem>>, vector<16x128xf32>
      tpu.vector_store %arg8[%c0_30, %c0_31], %49 {strides = array<i32>} : memref<16x128xf32, #tpu.memory_space<vmem>>, vector<16x128xf32>,
    } else {
    }
    return
  }
  func.func @transform_0(%arg0: i32, %arg1: i32, %arg2: i32) -> (i32, i32) {
    %c0_i32 = arith.constant 0 : i32
    %c0_i32_0 = arith.constant 0 : i32
    return %arg0, %c0_i32 : i32, i32
  }
  func.func @transform_1(%arg0: i32, %arg1: i32, %arg2: i32) -> (i32, i32, i32) {
    %c0_i32 = arith.constant 0 : i32
    %c0_i32_0 = arith.constant 0 : i32
    return %arg1, %c0_i32, %arg2 : i32, i32, i32
  }
  func.func @transform_2(%arg0: i32, %arg1: i32, %arg2: i32) -> (i32, i32, i32) {
    %c0_i32 = arith.constant 0 : i32
    %c0_i32_0 = arith.constant 0 : i32
    return %arg1, %c0_i32, %arg2 : i32, i32, i32
  }
  func.func @transform_3(%arg0: i32, %arg1: i32, %arg2: i32) -> (i32, i32) {
    %c0_i32 = arith.constant 0 : i32
    %c0_i32_0 = arith.constant 0 : i32
    %c0_i32_1 = arith.constant 0 : i32
    return %c0_i32, %c0_i32_0 : i32, i32
  }
  func.func @transform_4(%arg0: i32, %arg1: i32, %arg2: i32) -> (i32, i32) {
    %c0_i32 = arith.constant 0 : i32
    %c0_i32_0 = arith.constant 0 : i32
    %c0_i32_1 = arith.constant 0 : i32
    return %c0_i32, %c0_i32_0 : i32, i32
  }
  func.func @transform_5(%arg0: i32, %arg1: i32, %arg2: i32) -> (i32, i32) {
    %c0_i32 = arith.constant 0 : i32
    %c0_i32_0 = arith.constant 0 : i32
    return %arg0, %c0_i32 : i32, i32
  }
}

</mosaic_0001>

<bundles_post_ra>
// kernel: mlp_forward.1
= control target key start
LH: loop header
LB: loop body
LE: loop exit
PB: predicated region body
PF: predicated region fallthrough
CT: control target
= control target key end

     0   :  { %10 = vsyncpa [#allocation5], 0  ;;  %s11026_s0 = inlined_call_operand.vmem [shape: bf16[16,2560], index: 0, kind: input, shape index: {}]   ;;  %s11027_s1 = inlined_call_operand.hbm [shape: bf16[2,2560,2560], index: 1, kind: input, shape index: {}]   ;;  %s11028_s2 = inlined_call_operand.vmem [shape: f32[2,1,2560], index: 2, kind: input, shape index: {}]   ;;  %s11029_s3 = inlined_call_operand.vmem [shape: bf16[2560,128], index: 3, kind: input, shape index: {}]   ;;  %s11030_s4 = inlined_call_operand.vmem [shape: f32[1,128], index: 4, kind: input, shape index: {}]   ;;  %s11031_s5 = inlined_call_operand.vmem [shape: f32[16,128], index: 5, kind: output, shape index: {}]  }
   0x1   :  { %12 = vsyncpa [#allocation5 + $0x1], 0  ;;  %s9663_s18 = smov 0   ;;  %s9665_s19 = smov 0  }
   0x2   :  { %s9667_s20 = smov 0   ;;  %s9669_s21 = smov 0  }
   0x3   :  { %s9671_s22 = smov 0   ;;  %s9673_s23 = smov 0  }
   0x4   :  { %s9675_s24 = smov 0   ;;  %s9677_s25 = smov 0  }
   0x5 LB: > { %s7165_s26 = sadd.s32 4294967295, %s9627_s25   ;;  %s30_s27 = sadd.s32 1, %s9619_s23  ;;  %s9627_s25 = sphi %s9677_s25, %s18_s25   ;;  %s9623_s24 = sphi %s9675_s24, %s11041_s24   ;;  %s9619_s23 = sphi %s9673_s23, %s11040_s23   ;;  %s9615_s22 = sphi %s9671_s22, %s11039_s22   ;;  %s9611_s21 = sphi %s9669_s21, %s11038_s21   ;;  %s9607_s20 = sphi %s9667_s20, %s11037_s20   ;;  %s9603_s19 = sphi %s9665_s19, %s11036_s19   ;;  %s9599_s18 = sphi %s9663_s18, %s11035_s18  }
   0x6   : > { %p31_p0 = scmp.ge.s32.totalorder %s30_s27, 5  ;;  %s33_s28 = sadd.s32 1, %s9623_s24 }
   0x7   : > { %s72_s29 = sadd.s32 1, %s9607_s20  ;;  %p79_p1 = scmp.ne.s32.totalorder %s9607_s20, %s9603_s19 }
   0x8   : > { %s11043_s27 = smov (%p31_p0, %s30_s27), 0  ;;  %s11045_s28 = smov (!%p31_p0, %s33_s28), %s9623_s24 }
   0x9   : > { %s68_s30 = ssub.s32 %s9619_s23, %s11043_s27  ;;  %p80_p2 = scmp.eq.s32.totalorder %s9627_s25, 0 }
   0xa   : > { %p35_p3 = scmp.ge.s32.totalorder %s11045_s28, 2  ;;  %p85_p4 = scmp.ne.s32.totalorder %s9603_s19, %s9599_s18 }
   0xb   : > { %p9714_p5 = por %p80_p2, %p79_p1  ;;  %p86_p6 = scmp.eq.s32.totalorder %s7165_s26, 0 }
   0xc   : > { %s11047_s28 = smov (%p35_p3, %s11045_s28), 0  ;;  %p8313_p8 = scmp.lt.s32.totalorder %s9627_s25, 10 }
   0xd   : > { %p9720_p7 = por %p86_p6, %p85_p4  ;;  %s67_s8 = ssub.s32 %s9623_s24, %s11047_s28 }
   0xe   : > { %s69_s9 = sor.u32 %s68_s30, %s67_s8  ;;  %s221_s10 = sand.u32 1, %s9607_s20  }
   0xf   : > { %p70_p9 = scmp.eq.s32.totalorder %s69_s9, 0  ;;  %s8303_s11 = smul.u32 5120, %s221_s10 }
  0x10   : > { %s7169_s12 = sshll.u32 %s9619_s23, 2  ;;  %s8304_s14 = smul.u32 6400, %s9623_s24 }
  0x11   : > { %s9730_s13 = scalar_select %p70_p9, %s9607_s20, %s72_s29  }
  0x12   : > { %s225_s15 = scalar_lea.vmem [#allocation4], %s8303_s11  ;;  %p9735_p10 = pnand %p8313_p8, %p9714_p5 }
  0x13   : > { %s234_s16 = sshll.u32 %s225_s15, 4  ;;  %s231_s18 = sadd.s32 %s8304_s14, %s7169_s12  ;;  %s9739_s16 = int_to_ptr.vmem [resolvable:$true] %s234_s16 }
  0x14   : > { %s7170_s26 = sshll.u32 %s231_s18, 6  ;;  %s9746_s29 = scalar_lea.sflag [#allocation5], %s221_s10 }
  0x15   : > { %s9744_s9 = scalar_lea.hbm %s11027_s1, %s7170_s26  ;;  %p9533_p12 = pneg %p9735_p10 }
  0x16   : > { %s9531_s6 = scalar_lea.hbm %s9744_s9, 81920  ;;  %s9536_s14 = scalar_lea.hbm %s11027_s1, 819200 }
  0x17   : > { %p9532_p11 = scmp.ne.s32.totalorder %s9744_s9, %s9531_s6  ;;  %p9537_p1 = scmp.lt.u32.totalorder %s9744_s9, %s11027_s1 }
  0x18   : > { %p9538_p2 = scmp.lt.u32.totalorder %s9536_s14, %s9531_s6  ;;  %p9540_p4 = scmp.lt.u32.totalorder %s9531_s6, %s9744_s9 }
  0x19   : > { %p9534_p13 = pnand %p9533_p12, %p9532_p11 }
  0x1a   : > { %p9539_p3 = por %p9538_p2, %p9537_p1 }
  0x1b   : > { %p9535_p0 = pneg %p9534_p13 }
  0x1c   : > { %p9541_p5 = por %p9540_p4, %p9539_p3 }
  0x1e   : > { %p9542_p6 = pnand %p9541_p5, %p9535_p0 }
  0x20   : > { %9545 = shalt.err (!%p9542_p6)
}
  0x21   : > { %s9546_s10 = scalar_lea.vmem %s9739_s16, 81920  ;;  %s9629_s26 = smov [#allocation4]  }
  0x22   : > { %p9547_p8 = scmp.ne.s32.totalorder %s9739_s16, %s9546_s10  ;;  %s9551_s30 = sshll.u32 %s9629_s26, 4  ;;  %s9552_s30 = int_to_ptr.vmem [resolvable:$false] %s9551_s30 }
  0x23   : > { %s9553_s8 = scalar_lea.vmem %s9552_s30, 163840  ;;  %p9554_p13 = scmp.lt.s32.totalorder %s9739_s16, %s9552_s30 }
  0x24   : > { %p9549_p9 = pnand %p9547_p8, %p9533_p12  ;;  %p9555_p1 = scmp.lt.s32.totalorder %s9553_s8, %s9546_s10 }
  0x26   : > { %p9550_p11 = pneg %p9549_p9  ;;  %p9556_p2 = por %p9555_p1, %p9554_p13 }
  0x28   : > { %p9557_p3 = pnand %p9556_p2, %p9550_p11 }
  0x2a   : > { %9560 = shalt.err (!%p9557_p3)
}
  0x2b   : > { %s9630_s6 = smov 1280   ;;  %s9631_s11 = smov 256  }
  0x2c   : > { %s9632_s12 = smov 16   ;;  %p7171_p12 = scmp.ge.s32.totalorder %s9627_s25, 1 }
  0x2d   : > { %8312 = dma.hbm_to_vmem [thread:$0]  (!%p9735_p10), %s9744_s9, 81920, %s9739_s16, %s9746_s29, %s9630_s6, %s9631_s11, %s9632_s12  }
  0x2e   : > { %p254_p0 = scmp.lt.s32.totalorder %s9627_s25, 11 }
  0x30   : > { %p255_p4 = pnand %p7171_p12, %p254_p0 }
  0x31   : > { %s260_s14 = sand.u32 (!%p255_p4), 1, %s9603_s19  }
  0x32   : > { %258 = sbr.rel (%p255_p4) target bundleno = 1378 (0x562), region = 40  ;;  %s261_s18 = scalar_lea.sflag (!%p255_p4), [#allocation5], %s260_s14 }
  0x33   : > { %s8305_s15 = smul.u32 (!%p255_p4), 5120, %s260_s14 }
  0x35   : > { %s9777_s10 = scalar_lea.vmem (!%p255_p4), [#allocation4], %s8305_s15 }
  0x39   : > { %9594 = dma.done.wait (%p9720_p7), %s261_s18, 81920  }
  0x3a   : > { %9596 = vsyncadd (%p9720_p7), %s261_s18, 4294885376  ;;  %s7172_s16 = sshll.u32 %s9611_s21, 2  ;;  %p314_p10 = scmp.lt.s32.totalorder %s9615_s22, 1 }
  0x3b   : > { %p316_p5 = scmp.lt.s32.totalorder %s7172_s16, 19  ;;  %p329_p6 = scmp.eq.s32.totalorder %s9615_s22, 0 }
  0x3c   : > { %s315_s17 = scalar_select %p314_p10, %s9615_s22, 1 }
  0x3d   : > { %s11049_s16 = smov (!%p316_p5, %s7172_s16), 19  ;;  %p330_p8 = scmp.eq.s32.totalorder %s9611_s21, 0 }
  0x3e   : > { %s8306_s9 = smul.u32 20, %s315_s17 }
  0x3f   : > { %p331_p9 = pnand %p330_p8, %p329_p6 }
  0x40   : > { %s9788_s29 = sadd.s32 %s8306_s9, %s11049_s16  ;;  %v8381_v0 = vld [vmem:[%s11026_s0] ss:$80 sps:$4 sm:$0xff] (!%p331_p9)   ;;  %v8383_v1 = vld [vmem:[%s11026_s0 + $0x4] ss:$80 sps:$4 sm:$0xff] (!%p331_p9)   ;;  %v8384_v2 = vld [vmem:[%s11026_s0 + $0x8] ss:$80 sps:$4 sm:$0xff] (!%p331_p9)  }
  0x41   : > { %s320_s30 = scalar_lea.vmem %s11028_s2, %s9788_s29  ;;  %334 = sbr.rel (%p331_p9) target bundleno = 75 (0x4b), region = 48  ;;  %455 = vst [vmem:[#allocation2] sm:$0xff] (!%p331_p9), %v8381_v0  ;;  %v8386_v3 = vld [vmem:[%s11026_s0 + $0xc] ss:$80 sps:$4 sm:$0xff] (!%p331_p9)   ;;  %456 = vst [vmem:[#allocation2 + $0x8] sm:$0xff] (!%p331_p9), %v8383_v1 }
  0x42   : > { %v8387_v4 = vld [vmem:[%s11026_s0 + $0x10] ss:$80 sps:$4 sm:$0xff] (!%p331_p9)   ;;  %v8389_v5 = vld [vmem:[%s11026_s0 + $0x14] ss:$80 sps:$4 sm:$0xff] (!%p331_p9)   ;;  %457 = vst [vmem:[#allocation2 + $0x10] sm:$0xff] (!%p331_p9), %v8384_v2  ;;  %458 = vst [vmem:[#allocation2 + $0x18] sm:$0xff] (!%p331_p9), %v8386_v3 }
  0x43   : > { %v8390_v6 = vld [vmem:[%s11026_s0 + $0x18] ss:$80 sps:$4 sm:$0xff] (!%p331_p9)   ;;  %459 = vst [vmem:[#allocation2 + $0x20] sm:$0xff] (!%p331_p9), %v8387_v4  ;;  %460 = vst [vmem:[#allocation2 + $0x28] sm:$0xff] (!%p331_p9), %v8389_v5  ;;  %v8392_v7 = vld [vmem:[%s11026_s0 + $0x1c] ss:$80 sps:$4 sm:$0xff] (!%p331_p9)  }
  0x44   : > { %461 = vst [vmem:[#allocation2 + $0x30] sm:$0xff] (!%p331_p9), %v8390_v6  ;;  %v8393_v8 = vld [vmem:[%s11026_s0 + $0x20] ss:$80 sps:$4 sm:$0xff] (!%p331_p9)   ;;  %v8395_v9 = vld [vmem:[%s11026_s0 + $0x24] ss:$80 sps:$4 sm:$0xff] (!%p331_p9)   ;;  %462 = vst [vmem:[#allocation2 + $0x38] sm:$0xff] (!%p331_p9), %v8392_v7 }
  0x45   : > { %v8396_v10 = vld [vmem:[%s11026_s0 + $0x28] ss:$80 sps:$4 sm:$0xff] (!%p331_p9)   ;;  %v8398_v11 = vld [vmem:[%s11026_s0 + $0x2c] ss:$80 sps:$4 sm:$0xff] (!%p331_p9)   ;;  %463 = vst [vmem:[#allocation2 + $0x40] sm:$0xff] (!%p331_p9), %v8393_v8  ;;  %464 = vst [vmem:[#allocation2 + $0x48] sm:$0xff] (!%p331_p9), %v8395_v9 }
  0x46   : > { %v8399_v12 = vld [vmem:[%s11026_s0 + $0x30] ss:$80 sps:$4 sm:$0xff] (!%p331_p9)   ;;  %465 = vst [vmem:[#allocation2 + $0x50] sm:$0xff] (!%p331_p9), %v8396_v10  ;;  %466 = vst [vmem:[#allocation2 + $0x58] sm:$0xff] (!%p331_p9), %v8398_v11  ;;  %v8401_v13 = vld [vmem:[%s11026_s0 + $0x34] ss:$80 sps:$4 sm:$0xff] (!%p331_p9)  }
  0x47   : > { %467 = vst [vmem:[#allocation2 + $0x60] sm:$0xff] (!%p331_p9), %v8399_v12  ;;  %v8402_v14 = vld [vmem:[%s11026_s0 + $0x38] ss:$80 sps:$4 sm:$0xff] (!%p331_p9)   ;;  %v8404_v15 = vld [vmem:[%s11026_s0 + $0x3c] ss:$80 sps:$4 sm:$0xff] (!%p331_p9)   ;;  %468 = vst [vmem:[#allocation2 + $0x68] sm:$0xff] (!%p331_p9), %v8401_v13 }
  0x48   : > { %v8405_v16 = vld [vmem:[%s11026_s0 + $0x40] ss:$80 sps:$4 sm:$0xff]   ;;  %v8407_v17 = vld [vmem:[%s11026_s0 + $0x44] ss:$80 sps:$4 sm:$0xff]   ;;  %469 = vst [vmem:[#allocation2 + $0x70] sm:$0xff] %v8402_v14  ;;  %470 = vst [vmem:[#allocation2 + $0x78] sm:$0xff] %v8404_v15 }
  0x49   : > { %v8408_v18 = vld [vmem:[%s11026_s0 + $0x48] ss:$80 sps:$4 sm:$0xff]   ;;  %471 = vst [vmem:[#allocation2 + $0x80] sm:$0xff] %v8405_v16  ;;  %472 = vst [vmem:[#allocation2 + $0x88] sm:$0xff] %v8407_v17  ;;  %v8410_v19 = vld [vmem:[%s11026_s0 + $0x4c] ss:$80 sps:$4 sm:$0xff]  }
  0x4a   : > { %473 = vst [vmem:[#allocation2 + $0x90] sm:$0xff] %v8408_v18  ;;  %474 = vst [vmem:[#allocation2 + $0x98] sm:$0xff] %v8410_v19 }
  0x4b PF: > { %p475_p7 = scmp.gt.s32.totalorder %s9615_s22, 0 }
  0x4d   : > { %p476_p11 = pnand %p475_p7, %p330_p8 }
  0x4e   : > { %v480_v20 = vld [vmem:[#allocation3] sm:$0xff] (!%p476_p11)  ;;  %v481_v21 = vld [vmem:[#allocation3 + $0x8] sm:$0xff] (!%p476_p11)  ;;  %v482_v22 = vld [vmem:[#allocation3 + $0x10] sm:$0xff] (!%p476_p11) }
  0x4f   : > { %479 = sbr.rel (%p476_p11) target bundleno = 89 (0x59), region = 52  ;;  %500 = vst [vmem:[#allocation2] sm:$0xff] (!%p476_p11), %v480_v20  ;;  %501 = vst [vmem:[#allocation2 + $0x8] sm:$0xff] (!%p476_p11), %v481_v21  ;;  %v483_v23 = vld [vmem:[#allocation3 + $0x18] sm:$0xff] (!%p476_p11)  ;;  %v484_v24 = vld [vmem:[#allocation3 + $0x20] sm:$0xff] (!%p476_p11) }
  0x50   : > { %502 = vst [vmem:[#allocation2 + $0x10] sm:$0xff] (!%p476_p11), %v482_v22  ;;  %v485_v25 = vld [vmem:[#allocation3 + $0x28] sm:$0xff] (!%p476_p11)  ;;  %503 = vst [vmem:[#allocation2 + $0x18] sm:$0xff] (!%p476_p11), %v483_v23  ;;  %v486_v26 = vld [vmem:[#allocation3 + $0x30] sm:$0xff] (!%p476_p11) }
  0x51   : > { %504 = vst [vmem:[#allocation2 + $0x20] sm:$0xff] (!%p476_p11), %v484_v24  ;;  %505 = vst [vmem:[#allocation2 + $0x28] sm:$0xff] (!%p476_p11), %v485_v25  ;;  %v487_v27 = vld [vmem:[#allocation3 + $0x38] sm:$0xff] (!%p476_p11)  ;;  %v488_v28 = vld [vmem:[#allocation3 + $0x40] sm:$0xff] (!%p476_p11) }
  0x52   : > { %506 = vst [vmem:[#allocation2 + $0x30] sm:$0xff] (!%p476_p11), %v486_v26  ;;  %507 = vst [vmem:[#allocation2 + $0x38] sm:$0xff] (!%p476_p11), %v487_v27  ;;  %v489_v29 = vld [vmem:[#allocation3 + $0x48] sm:$0xff] (!%p476_p11)  ;;  %v490_v30 = vld [vmem:[#allocation3 + $0x50] sm:$0xff] (!%p476_p11) }
  0x53   : > { %508 = vst [vmem:[#allocation2 + $0x40] sm:$0xff] (!%p476_p11), %v488_v28  ;;  %v491_v31 = vld [vmem:[#allocation3 + $0x58] sm:$0xff] (!%p476_p11)  ;;  %509 = vst [vmem:[#allocation2 + $0x48] sm:$0xff] (!%p476_p11), %v489_v29  ;;  %v492_v32 = vld [vmem:[#allocation3 + $0x60] sm:$0xff] (!%p476_p11) }
  0x54   : > { %510 = vst [vmem:[#allocation2 + $0x50] sm:$0xff] (!%p476_p11), %v490_v30  ;;  %511 = vst [vmem:[#allocation2 + $0x58] sm:$0xff] (!%p476_p11), %v491_v31  ;;  %v493_v33 = vld [vmem:[#allocation3 + $0x68] sm:$0xff] (!%p476_p11)  ;;  %v494_v34 = vld [vmem:[#allocation3 + $0x70] sm:$0xff] (!%p476_p11) }
  0x55   : > { %512 = vst [vmem:[#allocation2 + $0x60] sm:$0xff] (!%p476_p11), %v492_v32  ;;  %513 = vst [vmem:[#allocation2 + $0x68] sm:$0xff] (!%p476_p11), %v493_v33  ;;  %v495_v35 = vld [vmem:[#allocation3 + $0x78] sm:$0xff] (!%p476_p11)  ;;  %v496_v36 = vld [vmem:[#allocation3 + $0x80] sm:$0xff] (!%p476_p11) }
  0x56   : > { %514 = vst [vmem:[#allocation2 + $0x70] sm:$0xff] %v494_v34  ;;  %v497_v37 = vld [vmem:[#allocation3 + $0x88] sm:$0xff]  ;;  %515 = vst [vmem:[#allocation2 + $0x78] sm:$0xff] %v495_v35  ;;  %v498_v38 = vld [vmem:[#allocation3 + $0x90] sm:$0xff] }
  0x57   : > { %516 = vst [vmem:[#allocation2 + $0x80] sm:$0xff] %v496_v36  ;;  %517 = vst [vmem:[#allocation2 + $0x88] sm:$0xff] %v497_v37  ;;  %v499_v39 = vld [vmem:[#allocation3 + $0x98] sm:$0xff] }
  0x58   : > { %518 = vst [vmem:[#allocation2 + $0x90] sm:$0xff] %v498_v38  ;;  %519 = vst [vmem:[#allocation2 + $0x98] sm:$0xff] %v499_v39 }
  0x59 PF: > { %v8411_v40 = vld [vmem:[%s9777_s10 + $0x4] ss:$16 sps:$4 sm:$0xff]   ;;  %v8413_v41 = vld [vmem:[%s9777_s10 + $0xc] ss:$16 sps:$4 sm:$0xff]   ;;  %v8415_v42 = vld [vmem:[%s9777_s10] ss:$16 sps:$4 sm:$0xff]  }
  0x5a   : > { %4402 = vmatprep.subr.bf16.mxu0 %v8411_v40  ;;  %v8416_v43 = vld [vmem:[%s9777_s10 + $0x8] ss:$16 sps:$4 sm:$0xff]   ;;  %4832 = vmatprep.subr.bf16.mxu1 %v8413_v41  ;;  %v8417_v44 = vld [vmem:[%s9777_s10 + $0x24] ss:$16 sps:$4 sm:$0xff]   ;;  %v8419_v45 = vld [vmem:[%s9777_s10 + $0x2c] ss:$16 sps:$4 sm:$0xff]  }
  0x5b   : > { %4403 = vmatpush1.bf16.msra.mxu0 %v8415_v42  ;;  %4833 = vmatpush1.bf16.msra.mxu1 %v8416_v43  ;;  %v8421_v46 = vld [vmem:[%s9777_s10 + $0x20] ss:$16 sps:$4 sm:$0xff]   ;;  %v8422_v47 = vld [vmem:[%s9777_s10 + $0x28] ss:$16 sps:$4 sm:$0xff]   ;;  %v8423_v48 = vld [vmem:[%s9777_s10 + $0x44] ss:$16 sps:$4 sm:$0xff]  }
  0x5c   : > { %4404 = vmatprep.subr.bf16.mxu0 %v8417_v44  ;;  %4834 = vmatprep.subr.bf16.mxu1 %v8419_v45  ;;  %v8425_v49 = vld [vmem:[%s9777_s10 + $0x4c] ss:$16 sps:$4 sm:$0xff]   ;;  %v8427_v50 = vld [vmem:[%s9777_s10 + $0x40] ss:$16 sps:$4 sm:$0xff]   ;;  %v8428_v51 = vld [vmem:[%s9777_s10 + $0x48] ss:$16 sps:$4 sm:$0xff]  }
  0x5d   : > { %v8429_v52 = vld [vmem:[%s9777_s10 + $0x64] ss:$16 sps:$4 sm:$0xff]   ;;  %v8431_v53 = vld [vmem:[%s9777_s10 + $0x6c] ss:$16 sps:$4 sm:$0xff]   ;;  %v8433_v54 = vld [vmem:[%s9777_s10 + $0x60] ss:$16 sps:$4 sm:$0xff]  }
  0x5e   : > { %v8434_v55 = vld [vmem:[%s9777_s10 + $0x68] ss:$16 sps:$4 sm:$0xff]   ;;  %v8435_v56 = vld [vmem:[%s9777_s10 + $0x84] ss:$16 sps:$4 sm:$0xff]   ;;  %v8437_v57 = vld [vmem:[%s9777_s10 + $0x8c] ss:$16 sps:$4 sm:$0xff]  }
  0x5f   : > { %4405 = vmatpush1.bf16.msra.mxu0 %v8421_v46  ;;  %4835 = vmatpush1.bf16.msra.mxu1 %v8422_v47  ;;  %v8439_v58 = vld [vmem:[%s9777_s10 + $0x80] ss:$16 sps:$4 sm:$0xff]   ;;  %v8440_v59 = vld [vmem:[%s9777_s10 + $0x88] ss:$16 sps:$4 sm:$0xff]   ;;  %v8441_v60 = vld [vmem:[%s9777_s10 + $0xa4] ss:$16 sps:$4 sm:$0xff]  }
  0x60   : > { %4406 = vmatprep.subr.bf16.mxu0 %v8423_v48  ;;  %4836 = vmatprep.subr.bf16.mxu1 %v8425_v49  ;;  %v8443_v61 = vld [vmem:[%s9777_s10 + $0xac] ss:$16 sps:$4 sm:$0xff]   ;;  %v8445_v62 = vld [vmem:[%s9777_s10 + $0xa0] ss:$16 sps:$4 sm:$0xff]   ;;  %v8446_v63 = vld [vmem:[%s9777_s10 + $0xa8] ss:$16 sps:$4 sm:$0xff]  }
  0x61   : > { %v8447_v0 = vld [vmem:[%s9777_s10 + $0xc4] ss:$16 sps:$4 sm:$0xff]   ;;  %v8449_v1 = vld [vmem:[%s9777_s10 + $0xcc] ss:$16 sps:$4 sm:$0xff]   ;;  %v8451_v2 = vld [vmem:[%s9777_s10 + $0xc0] ss:$16 sps:$4 sm:$0xff]  }
  0x62   : > { %v8452_v3 = vld [vmem:[%s9777_s10 + $0xc8] ss:$16 sps:$4 sm:$0xff]   ;;  %v8453_v4 = vld [vmem:[%s9777_s10 + $0xe4] ss:$16 sps:$4 sm:$0xff]   ;;  %v8455_v5 = vld [vmem:[%s9777_s10 + $0xec] ss:$16 sps:$4 sm:$0xff]  }
  0x63   : > { %4407 = vmatpush1.bf16.msra.mxu0 %v8427_v50  ;;  %4837 = vmatpush1.bf16.msra.mxu1 %v8428_v51  ;;  %v8457_v6 = vld [vmem:[%s9777_s10 + $0xe0] ss:$16 sps:$4 sm:$0xff]   ;;  %v8458_v7 = vld [vmem:[%s9777_s10 + $0xe8] ss:$16 sps:$4 sm:$0xff]   ;;  %v8459_v8 = vld [vmem:[%s9777_s10 + $0x104] ss:$16 sps:$4 sm:$0xff]  }
  0x64   : > { %4408 = vmatprep.subr.bf16.mxu0 %v8429_v52  ;;  %4838 = vmatprep.subr.bf16.mxu1 %v8431_v53  ;;  %v8461_v9 = vld [vmem:[%s9777_s10 + $0x10c] ss:$16 sps:$4 sm:$0xff]   ;;  %v8463_v10 = vld [vmem:[%s9777_s10 + $0x100] ss:$16 sps:$4 sm:$0xff]   ;;  %v8464_v11 = vld [vmem:[%s9777_s10 + $0x108] ss:$16 sps:$4 sm:$0xff]  }
  0x65   : > { %v8465_v12 = vld [vmem:[%s9777_s10 + $0x124] ss:$16 sps:$4 sm:$0xff]   ;;  %v8467_v13 = vld [vmem:[%s9777_s10 + $0x12c] ss:$16 sps:$4 sm:$0xff]   ;;  %v8469_v14 = vld [vmem:[%s9777_s10 + $0x120] ss:$16 sps:$4 sm:$0xff]  }
  0x66   : > { %v8470_v15 = vld [vmem:[%s9777_s10 + $0x128] ss:$16 sps:$4 sm:$0xff]   ;;  %v8471_v16 = vld [vmem:[%s9777_s10 + $0x144] ss:$16 sps:$4 sm:$0xff]   ;;  %v8473_v17 = vld [vmem:[%s9777_s10 + $0x14c] ss:$16 sps:$4 sm:$0xff]  }
  0x67   : > { %4409 = vmatpush1.bf16.msra.mxu0 %v8433_v54  ;;  %4839 = vmatpush1.bf16.msra.mxu1 %v8434_v55  ;;  %v8475_v18 = vld [vmem:[%s9777_s10 + $0x140] ss:$16 sps:$4 sm:$0xff]   ;;  %v8476_v19 = vld [vmem:[%s9777_s10 + $0x148] ss:$16 sps:$4 sm:$0xff]   ;;  %v8477_v20 = vld [vmem:[%s9777_s10 + $0x164] ss:$16 sps:$4 sm:$0xff]  }
  0x68   : > { %4410 = vmatprep.subr.bf16.mxu0 %v8435_v56  ;;  %4840 = vmatprep.subr.bf16.mxu1 %v8437_v57  ;;  %v8479_v21 = vld [vmem:[%s9777_s10 + $0x16c] ss:$16 sps:$4 sm:$0xff]   ;;  %v8481_v23 = vld [vmem:[%s9777_s10 + $0x160] ss:$16 sps:$4 sm:$0xff]   ;;  %v8482_v24 = vld [vmem:[%s9777_s10 + $0x168] ss:$16 sps:$4 sm:$0xff]  }
  0x69   : > { %v521_v22 = vld [vmem:[#allocation2 + $0x8] sm:$0xff]  ;;  %v8483_v25 = vld [vmem:[%s9777_s10 + $0x184] ss:$16 sps:$4 sm:$0xff]   ;;  %v8487_v27 = vld [vmem:[%s9777_s10 + $0x180] ss:$16 sps:$4 sm:$0xff]   ;;  %p7833_p13 = scmp.ne.s32.totalorder %s9611_s21, 0 }
  0x6a   : > { %4434 = vmatprep.mubr.bf16.mxu0 %v521_v22  ;;  %4864 = vmatprep.mubr.bf16.mxu1 %v521_v22  ;;  %v8485_v26 = vld [vmem:[%s9777_s10 + $0x18c] ss:$16 sps:$4 sm:$0xff]   ;;  %v8488_v28 = vld [vmem:[%s9777_s10 + $0x188] ss:$16 sps:$4 sm:$0xff]   ;;  %v8489_v29 = vld [vmem:[%s9777_s10 + $0x1a4] ss:$16 sps:$4 sm:$0xff]  }
  0x6b   : > { %4411 = vmatpush1.bf16.msra.mxu0 %v8439_v58  ;;  %4841 = vmatpush1.bf16.msra.mxu1 %v8440_v59  ;;  %v8491_v30 = vld [vmem:[%s9777_s10 + $0x1ac] ss:$16 sps:$4 sm:$0xff]   ;;  %v8493_v31 = vld [vmem:[%s9777_s10 + $0x1a0] ss:$16 sps:$4 sm:$0xff]   ;;  %v8494_v32 = vld [vmem:[%s9777_s10 + $0x1a8] ss:$16 sps:$4 sm:$0xff]  }
  0x6c   : > { %4412 = vmatprep.subr.bf16.mxu0 %v8441_v60  ;;  %4842 = vmatprep.subr.bf16.mxu1 %v8443_v61  ;;  %v8495_v33 = vld [vmem:[%s9777_s10 + $0x1c4] ss:$16 sps:$4 sm:$0xff]   ;;  %v8497_v34 = vld [vmem:[%s9777_s10 + $0x1cc] ss:$16 sps:$4 sm:$0xff]   ;;  %v8499_v35 = vld [vmem:[%s9777_s10 + $0x1c0] ss:$16 sps:$4 sm:$0xff]  }
  0x6d   : > { %v8500_v36 = vld [vmem:[%s9777_s10 + $0x1c8] ss:$16 sps:$4 sm:$0xff]   ;;  %v8501_v37 = vld [vmem:[%s9777_s10 + $0x1e4] ss:$16 sps:$4 sm:$0xff]   ;;  %v8503_v38 = vld [vmem:[%s9777_s10 + $0x1ec] ss:$16 sps:$4 sm:$0xff]  }
  0x6e   : > { %v8505_v39 = vld [vmem:[%s9777_s10 + $0x1e0] ss:$16 sps:$4 sm:$0xff]   ;;  %v8506_v40 = vld [vmem:[%s9777_s10 + $0x1e8] ss:$16 sps:$4 sm:$0xff]   ;;  %v8509_v41 = vld [vmem:[%s9777_s10 + $0x204] ss:$16 sps:$4 sm:$0xff]  }
  0x6f   : > { %4413 = vmatpush1.bf16.msra.mxu0 %v8445_v62  ;;  %4843 = vmatpush1.bf16.msra.mxu1 %v8446_v63  ;;  %v8512_v42 = vld [vmem:[%s9777_s10 + $0x20c] ss:$16 sps:$4 sm:$0xff]   ;;  %v8507_v43 = vld [vmem:[%s9777_s10 + $0x200] ss:$16 sps:$4 sm:$0xff]   ;;  %v8510_v44 = vld [vmem:[%s9777_s10 + $0x208] ss:$16 sps:$4 sm:$0xff]  }
  0x70   : > { %4414 = vmatprep.subr.bf16.mxu0 %v8447_v0  ;;  %4844 = vmatprep.subr.bf16.mxu1 %v8449_v1  ;;  %v520_v45 = vld [vmem:[#allocation2] sm:$0xff]  ;;  %v8518_v47 = vld [vmem:[%s9777_s10 + $0x22c] ss:$16 sps:$4 sm:$0xff]   ;;  %v8516_v49 = vld [vmem:[%s9777_s10 + $0x228] ss:$16 sps:$4 sm:$0xff]  }
  0x71   : > { %v8515_v46 = vld [vmem:[%s9777_s10 + $0x224] ss:$16 sps:$4 sm:$0xff]   ;;  %v8513_v48 = vld [vmem:[%s9777_s10 + $0x220] ss:$16 sps:$4 sm:$0xff]   ;;  %v8524_v51 = vld [vmem:[%s9777_s10 + $0x24c] ss:$16 sps:$4 sm:$0xff]  }
  0x72   : > { %v8521_v50 = vld [vmem:[%s9777_s10 + $0x244] ss:$16 sps:$4 sm:$0xff]   ;;  %v8519_v52 = vld [vmem:[%s9777_s10 + $0x240] ss:$16 sps:$4 sm:$0xff]   ;;  %v8522_v53 = vld [vmem:[%s9777_s10 + $0x248] ss:$16 sps:$4 sm:$0xff]  }
  0x73   : > { %4415 = vmatpush1.bf16.msra.mxu0 %v8451_v2  ;;  %4845 = vmatpush1.bf16.msra.mxu1 %v8452_v3  ;;  %v8527_v54 = vld [vmem:[%s9777_s10 + $0x264] ss:$16 sps:$4 sm:$0xff]   ;;  %v8530_v55 = vld [vmem:[%s9777_s10 + $0x26c] ss:$16 sps:$4 sm:$0xff]   ;;  %v8525_v56 = vld [vmem:[%s9777_s10 + $0x260] ss:$16 sps:$4 sm:$0xff]  }
  0x74   : > { %4416 = vmatprep.subr.bf16.mxu0 %v8453_v4  ;;  %4846 = vmatprep.subr.bf16.mxu1 %v8455_v5  ;;  %v8528_v57 = vld [vmem:[%s9777_s10 + $0x268] ss:$16 sps:$4 sm:$0xff]   ;;  %v8533_v58 = vld [vmem:[%s9777_s10 + $0x284] ss:$16 sps:$4 sm:$0xff]   ;;  %v8536_v59 = vld [vmem:[%s9777_s10 + $0x28c] ss:$16 sps:$4 sm:$0xff]  }
  0x75   : > { %v8531_v60 = vld [vmem:[%s9777_s10 + $0x280] ss:$16 sps:$4 sm:$0xff]   ;;  %v8534_v61 = vld [vmem:[%s9777_s10 + $0x288] ss:$16 sps:$4 sm:$0xff]   ;;  %v8539_v62 = vld [vmem:[%s9777_s10 + $0x2a4] ss:$16 sps:$4 sm:$0xff]  }
  0x76   : > { %v8542_v63 = vld [vmem:[%s9777_s10 + $0x2ac] ss:$16 sps:$4 sm:$0xff]   ;;  %v8537_v0 = vld [vmem:[%s9777_s10 + $0x2a0] ss:$16 sps:$4 sm:$0xff]   ;;  %v8540_v1 = vld [vmem:[%s9777_s10 + $0x2a8] ss:$16 sps:$4 sm:$0xff]  }
  0x77   : > { %4417 = vmatpush1.bf16.msra.mxu0 %v8457_v6  ;;  %4847 = vmatpush1.bf16.msra.mxu1 %v8458_v7  ;;  %v8545_v2 = vld [vmem:[%s9777_s10 + $0x2c4] ss:$16 sps:$4 sm:$0xff]   ;;  %v8548_v3 = vld [vmem:[%s9777_s10 + $0x2cc] ss:$16 sps:$4 sm:$0xff]   ;;  %v8543_v5 = vld [vmem:[%s9777_s10 + $0x2c0] ss:$16 sps:$4 sm:$0xff]  }
  0x78   : > { %4418 = vmatprep.subr.bf16.mxu0 %v8459_v8  ;;  %4848 = vmatprep.subr.bf16.mxu1 %v8461_v9  ;;  %v523_v4 = vld [vmem:[#allocation2 + $0x18] sm:$0xff]  ;;  %v8551_v7 = vld [vmem:[%s9777_s10 + $0x2e4] ss:$16 sps:$4 sm:$0xff]   ;;  %v8549_v9 = vld [vmem:[%s9777_s10 + $0x2e0] ss:$16 sps:$4 sm:$0xff]  }
  0x79   : > { %v8546_v6 = vld [vmem:[%s9777_s10 + $0x2c8] ss:$16 sps:$4 sm:$0xff]   ;;  %v8554_v8 = vld [vmem:[%s9777_s10 + $0x2ec] ss:$16 sps:$4 sm:$0xff]  }
  0x7a   : > { %v8570_v22 = vld [vmem:[%s9777_s10 + $0x348] ss:$16 sps:$4 sm:$0xff]  }
  0x7b   : > { %4419 = vmatpush1.bf16.msra.mxu0 %v8463_v10  ;;  %4849 = vmatpush1.bf16.msra.mxu1 %v8464_v11  ;;  %v8552_v10 = vld [vmem:[%s9777_s10 + $0x2e8] ss:$16 sps:$4 sm:$0xff]   ;;  %v8557_v11 = vld [vmem:[%s9777_s10 + $0x304] ss:$16 sps:$4 sm:$0xff]  }
  0x7c   : > { %4420 = vmatprep.subr.bf16.mxu0 %v8465_v12  ;;  %4850 = vmatprep.subr.bf16.mxu1 %v8467_v13  ;;  %v8560_v12 = vld [vmem:[%s9777_s10 + $0x30c] ss:$16 sps:$4 sm:$0xff]   ;;  %v8555_v13 = vld [vmem:[%s9777_s10 + $0x300] ss:$16 sps:$4 sm:$0xff]  }
  0x7f   : > { %4421 = vmatpush1.bf16.msra.mxu0 %v8469_v14  ;;  %4851 = vmatpush1.bf16.msra.mxu1 %v8470_v15  ;;  %v8558_v14 = vld [vmem:[%s9777_s10 + $0x308] ss:$16 sps:$4 sm:$0xff]   ;;  %v8563_v15 = vld [vmem:[%s9777_s10 + $0x324] ss:$16 sps:$4 sm:$0xff]  }
  0x80   : > { %4422 = vmatprep.subr.bf16.mxu0 %v8471_v16  ;;  %4852 = vmatprep.subr.bf16.mxu1 %v8473_v17  ;;  %v8566_v16 = vld [vmem:[%s9777_s10 + $0x32c] ss:$16 sps:$4 sm:$0xff]   ;;  %v8561_v17 = vld [vmem:[%s9777_s10 + $0x320] ss:$16 sps:$4 sm:$0xff]  }
  0x83   : > { %4423 = vmatpush1.bf16.msra.mxu0 %v8475_v18  ;;  %4853 = vmatpush1.bf16.msra.mxu1 %v8476_v19  ;;  %v8564_v18 = vld [vmem:[%s9777_s10 + $0x328] ss:$16 sps:$4 sm:$0xff]   ;;  %v8569_v19 = vld [vmem:[%s9777_s10 + $0x344] ss:$16 sps:$4 sm:$0xff]  }
  0x84   : > { %4424 = vmatprep.subr.bf16.mxu0 %v8477_v20  ;;  %4854 = vmatprep.subr.bf16.mxu1 %v8479_v21  ;;  %v8572_v20 = vld [vmem:[%s9777_s10 + $0x34c] ss:$16 sps:$4 sm:$0xff]   ;;  %v8567_v21 = vld [vmem:[%s9777_s10 + $0x340] ss:$16 sps:$4 sm:$0xff]  }
  0x87   : > { %4425 = vmatpush1.bf16.msra.mxu0 %v8481_v23  ;;  %4855 = vmatpush1.bf16.msra.mxu1 %v8482_v24  ;;  %v8575_v23 = vld [vmem:[%s9777_s10 + $0x364] ss:$16 sps:$4 sm:$0xff]   ;;  %v8578_v24 = vld [vmem:[%s9777_s10 + $0x36c] ss:$16 sps:$4 sm:$0xff]  }
  0x88   : > { %4426 = vmatprep.subr.bf16.mxu0 %v8483_v25  ;;  %4856 = vmatprep.subr.bf16.mxu1 %v8485_v26  ;;  %v8573_v25 = vld [vmem:[%s9777_s10 + $0x360] ss:$16 sps:$4 sm:$0xff]   ;;  %v8576_v26 = vld [vmem:[%s9777_s10 + $0x368] ss:$16 sps:$4 sm:$0xff]  }
  0x8b   : > { %4427 = vmatpush1.bf16.msra.mxu0 %v8487_v27  ;;  %4857 = vmatpush1.bf16.msra.mxu1 %v8488_v28  ;;  %v8581_v27 = vld [vmem:[%s9777_s10 + $0x384] ss:$16 sps:$4 sm:$0xff]   ;;  %v8584_v28 = vld [vmem:[%s9777_s10 + $0x38c] ss:$16 sps:$4 sm:$0xff]  }
  0x8c   : > { %4428 = vmatprep.subr.bf16.mxu0 %v8489_v29  ;;  %4858 = vmatprep.subr.bf16.mxu1 %v8491_v30  ;;  %v8579_v29 = vld [vmem:[%s9777_s10 + $0x380] ss:$16 sps:$4 sm:$0xff]   ;;  %v8582_v30 = vld [vmem:[%s9777_s10 + $0x388] ss:$16 sps:$4 sm:$0xff]  }
  0x8f   : > { %4429 = vmatpush1.bf16.msra.mxu0 %v8493_v31  ;;  %4859 = vmatpush1.bf16.msra.mxu1 %v8494_v32  ;;  %v8587_v31 = vld [vmem:[%s9777_s10 + $0x3a4] ss:$16 sps:$4 sm:$0xff]   ;;  %v8590_v32 = vld [vmem:[%s9777_s10 + $0x3ac] ss:$16 sps:$4 sm:$0xff]  }
  0x90   : > { %4430 = vmatprep.subr.bf16.mxu0 %v8495_v33  ;;  %4860 = vmatprep.subr.bf16.mxu1 %v8497_v34  ;;  %v8585_v33 = vld [vmem:[%s9777_s10 + $0x3a0] ss:$16 sps:$4 sm:$0xff]   ;;  %v8588_v34 = vld [vmem:[%s9777_s10 + $0x3a8] ss:$16 sps:$4 sm:$0xff]  }
  0x93   : > { %4431 = vmatpush1.bf16.msra.mxu0 %v8499_v35  ;;  %4861 = vmatpush1.bf16.msra.mxu1 %v8500_v36  ;;  %v8593_v35 = vld [vmem:[%s9777_s10 + $0x3c4] ss:$16 sps:$4 sm:$0xff]   ;;  %v8596_v36 = vld [vmem:[%s9777_s10 + $0x3cc] ss:$16 sps:$4 sm:$0xff]  }
  0x94   : > { %4432 = vmatprep.subr.bf16.mxu0 %v8501_v37  ;;  %4862 = vmatprep.subr.bf16.mxu1 %v8503_v38  ;;  %v8591_v37 = vld [vmem:[%s9777_s10 + $0x3c0] ss:$16 sps:$4 sm:$0xff]   ;;  %v8594_v38 = vld [vmem:[%s9777_s10 + $0x3c8] ss:$16 sps:$4 sm:$0xff]  }
  0x97   : > { %4433 = vmatpush1.bf16.msra.mxu0 %v8505_v39  ;;  %4863 = vmatpush1.bf16.msra.mxu1 %v8506_v40  ;;  %v8599_v39 = vld [vmem:[%s9777_s10 + $0x3e4] ss:$16 sps:$4 sm:$0xff]   ;;  %v8602_v40 = vld [vmem:[%s9777_s10 + $0x3ec] ss:$16 sps:$4 sm:$0xff]  }
  0x98   : > { %4445 = vmatprep.subr.bf16.mxu0 %v8509_v41  ;;  %4875 = vmatprep.subr.bf16.mxu1 %v8512_v42  ;;  %v8597_v41 = vld [vmem:[%s9777_s10 + $0x3e0] ss:$16 sps:$4 sm:$0xff]   ;;  %v8600_v42 = vld [vmem:[%s9777_s10 + $0x3e8] ss:$16 sps:$4 sm:$0xff]  }
  0x9a   : > { %4435 = vmatmul.mubr.bf16.vlgmr.msra.gmra.mrb[0].mxu0 %v520_v45  ;;  %4865 = vmatmul.mubr.bf16.vlgmr.msra.gmra.mrb[0].mxu1 %v520_v45  ;;  %v8603_v45 = vld [vmem:[%s9777_s10 + $0x400] ss:$16 sps:$4 sm:$0xff]  }
  0x9b   : > { %4446 = vmatpush1.bf16.msra.mxu0 %v8507_v43  ;;  %4876 = vmatpush1.bf16.msra.mxu1 %v8510_v44  ;;  %v8605_v43 = vld [vmem:[%s9777_s10 + $0x404] ss:$16 sps:$4 sm:$0xff]   ;;  %v8608_v44 = vld [vmem:[%s9777_s10 + $0x40c] ss:$16 sps:$4 sm:$0xff]  }
  0x9c   : > { %4447 = vmatprep.subr.bf16.mxu0 %v8515_v46  ;;  %4877 = vmatprep.subr.bf16.mxu1 %v8518_v47  ;;  %v8606_v46 = vld [vmem:[%s9777_s10 + $0x408] ss:$16 sps:$4 sm:$0xff]   ;;  %v522_v47 = vld [vmem:[#allocation2 + $0x10] sm:$0xff] }
  0x9d   : > { %4477 = vmatprep.mubr.bf16.mxu0 %v523_v4  ;;  %4907 = vmatprep.mubr.bf16.mxu1 %v523_v4  ;;  %v8636_v4 = vld [vmem:[%s9777_s10 + $0x4a8] ss:$16 sps:$4 sm:$0xff]  }
  0x9f   : > { %4448 = vmatpush1.bf16.msra.mxu0 %v8513_v48  ;;  %4878 = vmatpush1.bf16.msra.mxu1 %v8516_v49  ;;  %v8611_v48 = vld [vmem:[%s9777_s10 + $0x424] ss:$16 sps:$4 sm:$0xff]   ;;  %v8614_v49 = vld [vmem:[%s9777_s10 + $0x42c] ss:$16 sps:$4 sm:$0xff]  }
  0xa0   : > { %4449 = vmatprep.subr.bf16.mxu0 %v8521_v50  ;;  %4879 = vmatprep.subr.bf16.mxu1 %v8524_v51  ;;  %v525_v50 = vld [vmem:[#allocation2 + $0x28] sm:$0xff]  ;;  %v8609_v51 = vld [vmem:[%s9777_s10 + $0x420] ss:$16 sps:$4 sm:$0xff]  }
  0xa3   : > { %4450 = vmatpush1.bf16.msra.mxu0 %v8519_v52  ;;  %4880 = vmatpush1.bf16.msra.mxu1 %v8522_v53  ;;  %v8612_v52 = vld [vmem:[%s9777_s10 + $0x428] ss:$16 sps:$4 sm:$0xff]   ;;  %v8617_v53 = vld [vmem:[%s9777_s10 + $0x444] ss:$16 sps:$4 sm:$0xff]  }
  0xa4   : > { %4451 = vmatprep.subr.bf16.mxu0 %v8527_v54  ;;  %4881 = vmatprep.subr.bf16.mxu1 %v8530_v55  ;;  %v8620_v54 = vld [vmem:[%s9777_s10 + $0x44c] ss:$16 sps:$4 sm:$0xff]   ;;  %v8615_v55 = vld [vmem:[%s9777_s10 + $0x440] ss:$16 sps:$4 sm:$0xff]  }
  0xa7   : > { %4452 = vmatpush1.bf16.msra.mxu0 %v8525_v56  ;;  %4882 = vmatpush1.bf16.msra.mxu1 %v8528_v57  ;;  %v8618_v56 = vld [vmem:[%s9777_s10 + $0x448] ss:$16 sps:$4 sm:$0xff]   ;;  %v8623_v57 = vld [vmem:[%s9777_s10 + $0x464] ss:$16 sps:$4 sm:$0xff]  }
  0xa8   : > { %4453 = vmatprep.subr.bf16.mxu0 %v8533_v58  ;;  %4883 = vmatprep.subr.bf16.mxu1 %v8536_v59  ;;  %v8626_v58 = vld [vmem:[%s9777_s10 + $0x46c] ss:$16 sps:$4 sm:$0xff]   ;;  %v8621_v59 = vld [vmem:[%s9777_s10 + $0x460] ss:$16 sps:$4 sm:$0xff]  }
  0xab   : > { %4454 = vmatpush1.bf16.msra.mxu0 %v8531_v60  ;;  %4884 = vmatpush1.bf16.msra.mxu1 %v8534_v61  ;;  %v8624_v60 = vld [vmem:[%s9777_s10 + $0x468] ss:$16 sps:$4 sm:$0xff]   ;;  %v8629_v61 = vld [vmem:[%s9777_s10 + $0x484] ss:$16 sps:$4 sm:$0xff]  }
  0xac   : > { %4455 = vmatprep.subr.bf16.mxu0 %v8539_v62  ;;  %4885 = vmatprep.subr.bf16.mxu1 %v8542_v63  ;;  %v8632_v62 = vld [vmem:[%s9777_s10 + $0x48c] ss:$16 sps:$4 sm:$0xff]   ;;  %v8627_v63 = vld [vmem:[%s9777_s10 + $0x480] ss:$16 sps:$4 sm:$0xff]  }
  0xaf   : > { %4456 = vmatpush1.bf16.msra.mxu0 %v8537_v0  ;;  %4886 = vmatpush1.bf16.msra.mxu1 %v8540_v1  ;;  %v8630_v0 = vld [vmem:[%s9777_s10 + $0x488] ss:$16 sps:$4 sm:$0xff]   ;;  %v8635_v1 = vld [vmem:[%s9777_s10 + $0x4a4] ss:$16 sps:$4 sm:$0xff]  }
  0xb0   : > { %4457 = vmatprep.subr.bf16.mxu0 %v8545_v2  ;;  %4887 = vmatprep.subr.bf16.mxu1 %v8548_v3  ;;  %v8638_v2 = vld [vmem:[%s9777_s10 + $0x4ac] ss:$16 sps:$4 sm:$0xff]   ;;  %v8633_v3 = vld [vmem:[%s9777_s10 + $0x4a0] ss:$16 sps:$4 sm:$0xff]  }
  0xb3   : > { %4458 = vmatpush1.bf16.msra.mxu0 %v8543_v5  ;;  %4888 = vmatpush1.bf16.msra.mxu1 %v8546_v6  ;;  %v8641_v5 = vld [vmem:[%s9777_s10 + $0x4c4] ss:$16 sps:$4 sm:$0xff]   ;;  %v8644_v6 = vld [vmem:[%s9777_s10 + $0x4cc] ss:$16 sps:$4 sm:$0xff]  }
  0xb4   : > { %4459 = vmatprep.subr.bf16.mxu0 %v8551_v7  ;;  %4889 = vmatprep.subr.bf16.mxu1 %v8554_v8  ;;  %v8639_v7 = vld [vmem:[%s9777_s10 + $0x4c0] ss:$16 sps:$4 sm:$0xff]   ;;  %v8642_v8 = vld [vmem:[%s9777_s10 + $0x4c8] ss:$16 sps:$4 sm:$0xff]  }
  0xb7   : > { %4460 = vmatpush1.bf16.msra.mxu0 %v8549_v9  ;;  %4890 = vmatpush1.bf16.msra.mxu1 %v8552_v10  ;;  %v8647_v9 = vld [vmem:[%s9777_s10 + $0x4e4] ss:$16 sps:$4 sm:$0xff]   ;;  %v8650_v10 = vld [vmem:[%s9777_s10 + $0x4ec] ss:$16 sps:$4 sm:$0xff]  }
  0xb8   : > { %4461 = vmatprep.subr.bf16.mxu0 %v8557_v11  ;;  %4891 = vmatprep.subr.bf16.mxu1 %v8560_v12  ;;  %v8645_v11 = vld [vmem:[%s9777_s10 + $0x4e0] ss:$16 sps:$4 sm:$0xff]   ;;  %v8648_v12 = vld [vmem:[%s9777_s10 + $0x4e8] ss:$16 sps:$4 sm:$0xff]  }
  0xbb   : > { %4462 = vmatpush1.bf16.msra.mxu0 %v8555_v13  ;;  %4892 = vmatpush1.bf16.msra.mxu1 %v8558_v14  ;;  %v8653_v13 = vld [vmem:[%s9777_s10 + $0x504] ss:$16 sps:$4 sm:$0xff]   ;;  %v8656_v14 = vld [vmem:[%s9777_s10 + $0x50c] ss:$16 sps:$4 sm:$0xff]  }
  0xbc   : > { %4463 = vmatprep.subr.bf16.mxu0 %v8563_v15  ;;  %4893 = vmatprep.subr.bf16.mxu1 %v8566_v16  ;;  %v8651_v15 = vld [vmem:[%s9777_s10 + $0x500] ss:$16 sps:$4 sm:$0xff]   ;;  %v8654_v16 = vld [vmem:[%s9777_s10 + $0x508] ss:$16 sps:$4 sm:$0xff]  }
  0xbf   : > { %4464 = vmatpush1.bf16.msra.mxu0 %v8561_v17  ;;  %4894 = vmatpush1.bf16.msra.mxu1 %v8564_v18  ;;  %v8659_v17 = vld [vmem:[%s9777_s10 + $0x524] ss:$16 sps:$4 sm:$0xff]   ;;  %v8662_v18 = vld [vmem:[%s9777_s10 + $0x52c] ss:$16 sps:$4 sm:$0xff]  }
  0xc0   : > { %4465 = vmatprep.subr.bf16.mxu0 %v8569_v19  ;;  %4895 = vmatprep.subr.bf16.mxu1 %v8572_v20  ;;  %v8657_v19 = vld [vmem:[%s9777_s10 + $0x520] ss:$16 sps:$4 sm:$0xff]   ;;  %v8660_v20 = vld [vmem:[%s9777_s10 + $0x528] ss:$16 sps:$4 sm:$0xff]  }
  0xc3   : > { %4466 = vmatpush1.bf16.msra.mxu0 %v8567_v21  ;;  %4896 = vmatpush1.bf16.msra.mxu1 %v8570_v22  ;;  %v8665_v21 = vld [vmem:[%s9777_s10 + $0x544] ss:$16 sps:$4 sm:$0xff]   ;;  %v8668_v22 = vld [vmem:[%s9777_s10 + $0x54c] ss:$16 sps:$4 sm:$0xff]  }
  0xc4   : > { %4467 = vmatprep.subr.bf16.mxu0 %v8575_v23  ;;  %4897 = vmatprep.subr.bf16.mxu1 %v8578_v24  ;;  %v8663_v23 = vld [vmem:[%s9777_s10 + $0x540] ss:$16 sps:$4 sm:$0xff]   ;;  %v8666_v24 = vld [vmem:[%s9777_s10 + $0x548] ss:$16 sps:$4 sm:$0xff]  }
  0xc7   : > { %4468 = vmatpush1.bf16.msra.mxu0 %v8573_v25  ;;  %4898 = vmatpush1.bf16.msra.mxu1 %v8576_v26  ;;  %v8671_v25 = vld [vmem:[%s9777_s10 + $0x564] ss:$16 sps:$4 sm:$0xff]   ;;  %v8674_v26 = vld [vmem:[%s9777_s10 + $0x56c] ss:$16 sps:$4 sm:$0xff]  }
  0xc8   : > { %4469 = vmatprep.subr.bf16.mxu0 %v8581_v27  ;;  %4899 = vmatprep.subr.bf16.mxu1 %v8584_v28  ;;  %v8669_v27 = vld [vmem:[%s9777_s10 + $0x560] ss:$16 sps:$4 sm:$0xff]   ;;  %v8672_v28 = vld [vmem:[%s9777_s10 + $0x568] ss:$16 sps:$4 sm:$0xff]  }
  0xcb   : > { %4470 = vmatpush1.bf16.msra.mxu0 %v8579_v29  ;;  %4900 = vmatpush1.bf16.msra.mxu1 %v8582_v30  ;;  %v8677_v29 = vld [vmem:[%s9777_s10 + $0x584] ss:$16 sps:$4 sm:$0xff]   ;;  %v8680_v30 = vld [vmem:[%s9777_s10 + $0x58c] ss:$16 sps:$4 sm:$0xff]  }
  0xcc   : > { %4471 = vmatprep.subr.bf16.mxu0 %v8587_v31  ;;  %4901 = vmatprep.subr.bf16.mxu1 %v8590_v32  ;;  %v8675_v31 = vld [vmem:[%s9777_s10 + $0x580] ss:$16 sps:$4 sm:$0xff]   ;;  %v8678_v32 = vld [vmem:[%s9777_s10 + $0x588] ss:$16 sps:$4 sm:$0xff]  }
  0xcf   : > { %4472 = vmatpush1.bf16.msra.mxu0 %v8585_v33  ;;  %4902 = vmatpush1.bf16.msra.mxu1 %v8588_v34  ;;  %v8683_v33 = vld [vmem:[%s9777_s10 + $0x5a4] ss:$16 sps:$4 sm:$0xff]   ;;  %v8686_v34 = vld [vmem:[%s9777_s10 + $0x5ac] ss:$16 sps:$4 sm:$0xff]  }
  0xd0   : > { %4473 = vmatprep.subr.bf16.mxu0 %v8593_v35  ;;  %4903 = vmatprep.subr.bf16.mxu1 %v8596_v36  ;;  %v8681_v35 = vld [vmem:[%s9777_s10 + $0x5a0] ss:$16 sps:$4 sm:$0xff]   ;;  %v8684_v36 = vld [vmem:[%s9777_s10 + $0x5a8] ss:$16 sps:$4 sm:$0xff]  }
  0xd3   : > { %4474 = vmatpush1.bf16.msra.mxu0 %v8591_v37  ;;  %4904 = vmatpush1.bf16.msra.mxu1 %v8594_v38  ;;  %v8689_v37 = vld [vmem:[%s9777_s10 + $0x5c4] ss:$16 sps:$4 sm:$0xff]   ;;  %v8692_v38 = vld [vmem:[%s9777_s10 + $0x5cc] ss:$16 sps:$4 sm:$0xff]  }
  0xd4   : > { %4475 = vmatprep.subr.bf16.mxu0 %v8599_v39  ;;  %4905 = vmatprep.subr.bf16.mxu1 %v8602_v40  ;;  %v8687_v39 = vld [vmem:[%s9777_s10 + $0x5c0] ss:$16 sps:$4 sm:$0xff]   ;;  %v8690_v40 = vld [vmem:[%s9777_s10 + $0x5c8] ss:$16 sps:$4 sm:$0xff]  }
  0xd7   : > { %4476 = vmatpush1.bf16.msra.mxu0 %v8597_v41  ;;  %4906 = vmatpush1.bf16.msra.mxu1 %v8600_v42  ;;  %v8695_v41 = vld [vmem:[%s9777_s10 + $0x5e4] ss:$16 sps:$4 sm:$0xff]   ;;  %v8698_v42 = vld [vmem:[%s9777_s10 + $0x5ec] ss:$16 sps:$4 sm:$0xff]  }
  0xd8   : > { %4488 = vmatprep.subr.bf16.mxu0 %v8605_v43  ;;  %4918 = vmatprep.subr.bf16.mxu1 %v8608_v44  ;;  %v8693_v43 = vld [vmem:[%s9777_s10 + $0x5e0] ss:$16 sps:$4 sm:$0xff]   ;;  %v8696_v44 = vld [vmem:[%s9777_s10 + $0x5e8] ss:$16 sps:$4 sm:$0xff]  }
  0xda   : > { %4478 = vmatmul.mubr.bf16.vlgmr.msra.gmra.mrb[0].mxu0 %v522_v47  ;;  %4908 = vmatmul.mubr.bf16.vlgmr.msra.gmra.mrb[0].mxu1 %v522_v47  ;;  %v8699_v47 = vld [vmem:[%s9777_s10 + $0x600] ss:$16 sps:$4 sm:$0xff]  }
  0xdb   : > { %4489 = vmatpush1.bf16.msra.mxu0 %v8603_v45  ;;  %4919 = vmatpush1.bf16.msra.mxu1 %v8606_v46  ;;  %v8701_v45 = vld [vmem:[%s9777_s10 + $0x604] ss:$16 sps:$4 sm:$0xff]   ;;  %v8704_v46 = vld [vmem:[%s9777_s10 + $0x60c] ss:$16 sps:$4 sm:$0xff]  }
  0xdc   : > { %4490 = vmatprep.subr.bf16.mxu0 %v8611_v48  ;;  %4920 = vmatprep.subr.bf16.mxu1 %v8614_v49  ;;  %v8702_v48 = vld [vmem:[%s9777_s10 + $0x608] ss:$16 sps:$4 sm:$0xff]   ;;  %v524_v49 = vld [vmem:[#allocation2 + $0x20] sm:$0xff] }
  0xdd   : > { %4520 = vmatprep.mubr.bf16.mxu0 %v525_v50  ;;  %4950 = vmatprep.mubr.bf16.mxu1 %v525_v50  ;;  %v8707_v50 = vld [vmem:[%s9777_s10 + $0x624] ss:$16 sps:$4 sm:$0xff]  }
  0xdf   : > { %4491 = vmatpush1.bf16.msra.mxu0 %v8609_v51  ;;  %4921 = vmatpush1.bf16.msra.mxu1 %v8612_v52  ;;  %v8710_v51 = vld [vmem:[%s9777_s10 + $0x62c] ss:$16 sps:$4 sm:$0xff]   ;;  %v8705_v52 = vld [vmem:[%s9777_s10 + $0x620] ss:$16 sps:$4 sm:$0xff]  }
  0xe0   : > { %4492 = vmatprep.subr.bf16.mxu0 %v8617_v53  ;;  %4922 = vmatprep.subr.bf16.mxu1 %v8620_v54  ;;  %v8708_v53 = vld [vmem:[%s9777_s10 + $0x628] ss:$16 sps:$4 sm:$0xff]  }
  0xe1   : > { %v527_v54 = vld [vmem:[#allocation2 + $0x38] sm:$0xff] }
  0xe3   : > { %4493 = vmatpush1.bf16.msra.mxu0 %v8615_v55  ;;  %4923 = vmatpush1.bf16.msra.mxu1 %v8618_v56  ;;  %v8713_v55 = vld [vmem:[%s9777_s10 + $0x644] ss:$16 sps:$4 sm:$0xff]   ;;  %v8716_v56 = vld [vmem:[%s9777_s10 + $0x64c] ss:$16 sps:$4 sm:$0xff]  }
  0xe4   : > { %4494 = vmatprep.subr.bf16.mxu0 %v8623_v57  ;;  %4924 = vmatprep.subr.bf16.mxu1 %v8626_v58  ;;  %v8711_v57 = vld [vmem:[%s9777_s10 + $0x640] ss:$16 sps:$4 sm:$0xff]   ;;  %v8714_v58 = vld [vmem:[%s9777_s10 + $0x648] ss:$16 sps:$4 sm:$0xff]  }
  0xe7   : > { %4495 = vmatpush1.bf16.msra.mxu0 %v8621_v59  ;;  %4925 = vmatpush1.bf16.msra.mxu1 %v8624_v60  ;;  %v8719_v59 = vld [vmem:[%s9777_s10 + $0x664] ss:$16 sps:$4 sm:$0xff]   ;;  %v8722_v60 = vld [vmem:[%s9777_s10 + $0x66c] ss:$16 sps:$4 sm:$0xff]  }
  0xe8   : > { %4496 = vmatprep.subr.bf16.mxu0 %v8629_v61  ;;  %4926 = vmatprep.subr.bf16.mxu1 %v8632_v62  ;;  %v8717_v61 = vld [vmem:[%s9777_s10 + $0x660] ss:$16 sps:$4 sm:$0xff]   ;;  %v8720_v62 = vld [vmem:[%s9777_s10 + $0x668] ss:$16 sps:$4 sm:$0xff]  }
  0xeb   : > { %4497 = vmatpush1.bf16.msra.mxu0 %v8627_v63  ;;  %4927 = vmatpush1.bf16.msra.mxu1 %v8630_v0  ;;  %v8725_v63 = vld [vmem:[%s9777_s10 + $0x684] ss:$16 sps:$4 sm:$0xff]   ;;  %v8728_v0 = vld [vmem:[%s9777_s10 + $0x68c] ss:$16 sps:$4 sm:$0xff]  }
  0xec   : > { %4498 = vmatprep.subr.bf16.mxu0 %v8635_v1  ;;  %4928 = vmatprep.subr.bf16.mxu1 %v8638_v2  ;;  %v8723_v1 = vld [vmem:[%s9777_s10 + $0x680] ss:$16 sps:$4 sm:$0xff]   ;;  %v8726_v2 = vld [vmem:[%s9777_s10 + $0x688] ss:$16 sps:$4 sm:$0xff]  }
  0xef   : > { %4499 = vmatpush1.bf16.msra.mxu0 %v8633_v3  ;;  %4929 = vmatpush1.bf16.msra.mxu1 %v8636_v4  ;;  %v8731_v3 = vld [vmem:[%s9777_s10 + $0x6a4] ss:$16 sps:$4 sm:$0xff]   ;;  %v8734_v4 = vld [vmem:[%s9777_s10 + $0x6ac] ss:$16 sps:$4 sm:$0xff]  }
  0xf0   : > { %4500 = vmatprep.subr.bf16.mxu0 %v8641_v5  ;;  %4930 = vmatprep.subr.bf16.mxu1 %v8644_v6  ;;  %v8729_v5 = vld [vmem:[%s9777_s10 + $0x6a0] ss:$16 sps:$4 sm:$0xff]   ;;  %v8732_v6 = vld [vmem:[%s9777_s10 + $0x6a8] ss:$16 sps:$4 sm:$0xff]  }
  0xf3   : > { %4501 = vmatpush1.bf16.msra.mxu0 %v8639_v7  ;;  %4931 = vmatpush1.bf16.msra.mxu1 %v8642_v8  ;;  %v8737_v7 = vld [vmem:[%s9777_s10 + $0x6c4] ss:$16 sps:$4 sm:$0xff]   ;;  %v8740_v8 = vld [vmem:[%s9777_s10 + $0x6cc] ss:$16 sps:$4 sm:$0xff]  }
  0xf4   : > { %4502 = vmatprep.subr.bf16.mxu0 %v8647_v9  ;;  %4932 = vmatprep.subr.bf16.mxu1 %v8650_v10  ;;  %v8735_v9 = vld [vmem:[%s9777_s10 + $0x6c0] ss:$16 sps:$4 sm:$0xff]   ;;  %v8738_v10 = vld [vmem:[%s9777_s10 + $0x6c8] ss:$16 sps:$4 sm:$0xff]  }
  0xf7   : > { %4503 = vmatpush1.bf16.msra.mxu0 %v8645_v11  ;;  %4933 = vmatpush1.bf16.msra.mxu1 %v8648_v12  ;;  %v8743_v11 = vld [vmem:[%s9777_s10 + $0x6e4] ss:$16 sps:$4 sm:$0xff]   ;;  %v8746_v12 = vld [vmem:[%s9777_s10 + $0x6ec] ss:$16 sps:$4 sm:$0xff]  }
  0xf8   : > { %4504 = vmatprep.subr.bf16.mxu0 %v8653_v13  ;;  %4934 = vmatprep.subr.bf16.mxu1 %v8656_v14  ;;  %v8741_v13 = vld [vmem:[%s9777_s10 + $0x6e0] ss:$16 sps:$4 sm:$0xff]   ;;  %v8744_v14 = vld [vmem:[%s9777_s10 + $0x6e8] ss:$16 sps:$4 sm:$0xff]  }
  0xfb   : > { %4505 = vmatpush1.bf16.msra.mxu0 %v8651_v15  ;;  %4935 = vmatpush1.bf16.msra.mxu1 %v8654_v16  ;;  %v8749_v15 = vld [vmem:[%s9777_s10 + $0x704] ss:$16 sps:$4 sm:$0xff]   ;;  %v8752_v16 = vld [vmem:[%s9777_s10 + $0x70c] ss:$16 sps:$4 sm:$0xff]  }
  0xfc   : > { %4506 = vmatprep.subr.bf16.mxu0 %v8659_v17  ;;  %4936 = vmatprep.subr.bf16.mxu1 %v8662_v18  ;;  %v8747_v17 = vld [vmem:[%s9777_s10 + $0x700] ss:$16 sps:$4 sm:$0xff]   ;;  %v8750_v18 = vld [vmem:[%s9777_s10 + $0x708] ss:$16 sps:$4 sm:$0xff]  }
  0xff   : > { %4507 = vmatpush1.bf16.msra.mxu0 %v8657_v19  ;;  %4937 = vmatpush1.bf16.msra.mxu1 %v8660_v20  ;;  %v8755_v19 = vld [vmem:[%s9777_s10 + $0x724] ss:$16 sps:$4 sm:$0xff]   ;;  %v8758_v20 = vld [vmem:[%s9777_s10 + $0x72c] ss:$16 sps:$4 sm:$0xff]  }
 0x100   : > { %4508 = vmatprep.subr.bf16.mxu0 %v8665_v21  ;;  %4938 = vmatprep.subr.bf16.mxu1 %v8668_v22  ;;  %v8753_v21 = vld [vmem:[%s9777_s10 + $0x720] ss:$16 sps:$4 sm:$0xff]   ;;  %v8756_v22 = vld [vmem:[%s9777_s10 + $0x728] ss:$16 sps:$4 sm:$0xff]  }
 0x103   : > { %4509 = vmatpush1.bf16.msra.mxu0 %v8663_v23  ;;  %4939 = vmatpush1.bf16.msra.mxu1 %v8666_v24  ;;  %v8761_v23 = vld [vmem:[%s9777_s10 + $0x744] ss:$16 sps:$4 sm:$0xff]   ;;  %v8764_v24 = vld [vmem:[%s9777_s10 + $0x74c] ss:$16 sps:$4 sm:$0xff]  }
 0x104   : > { %4510 = vmatprep.subr.bf16.mxu0 %v8671_v25  ;;  %4940 = vmatprep.subr.bf16.mxu1 %v8674_v26  ;;  %v8759_v25 = vld [vmem:[%s9777_s10 + $0x740] ss:$16 sps:$4 sm:$0xff]   ;;  %v8762_v26 = vld [vmem:[%s9777_s10 + $0x748] ss:$16 sps:$4 sm:$0xff]  }
 0x107   : > { %4511 = vmatpush1.bf16.msra.mxu0 %v8669_v27  ;;  %4941 = vmatpush1.bf16.msra.mxu1 %v8672_v28  ;;  %v8767_v27 = vld [vmem:[%s9777_s10 + $0x764] ss:$16 sps:$4 sm:$0xff]   ;;  %v8770_v28 = vld [vmem:[%s9777_s10 + $0x76c] ss:$16 sps:$4 sm:$0xff]  }
 0x108   : > { %4512 = vmatprep.subr.bf16.mxu0 %v8677_v29  ;;  %4942 = vmatprep.subr.bf16.mxu1 %v8680_v30  ;;  %v8765_v29 = vld [vmem:[%s9777_s10 + $0x760] ss:$16 sps:$4 sm:$0xff]   ;;  %v8768_v30 = vld [vmem:[%s9777_s10 + $0x768] ss:$16 sps:$4 sm:$0xff]  }
 0x10b   : > { %4513 = vmatpush1.bf16.msra.mxu0 %v8675_v31  ;;  %4943 = vmatpush1.bf16.msra.mxu1 %v8678_v32  ;;  %v8773_v31 = vld [vmem:[%s9777_s10 + $0x784] ss:$16 sps:$4 sm:$0xff]   ;;  %v8776_v32 = vld [vmem:[%s9777_s10 + $0x78c] ss:$16 sps:$4 sm:$0xff]  }
 0x10c   : > { %4514 = vmatprep.subr.bf16.mxu0 %v8683_v33  ;;  %4944 = vmatprep.subr.bf16.mxu1 %v8686_v34  ;;  %v8771_v33 = vld [vmem:[%s9777_s10 + $0x780] ss:$16 sps:$4 sm:$0xff]   ;;  %v8774_v34 = vld [vmem:[%s9777_s10 + $0x788] ss:$16 sps:$4 sm:$0xff]  }
 0x10f   : > { %4515 = vmatpush1.bf16.msra.mxu0 %v8681_v35  ;;  %4945 = vmatpush1.bf16.msra.mxu1 %v8684_v36  ;;  %v8779_v35 = vld [vmem:[%s9777_s10 + $0x7a4] ss:$16 sps:$4 sm:$0xff]   ;;  %v8782_v36 = vld [vmem:[%s9777_s10 + $0x7ac] ss:$16 sps:$4 sm:$0xff]  }
 0x110   : > { %4516 = vmatprep.subr.bf16.mxu0 %v8689_v37  ;;  %4946 = vmatprep.subr.bf16.mxu1 %v8692_v38  ;;  %v8777_v37 = vld [vmem:[%s9777_s10 + $0x7a0] ss:$16 sps:$4 sm:$0xff]   ;;  %v8780_v38 = vld [vmem:[%s9777_s10 + $0x7a8] ss:$16 sps:$4 sm:$0xff]  }
 0x113   : > { %4517 = vmatpush1.bf16.msra.mxu0 %v8687_v39  ;;  %4947 = vmatpush1.bf16.msra.mxu1 %v8690_v40  ;;  %v8785_v39 = vld [vmem:[%s9777_s10 + $0x7c4] ss:$16 sps:$4 sm:$0xff]   ;;  %v8788_v40 = vld [vmem:[%s9777_s10 + $0x7cc] ss:$16 sps:$4 sm:$0xff]  }
 0x114   : > { %4518 = vmatprep.subr.bf16.mxu0 %v8695_v41  ;;  %4948 = vmatprep.subr.bf16.mxu1 %v8698_v42  ;;  %v8783_v41 = vld [vmem:[%s9777_s10 + $0x7c0] ss:$16 sps:$4 sm:$0xff]   ;;  %v8786_v42 = vld [vmem:[%s9777_s10 + $0x7c8] ss:$16 sps:$4 sm:$0xff]  }
 0x117   : > { %4519 = vmatpush1.bf16.msra.mxu0 %v8693_v43  ;;  %4949 = vmatpush1.bf16.msra.mxu1 %v8696_v44  ;;  %v8791_v43 = vld [vmem:[%s9777_s10 + $0x7e4] ss:$16 sps:$4 sm:$0xff]   ;;  %v8794_v44 = vld [vmem:[%s9777_s10 + $0x7ec] ss:$16 sps:$4 sm:$0xff]  }
 0x118   : > { %4531 = vmatprep.subr.bf16.mxu0 %v8701_v45  ;;  %4961 = vmatprep.subr.bf16.mxu1 %v8704_v46  ;;  %v8789_v45 = vld [vmem:[%s9777_s10 + $0x7e0] ss:$16 sps:$4 sm:$0xff]   ;;  %v8792_v46 = vld [vmem:[%s9777_s10 + $0x7e8] ss:$16 sps:$4 sm:$0xff]  }
 0x11a   : > { %4521 = vmatmul.mubr.bf16.vlgmr.msra.gmra.mrb[0].mxu0 %v524_v49  ;;  %4951 = vmatmul.mubr.bf16.vlgmr.msra.gmra.mrb[0].mxu1 %v524_v49  ;;  %v8795_v49 = vld [vmem:[%s9777_s10 + $0x800] ss:$16 sps:$4 sm:$0xff]  }
 0x11b   : > { %4532 = vmatpush1.bf16.msra.mxu0 %v8699_v47  ;;  %4962 = vmatpush1.bf16.msra.mxu1 %v8702_v48  ;;  %v8797_v47 = vld [vmem:[%s9777_s10 + $0x804] ss:$16 sps:$4 sm:$0xff]   ;;  %v8800_v48 = vld [vmem:[%s9777_s10 + $0x80c] ss:$16 sps:$4 sm:$0xff]  }
 0x11c   : > { %4533 = vmatprep.subr.bf16.mxu0 %v8707_v50  ;;  %4963 = vmatprep.subr.bf16.mxu1 %v8710_v51  ;;  %v8798_v50 = vld [vmem:[%s9777_s10 + $0x808] ss:$16 sps:$4 sm:$0xff]   ;;  %v526_v51 = vld [vmem:[#allocation2 + $0x30] sm:$0xff] }
 0x11d   : > { %4563 = vmatprep.mubr.bf16.mxu0 %v527_v54  ;;  %4993 = vmatprep.mubr.bf16.mxu1 %v527_v54  ;;  %v8801_v54 = vld [vmem:[%s9777_s10 + $0x820] ss:$16 sps:$4 sm:$0xff]  }
 0x11f   : > { %4534 = vmatpush1.bf16.msra.mxu0 %v8705_v52  ;;  %4964 = vmatpush1.bf16.msra.mxu1 %v8708_v53  ;;  %v8803_v52 = vld [vmem:[%s9777_s10 + $0x824] ss:$16 sps:$4 sm:$0xff]   ;;  %v8806_v53 = vld [vmem:[%s9777_s10 + $0x82c] ss:$16 sps:$4 sm:$0xff]  }
 0x120   : > { %4535 = vmatprep.subr.bf16.mxu0 %v8713_v55  ;;  %4965 = vmatprep.subr.bf16.mxu1 %v8716_v56  ;;  %v529_v55 = vld [vmem:[#allocation2 + $0x48] sm:$0xff] }
 0x121   : > { %v8804_v56 = vld [vmem:[%s9777_s10 + $0x828] ss:$16 sps:$4 sm:$0xff]  }
 0x123   : > { %4536 = vmatpush1.bf16.msra.mxu0 %v8711_v57  ;;  %4966 = vmatpush1.bf16.msra.mxu1 %v8714_v58  ;;  %v8809_v57 = vld [vmem:[%s9777_s10 + $0x844] ss:$16 sps:$4 sm:$0xff]   ;;  %v8812_v58 = vld [vmem:[%s9777_s10 + $0x84c] ss:$16 sps:$4 sm:$0xff]  }
 0x124   : > { %4537 = vmatprep.subr.bf16.mxu0 %v8719_v59  ;;  %4967 = vmatprep.subr.bf16.mxu1 %v8722_v60  ;;  %v8807_v59 = vld [vmem:[%s9777_s10 + $0x840] ss:$16 sps:$4 sm:$0xff]   ;;  %v8810_v60 = vld [vmem:[%s9777_s10 + $0x848] ss:$16 sps:$4 sm:$0xff]  }
 0x127   : > { %4538 = vmatpush1.bf16.msra.mxu0 %v8717_v61  ;;  %4968 = vmatpush1.bf16.msra.mxu1 %v8720_v62  ;;  %v8815_v61 = vld [vmem:[%s9777_s10 + $0x864] ss:$16 sps:$4 sm:$0xff]   ;;  %v8818_v62 = vld [vmem:[%s9777_s10 + $0x86c] ss:$16 sps:$4 sm:$0xff]  }
 0x128   : > { %4539 = vmatprep.subr.bf16.mxu0 %v8725_v63  ;;  %4969 = vmatprep.subr.bf16.mxu1 %v8728_v0  ;;  %v8813_v63 = vld [vmem:[%s9777_s10 + $0x860] ss:$16 sps:$4 sm:$0xff]   ;;  %v8816_v0 = vld [vmem:[%s9777_s10 + $0x868] ss:$16 sps:$4 sm:$0xff]  }
 0x12b   : > { %4540 = vmatpush1.bf16.msra.mxu0 %v8723_v1  ;;  %4970 = vmatpush1.bf16.msra.mxu1 %v8726_v2  ;;  %v8821_v1 = vld [vmem:[%s9777_s10 + $0x884] ss:$16 sps:$4 sm:$0xff]   ;;  %v8824_v2 = vld [vmem:[%s9777_s10 + $0x88c] ss:$16 sps:$4 sm:$0xff]  }
 0x12c   : > { %4541 = vmatprep.subr.bf16.mxu0 %v8731_v3  ;;  %4971 = vmatprep.subr.bf16.mxu1 %v8734_v4  ;;  %v8819_v3 = vld [vmem:[%s9777_s10 + $0x880] ss:$16 sps:$4 sm:$0xff]   ;;  %v8822_v4 = vld [vmem:[%s9777_s10 + $0x888] ss:$16 sps:$4 sm:$0xff]  }
 0x12f   : > { %4542 = vmatpush1.bf16.msra.mxu0 %v8729_v5  ;;  %4972 = vmatpush1.bf16.msra.mxu1 %v8732_v6  ;;  %v8827_v5 = vld [vmem:[%s9777_s10 + $0x8a4] ss:$16 sps:$4 sm:$0xff]   ;;  %v8830_v6 = vld [vmem:[%s9777_s10 + $0x8ac] ss:$16 sps:$4 sm:$0xff]  }
 0x130   : > { %4543 = vmatprep.subr.bf16.mxu0 %v8737_v7  ;;  %4973 = vmatprep.subr.bf16.mxu1 %v8740_v8  ;;  %v8825_v7 = vld [vmem:[%s9777_s10 + $0x8a0] ss:$16 sps:$4 sm:$0xff]   ;;  %v8828_v8 = vld [vmem:[%s9777_s10 + $0x8a8] ss:$16 sps:$4 sm:$0xff]  }
 0x133   : > { %4544 = vmatpush1.bf16.msra.mxu0 %v8735_v9  ;;  %4974 = vmatpush1.bf16.msra.mxu1 %v8738_v10  ;;  %v8833_v9 = vld [vmem:[%s9777_s10 + $0x8c4] ss:$16 sps:$4 sm:$0xff]   ;;  %v8836_v10 = vld [vmem:[%s9777_s10 + $0x8cc] ss:$16 sps:$4 sm:$0xff]  }
 0x134   : > { %4545 = vmatprep.subr.bf16.mxu0 %v8743_v11  ;;  %4975 = vmatprep.subr.bf16.mxu1 %v8746_v12  ;;  %v8831_v11 = vld [vmem:[%s9777_s10 + $0x8c0] ss:$16 sps:$4 sm:$0xff]   ;;  %v8834_v12 = vld [vmem:[%s9777_s10 + $0x8c8] ss:$16 sps:$4 sm:$0xff]  }
 0x137   : > { %4546 = vmatpush1.bf16.msra.mxu0 %v8741_v13  ;;  %4976 = vmatpush1.bf16.msra.mxu1 %v8744_v14  ;;  %v8839_v13 = vld [vmem:[%s9777_s10 + $0x8e4] ss:$16 sps:$4 sm:$0xff]   ;;  %v8842_v14 = vld [vmem:[%s9777_s10 + $0x8ec] ss:$16 sps:$4 sm:$0xff]  }
 0x138   : > { %4547 = vmatprep.subr.bf16.mxu0 %v8749_v15  ;;  %4977 = vmatprep.subr.bf16.mxu1 %v8752_v16  ;;  %v8837_v15 = vld [vmem:[%s9777_s10 + $0x8e0] ss:$16 sps:$4 sm:$0xff]   ;;  %v8840_v16 = vld [vmem:[%s9777_s10 + $0x8e8] ss:$16 sps:$4 sm:$0xff]  }
 0x13b   : > { %4548 = vmatpush1.bf16.msra.mxu0 %v8747_v17  ;;  %4978 = vmatpush1.bf16.msra.mxu1 %v8750_v18  ;;  %v8845_v17 = vld [vmem:[%s9777_s10 + $0x904] ss:$16 sps:$4 sm:$0xff]   ;;  %v8848_v18 = vld [vmem:[%s9777_s10 + $0x90c] ss:$16 sps:$4 sm:$0xff]  }
 0x13c   : > { %4549 = vmatprep.subr.bf16.mxu0 %v8755_v19  ;;  %4979 = vmatprep.subr.bf16.mxu1 %v8758_v20  ;;  %v8843_v19 = vld [vmem:[%s9777_s10 + $0x900] ss:$16 sps:$4 sm:$0xff]   ;;  %v8846_v20 = vld [vmem:[%s9777_s10 + $0x908] ss:$16 sps:$4 sm:$0xff]  }
 0x13f   : > { %4550 = vmatpush1.bf16.msra.mxu0 %v8753_v21  ;;  %4980 = vmatpush1.bf16.msra.mxu1 %v8756_v22  ;;  %v8851_v21 = vld [vmem:[%s9777_s10 + $0x924] ss:$16 sps:$4 sm:$0xff]   ;;  %v8854_v22 = vld [vmem:[%s9777_s10 + $0x92c] ss:$16 sps:$4 sm:$0xff]  }
 0x140   : > { %4551 = vmatprep.subr.bf16.mxu0 %v8761_v23  ;;  %4981 = vmatprep.subr.bf16.mxu1 %v8764_v24  ;;  %v8849_v23 = vld [vmem:[%s9777_s10 + $0x920] ss:$16 sps:$4 sm:$0xff]   ;;  %v8852_v24 = vld [vmem:[%s9777_s10 + $0x928] ss:$16 sps:$4 sm:$0xff]  }
 0x143   : > { %4552 = vmatpush1.bf16.msra.mxu0 %v8759_v25  ;;  %4982 = vmatpush1.bf16.msra.mxu1 %v8762_v26  ;;  %v8857_v25 = vld [vmem:[%s9777_s10 + $0x944] ss:$16 sps:$4 sm:$0xff]   ;;  %v8860_v26 = vld [vmem:[%s9777_s10 + $0x94c] ss:$16 sps:$4 sm:$0xff]  }
 0x144   : > { %4553 = vmatprep.subr.bf16.mxu0 %v8767_v27  ;;  %4983 = vmatprep.subr.bf16.mxu1 %v8770_v28  ;;  %v8855_v27 = vld [vmem:[%s9777_s10 + $0x940] ss:$16 sps:$4 sm:$0xff]   ;;  %v8858_v28 = vld [vmem:[%s9777_s10 + $0x948] ss:$16 sps:$4 sm:$0xff]  }
 0x147   : > { %4554 = vmatpush1.bf16.msra.mxu0 %v8765_v29  ;;  %4984 = vmatpush1.bf16.msra.mxu1 %v8768_v30  ;;  %v8863_v29 = vld [vmem:[%s9777_s10 + $0x964] ss:$16 sps:$4 sm:$0xff]   ;;  %v8866_v30 = vld [vmem:[%s9777_s10 + $0x96c] ss:$16 sps:$4 sm:$0xff]  }
 0x148   : > { %4555 = vmatprep.subr.bf16.mxu0 %v8773_v31  ;;  %4985 = vmatprep.subr.bf16.mxu1 %v8776_v32  ;;  %v8861_v31 = vld [vmem:[%s9777_s10 + $0x960] ss:$16 sps:$4 sm:$0xff]   ;;  %v8864_v32 = vld [vmem:[%s9777_s10 + $0x968] ss:$16 sps:$4 sm:$0xff]  }
 0x14b   : > { %4556 = vmatpush1.bf16.msra.mxu0 %v8771_v33  ;;  %4986 = vmatpush1.bf16.msra.mxu1 %v8774_v34  ;;  %v8869_v33 = vld [vmem:[%s9777_s10 + $0x984] ss:$16 sps:$4 sm:$0xff]   ;;  %v8872_v34 = vld [vmem:[%s9777_s10 + $0x98c] ss:$16 sps:$4 sm:$0xff]  }
 0x14c   : > { %4557 = vmatprep.subr.bf16.mxu0 %v8779_v35  ;;  %4987 = vmatprep.subr.bf16.mxu1 %v8782_v36  ;;  %v8867_v35 = vld [vmem:[%s9777_s10 + $0x980] ss:$16 sps:$4 sm:$0xff]   ;;  %v8870_v36 = vld [vmem:[%s9777_s10 + $0x988] ss:$16 sps:$4 sm:$0xff]  }
 0x14f   : > { %4558 = vmatpush1.bf16.msra.mxu0 %v8777_v37  ;;  %4988 = vmatpush1.bf16.msra.mxu1 %v8780_v38  ;;  %v8875_v37 = vld [vmem:[%s9777_s10 + $0x9a4] ss:$16 sps:$4 sm:$0xff]   ;;  %v8878_v38 = vld [vmem:[%s9777_s10 + $0x9ac] ss:$16 sps:$4 sm:$0xff]  }
 0x150   : > { %4559 = vmatprep.subr.bf16.mxu0 %v8785_v39  ;;  %4989 = vmatprep.subr.bf16.mxu1 %v8788_v40  ;;  %v8873_v39 = vld [vmem:[%s9777_s10 + $0x9a0] ss:$16 sps:$4 sm:$0xff]   ;;  %v8876_v40 = vld [vmem:[%s9777_s10 + $0x9a8] ss:$16 sps:$4 sm:$0xff]  }
 0x153   : > { %4560 = vmatpush1.bf16.msra.mxu0 %v8783_v41  ;;  %4990 = vmatpush1.bf16.msra.mxu1 %v8786_v42  ;;  %v8881_v41 = vld [vmem:[%s9777_s10 + $0x9c4] ss:$16 sps:$4 sm:$0xff]   ;;  %v8884_v42 = vld [vmem:[%s9777_s10 + $0x9cc] ss:$16 sps:$4 sm:$0xff]  }
 0x154   : > { %4561 = vmatprep.subr.bf16.mxu0 %v8791_v43  ;;  %4991 = vmatprep.subr.bf16.mxu1 %v8794_v44  ;;  %v8879_v43 = vld [vmem:[%s9777_s10 + $0x9c0] ss:$16 sps:$4 sm:$0xff]   ;;  %v8882_v44 = vld [vmem:[%s9777_s10 + $0x9c8] ss:$16 sps:$4 sm:$0xff]  }
 0x157   : > { %4562 = vmatpush1.bf16.msra.mxu0 %v8789_v45  ;;  %4992 = vmatpush1.bf16.msra.mxu1 %v8792_v46  ;;  %v8887_v45 = vld [vmem:[%s9777_s10 + $0x9e4] ss:$16 sps:$4 sm:$0xff]   ;;  %v8890_v46 = vld [vmem:[%s9777_s10 + $0x9ec] ss:$16 sps:$4 sm:$0xff]  }
 0x158   : > { %4574 = vmatprep.subr.bf16.mxu0 %v8797_v47  ;;  %5004 = vmatprep.subr.bf16.mxu1 %v8800_v48  ;;  %v8885_v47 = vld [vmem:[%s9777_s10 + $0x9e0] ss:$16 sps:$4 sm:$0xff]   ;;  %v8888_v48 = vld [vmem:[%s9777_s10 + $0x9e8] ss:$16 sps:$4 sm:$0xff]  }
 0x15a   : > { %4564 = vmatmul.mubr.bf16.vlgmr.msra.gmra.mrb[0].mxu0 %v526_v51  ;;  %4994 = vmatmul.mubr.bf16.vlgmr.msra.gmra.mrb[0].mxu1 %v526_v51  ;;  %v8891_v51 = vld [vmem:[%s9777_s10 + $0xa00] ss:$16 sps:$4 sm:$0xff]  }
 0x15b   : > { %4575 = vmatpush1.bf16.msra.mxu0 %v8795_v49  ;;  %5005 = vmatpush1.bf16.msra.mxu1 %v8798_v50  ;;  %v8893_v49 = vld [vmem:[%s9777_s10 + $0xa04] ss:$16 sps:$4 sm:$0xff]   ;;  %v8896_v50 = vld [vmem:[%s9777_s10 + $0xa0c] ss:$16 sps:$4 sm:$0xff]  }
 0x15c   : > { %4576 = vmatprep.subr.bf16.mxu0 %v8803_v52  ;;  %5006 = vmatprep.subr.bf16.mxu1 %v8806_v53  ;;  %v8894_v52 = vld [vmem:[%s9777_s10 + $0xa08] ss:$16 sps:$4 sm:$0xff]   ;;  %v528_v53 = vld [vmem:[#allocation2 + $0x40] sm:$0xff] }
 0x15d   : > { %4606 = vmatprep.mubr.bf16.mxu0 %v529_v55  ;;  %5036 = vmatprep.mubr.bf16.mxu1 %v529_v55  ;;  %v8902_v55 = vld [vmem:[%s9777_s10 + $0xa2c] ss:$16 sps:$4 sm:$0xff]  }
 0x15f   : > { %4577 = vmatpush1.bf16.msra.mxu0 %v8801_v54  ;;  %5007 = vmatpush1.bf16.msra.mxu1 %v8804_v56  ;;  %v8899_v54 = vld [vmem:[%s9777_s10 + $0xa24] ss:$16 sps:$4 sm:$0xff]   ;;  %v531_v56 = vld [vmem:[#allocation2 + $0x58] sm:$0xff] }
 0x160   : > { %4578 = vmatprep.subr.bf16.mxu0 %v8809_v57  ;;  %5008 = vmatprep.subr.bf16.mxu1 %v8812_v58  ;;  %v8897_v57 = vld [vmem:[%s9777_s10 + $0xa20] ss:$16 sps:$4 sm:$0xff]   ;;  %v8900_v58 = vld [vmem:[%s9777_s10 + $0xa28] ss:$16 sps:$4 sm:$0xff]  }
 0x163   : > { %4579 = vmatpush1.bf16.msra.mxu0 %v8807_v59  ;;  %5009 = vmatpush1.bf16.msra.mxu1 %v8810_v60  ;;  %v8905_v59 = vld [vmem:[%s9777_s10 + $0xa44] ss:$16 sps:$4 sm:$0xff]   ;;  %v8908_v60 = vld [vmem:[%s9777_s10 + $0xa4c] ss:$16 sps:$4 sm:$0xff]  }
 0x164   : > { %4580 = vmatprep.subr.bf16.mxu0 %v8815_v61  ;;  %5010 = vmatprep.subr.bf16.mxu1 %v8818_v62  ;;  %v8903_v61 = vld [vmem:[%s9777_s10 + $0xa40] ss:$16 sps:$4 sm:$0xff]   ;;  %v8906_v62 = vld [vmem:[%s9777_s10 + $0xa48] ss:$16 sps:$4 sm:$0xff]  }
 0x167   : > { %4581 = vmatpush1.bf16.msra.mxu0 %v8813_v63  ;;  %5011 = vmatpush1.bf16.msra.mxu1 %v8816_v0  ;;  %v8911_v63 = vld [vmem:[%s9777_s10 + $0xa64] ss:$16 sps:$4 sm:$0xff]   ;;  %v8914_v0 = vld [vmem:[%s9777_s10 + $0xa6c] ss:$16 sps:$4 sm:$0xff]  }
 0x168   : > { %4582 = vmatprep.subr.bf16.mxu0 %v8821_v1  ;;  %5012 = vmatprep.subr.bf16.mxu1 %v8824_v2  ;;  %v8909_v1 = vld [vmem:[%s9777_s10 + $0xa60] ss:$16 sps:$4 sm:$0xff]   ;;  %v8912_v2 = vld [vmem:[%s9777_s10 + $0xa68] ss:$16 sps:$4 sm:$0xff]  }
 0x16b   : > { %4583 = vmatpush1.bf16.msra.mxu0 %v8819_v3  ;;  %5013 = vmatpush1.bf16.msra.mxu1 %v8822_v4  ;;  %v8917_v3 = vld [vmem:[%s9777_s10 + $0xa84] ss:$16 sps:$4 sm:$0xff]   ;;  %v8920_v4 = vld [vmem:[%s9777_s10 + $0xa8c] ss:$16 sps:$4 sm:$0xff]  }
 0x16c   : > { %4584 = vmatprep.subr.bf16.mxu0 %v8827_v5  ;;  %5014 = vmatprep.subr.bf16.mxu1 %v8830_v6  ;;  %v8915_v5 = vld [vmem:[%s9777_s10 + $0xa80] ss:$16 sps:$4 sm:$0xff]   ;;  %v8918_v6 = vld [vmem:[%s9777_s10 + $0xa88] ss:$16 sps:$4 sm:$0xff]  }
 0x16f   : > { %4585 = vmatpush1.bf16.msra.mxu0 %v8825_v7  ;;  %5015 = vmatpush1.bf16.msra.mxu1 %v8828_v8  ;;  %v8923_v7 = vld [vmem:[%s9777_s10 + $0xaa4] ss:$16 sps:$4 sm:$0xff]   ;;  %v8926_v8 = vld [vmem:[%s9777_s10 + $0xaac] ss:$16 sps:$4 sm:$0xff]  }
 0x170   : > { %4586 = vmatprep.subr.bf16.mxu0 %v8833_v9  ;;  %5016 = vmatprep.subr.bf16.mxu1 %v8836_v10  ;;  %v8921_v9 = vld [vmem:[%s9777_s10 + $0xaa0] ss:$16 sps:$4 sm:$0xff]   ;;  %v8924_v10 = vld [vmem:[%s9777_s10 + $0xaa8] ss:$16 sps:$4 sm:$0xff]  }
 0x173   : > { %4587 = vmatpush1.bf16.msra.mxu0 %v8831_v11  ;;  %5017 = vmatpush1.bf16.msra.mxu1 %v8834_v12  ;;  %v8929_v11 = vld [vmem:[%s9777_s10 + $0xac4] ss:$16 sps:$4 sm:$0xff]   ;;  %v8932_v12 = vld [vmem:[%s9777_s10 + $0xacc] ss:$16 sps:$4 sm:$0xff]  }
 0x174   : > { %4588 = vmatprep.subr.bf16.mxu0 %v8839_v13  ;;  %5018 = vmatprep.subr.bf16.mxu1 %v8842_v14  ;;  %v8927_v13 = vld [vmem:[%s9777_s10 + $0xac0] ss:$16 sps:$4 sm:$0xff]   ;;  %v8930_v14 = vld [vmem:[%s9777_s10 + $0xac8] ss:$16 sps:$4 sm:$0xff]  }
 0x177   : > { %4589 = vmatpush1.bf16.msra.mxu0 %v8837_v15  ;;  %5019 = vmatpush1.bf16.msra.mxu1 %v8840_v16  ;;  %v8935_v15 = vld [vmem:[%s9777_s10 + $0xae4] ss:$16 sps:$4 sm:$0xff]   ;;  %v8938_v16 = vld [vmem:[%s9777_s10 + $0xaec] ss:$16 sps:$4 sm:$0xff]  }
 0x178   : > { %4590 = vmatprep.subr.bf16.mxu0 %v8845_v17  ;;  %5020 = vmatprep.subr.bf16.mxu1 %v8848_v18  ;;  %v8933_v17 = vld [vmem:[%s9777_s10 + $0xae0] ss:$16 sps:$4 sm:$0xff]   ;;  %v8936_v18 = vld [vmem:[%s9777_s10 + $0xae8] ss:$16 sps:$4 sm:$0xff]  }
 0x17b   : > { %4591 = vmatpush1.bf16.msra.mxu0 %v8843_v19  ;;  %5021 = vmatpush1.bf16.msra.mxu1 %v8846_v20  ;;  %v8941_v19 = vld [vmem:[%s9777_s10 + $0xb04] ss:$16 sps:$4 sm:$0xff]   ;;  %v8944_v20 = vld [vmem:[%s9777_s10 + $0xb0c] ss:$16 sps:$4 sm:$0xff]  }
 0x17c   : > { %4592 = vmatprep.subr.bf16.mxu0 %v8851_v21  ;;  %5022 = vmatprep.subr.bf16.mxu1 %v8854_v22  ;;  %v8939_v21 = vld [vmem:[%s9777_s10 + $0xb00] ss:$16 sps:$4 sm:$0xff]   ;;  %v8942_v22 = vld [vmem:[%s9777_s10 + $0xb08] ss:$16 sps:$4 sm:$0xff]  }
 0x17f   : > { %4593 = vmatpush1.bf16.msra.mxu0 %v8849_v23  ;;  %5023 = vmatpush1.bf16.msra.mxu1 %v8852_v24  ;;  %v8947_v23 = vld [vmem:[%s9777_s10 + $0xb24] ss:$16 sps:$4 sm:$0xff]   ;;  %v8950_v24 = vld [vmem:[%s9777_s10 + $0xb2c] ss:$16 sps:$4 sm:$0xff]  }
 0x180   : > { %4594 = vmatprep.subr.bf16.mxu0 %v8857_v25  ;;  %5024 = vmatprep.subr.bf16.mxu1 %v8860_v26  ;;  %v8945_v25 = vld [vmem:[%s9777_s10 + $0xb20] ss:$16 sps:$4 sm:$0xff]   ;;  %v8948_v26 = vld [vmem:[%s9777_s10 + $0xb28] ss:$16 sps:$4 sm:$0xff]  }
 0x183   : > { %4595 = vmatpush1.bf16.msra.mxu0 %v8855_v27  ;;  %5025 = vmatpush1.bf16.msra.mxu1 %v8858_v28  ;;  %v8953_v27 = vld [vmem:[%s9777_s10 + $0xb44] ss:$16 sps:$4 sm:$0xff]   ;;  %v8956_v28 = vld [vmem:[%s9777_s10 + $0xb4c] ss:$16 sps:$4 sm:$0xff]  }
 0x184   : > { %4596 = vmatprep.subr.bf16.mxu0 %v8863_v29  ;;  %5026 = vmatprep.subr.bf16.mxu1 %v8866_v30  ;;  %v8951_v29 = vld [vmem:[%s9777_s10 + $0xb40] ss:$16 sps:$4 sm:$0xff]   ;;  %v8954_v30 = vld [vmem:[%s9777_s10 + $0xb48] ss:$16 sps:$4 sm:$0xff]  }
 0x187   : > { %4597 = vmatpush1.bf16.msra.mxu0 %v8861_v31  ;;  %5027 = vmatpush1.bf16.msra.mxu1 %v8864_v32  ;;  %v8959_v31 = vld [vmem:[%s9777_s10 + $0xb64] ss:$16 sps:$4 sm:$0xff]   ;;  %v8962_v32 = vld [vmem:[%s9777_s10 + $0xb6c] ss:$16 sps:$4 sm:$0xff]  }
 0x188   : > { %4598 = vmatprep.subr.bf16.mxu0 %v8869_v33  ;;  %5028 = vmatprep.subr.bf16.mxu1 %v8872_v34  ;;  %v8957_v33 = vld [vmem:[%s9777_s10 + $0xb60] ss:$16 sps:$4 sm:$0xff]   ;;  %v8960_v34 = vld [vmem:[%s9777_s10 + $0xb68] ss:$16 sps:$4 sm:$0xff]  }
 0x18b   : > { %4599 = vmatpush1.bf16.msra.mxu0 %v8867_v35  ;;  %5029 = vmatpush1.bf16.msra.mxu1 %v8870_v36  ;;  %v8965_v35 = vld [vmem:[%s9777_s10 + $0xb84] ss:$16 sps:$4 sm:$0xff]   ;;  %v8968_v36 = vld [vmem:[%s9777_s10 + $0xb8c] ss:$16 sps:$4 sm:$0xff]  }
 0x18c   : > { %4600 = vmatprep.subr.bf16.mxu0 %v8875_v37  ;;  %5030 = vmatprep.subr.bf16.mxu1 %v8878_v38  ;;  %v8963_v37 = vld [vmem:[%s9777_s10 + $0xb80] ss:$16 sps:$4 sm:$0xff]   ;;  %v8966_v38 = vld [vmem:[%s9777_s10 + $0xb88] ss:$16 sps:$4 sm:$0xff]  }
 0x18f   : > { %4601 = vmatpush1.bf16.msra.mxu0 %v8873_v39  ;;  %5031 = vmatpush1.bf16.msra.mxu1 %v8876_v40  ;;  %v8971_v39 = vld [vmem:[%s9777_s10 + $0xba4] ss:$16 sps:$4 sm:$0xff]   ;;  %v8974_v40 = vld [vmem:[%s9777_s10 + $0xbac] ss:$16 sps:$4 sm:$0xff]  }
 0x190   : > { %4602 = vmatprep.subr.bf16.mxu0 %v8881_v41  ;;  %5032 = vmatprep.subr.bf16.mxu1 %v8884_v42  ;;  %v8969_v41 = vld [vmem:[%s9777_s10 + $0xba0] ss:$16 sps:$4 sm:$0xff]   ;;  %v8972_v42 = vld [vmem:[%s9777_s10 + $0xba8] ss:$16 sps:$4 sm:$0xff]  }
 0x193   : > { %4603 = vmatpush1.bf16.msra.mxu0 %v8879_v43  ;;  %5033 = vmatpush1.bf16.msra.mxu1 %v8882_v44  ;;  %v8977_v43 = vld [vmem:[%s9777_s10 + $0xbc4] ss:$16 sps:$4 sm:$0xff]   ;;  %v8980_v44 = vld [vmem:[%s9777_s10 + $0xbcc] ss:$16 sps:$4 sm:$0xff]  }
 0x194   : > { %4604 = vmatprep.subr.bf16.mxu0 %v8887_v45  ;;  %5034 = vmatprep.subr.bf16.mxu1 %v8890_v46  ;;  %v8975_v45 = vld [vmem:[%s9777_s10 + $0xbc0] ss:$16 sps:$4 sm:$0xff]   ;;  %v8978_v46 = vld [vmem:[%s9777_s10 + $0xbc8] ss:$16 sps:$4 sm:$0xff]  }
 0x197   : > { %4605 = vmatpush1.bf16.msra.mxu0 %v8885_v47  ;;  %5035 = vmatpush1.bf16.msra.mxu1 %v8888_v48  ;;  %v8983_v47 = vld [vmem:[%s9777_s10 + $0xbe4] ss:$16 sps:$4 sm:$0xff]   ;;  %v8986_v48 = vld [vmem:[%s9777_s10 + $0xbec] ss:$16 sps:$4 sm:$0xff]  }
 0x198   : > { %4617 = vmatprep.subr.bf16.mxu0 %v8893_v49  ;;  %5047 = vmatprep.subr.bf16.mxu1 %v8896_v50  ;;  %v8981_v49 = vld [vmem:[%s9777_s10 + $0xbe0] ss:$16 sps:$4 sm:$0xff]   ;;  %v8984_v50 = vld [vmem:[%s9777_s10 + $0xbe8] ss:$16 sps:$4 sm:$0xff]  }
 0x19a   : > { %4607 = vmatmul.mubr.bf16.vlgmr.msra.gmra.mrb[0].mxu0 %v528_v53  ;;  %5037 = vmatmul.mubr.bf16.vlgmr.msra.gmra.mrb[0].mxu1 %v528_v53  ;;  %v8987_v53 = vld [vmem:[%s9777_s10 + $0xc00] ss:$16 sps:$4 sm:$0xff]  }
 0x19b   : > { %4618 = vmatpush1.bf16.msra.mxu0 %v8891_v51  ;;  %5048 = vmatpush1.bf16.msra.mxu1 %v8894_v52  ;;  %v8989_v51 = vld [vmem:[%s9777_s10 + $0xc04] ss:$16 sps:$4 sm:$0xff]   ;;  %v8992_v52 = vld [vmem:[%s9777_s10 + $0xc0c] ss:$16 sps:$4 sm:$0xff]  }
 0x19c   : > { %4619 = vmatprep.subr.bf16.mxu0 %v8899_v54  ;;  %5049 = vmatprep.subr.bf16.mxu1 %v8902_v55  ;;  %v8990_v54 = vld [vmem:[%s9777_s10 + $0xc08] ss:$16 sps:$4 sm:$0xff]   ;;  %v530_v55 = vld [vmem:[#allocation2 + $0x50] sm:$0xff] }
 0x19d   : > { %4649 = vmatprep.mubr.bf16.mxu0 %v531_v56  ;;  %5079 = vmatprep.mubr.bf16.mxu1 %v531_v56  ;;  %v8995_v56 = vld [vmem:[%s9777_s10 + $0xc24] ss:$16 sps:$4 sm:$0xff]  }
 0x19f   : > { %4620 = vmatpush1.bf16.msra.mxu0 %v8897_v57  ;;  %5050 = vmatpush1.bf16.msra.mxu1 %v8900_v58  ;;  %v8998_v57 = vld [vmem:[%s9777_s10 + $0xc2c] ss:$16 sps:$4 sm:$0xff]  }
 0x1a0   : > { %4621 = vmatprep.subr.bf16.mxu0 %v8905_v59  ;;  %5051 = vmatprep.subr.bf16.mxu1 %v8908_v60  ;;  %v533_v58 = vld [vmem:[#allocation2 + $0x68] sm:$0xff]  ;;  %v8993_v59 = vld [vmem:[%s9777_s10 + $0xc20] ss:$16 sps:$4 sm:$0xff]  }
 0x1a1   : > { %v8996_v60 = vld [vmem:[%s9777_s10 + $0xc28] ss:$16 sps:$4 sm:$0xff]  }
 0x1a3   : > { %4622 = vmatpush1.bf16.msra.mxu0 %v8903_v61  ;;  %5052 = vmatpush1.bf16.msra.mxu1 %v8906_v62  ;;  %v9001_v61 = vld [vmem:[%s9777_s10 + $0xc44] ss:$16 sps:$4 sm:$0xff]   ;;  %v9004_v62 = vld [vmem:[%s9777_s10 + $0xc4c] ss:$16 sps:$4 sm:$0xff]  }
 0x1a4   : > { %4623 = vmatprep.subr.bf16.mxu0 %v8911_v63  ;;  %5053 = vmatprep.subr.bf16.mxu1 %v8914_v0  ;;  %v8999_v63 = vld [vmem:[%s9777_s10 + $0xc40] ss:$16 sps:$4 sm:$0xff]   ;;  %v9002_v0 = vld [vmem:[%s9777_s10 + $0xc48] ss:$16 sps:$4 sm:$0xff]  }
 0x1a7   : > { %4624 = vmatpush1.bf16.msra.mxu0 %v8909_v1  ;;  %5054 = vmatpush1.bf16.msra.mxu1 %v8912_v2  ;;  %v9007_v1 = vld [vmem:[%s9777_s10 + $0xc64] ss:$16 sps:$4 sm:$0xff]   ;;  %v9010_v2 = vld [vmem:[%s9777_s10 + $0xc6c] ss:$16 sps:$4 sm:$0xff]  }
 0x1a8   : > { %4625 = vmatprep.subr.bf16.mxu0 %v8917_v3  ;;  %5055 = vmatprep.subr.bf16.mxu1 %v8920_v4  ;;  %v9005_v3 = vld [vmem:[%s9777_s10 + $0xc60] ss:$16 sps:$4 sm:$0xff]   ;;  %v9008_v4 = vld [vmem:[%s9777_s10 + $0xc68] ss:$16 sps:$4 sm:$0xff]  }
 0x1ab   : > { %4626 = vmatpush1.bf16.msra.mxu0 %v8915_v5  ;;  %5056 = vmatpush1.bf16.msra.mxu1 %v8918_v6  ;;  %v9013_v5 = vld [vmem:[%s9777_s10 + $0xc84] ss:$16 sps:$4 sm:$0xff]   ;;  %v9016_v6 = vld [vmem:[%s9777_s10 + $0xc8c] ss:$16 sps:$4 sm:$0xff]  }
 0x1ac   : > { %4627 = vmatprep.subr.bf16.mxu0 %v8923_v7  ;;  %5057 = vmatprep.subr.bf16.mxu1 %v8926_v8  ;;  %v9011_v7 = vld [vmem:[%s9777_s10 + $0xc80] ss:$16 sps:$4 sm:$0xff]   ;;  %v9014_v8 = vld [vmem:[%s9777_s10 + $0xc88] ss:$16 sps:$4 sm:$0xff]  }
 0x1af   : > { %4628 = vmatpush1.bf16.msra.mxu0 %v8921_v9  ;;  %5058 = vmatpush1.bf16.msra.mxu1 %v8924_v10  ;;  %v9019_v9 = vld [vmem:[%s9777_s10 + $0xca4] ss:$16 sps:$4 sm:$0xff]   ;;  %v9022_v10 = vld [vmem:[%s9777_s10 + $0xcac] ss:$16 sps:$4 sm:$0xff]  }
 0x1b0   : > { %4629 = vmatprep.subr.bf16.mxu0 %v8929_v11  ;;  %5059 = vmatprep.subr.bf16.mxu1 %v8932_v12  ;;  %v9017_v11 = vld [vmem:[%s9777_s10 + $0xca0] ss:$16 sps:$4 sm:$0xff]   ;;  %v9020_v12 = vld [vmem:[%s9777_s10 + $0xca8] ss:$16 sps:$4 sm:$0xff]  }
 0x1b3   : > { %4630 = vmatpush1.bf16.msra.mxu0 %v8927_v13  ;;  %5060 = vmatpush1.bf16.msra.mxu1 %v8930_v14  ;;  %v9025_v13 = vld [vmem:[%s9777_s10 + $0xcc4] ss:$16 sps:$4 sm:$0xff]   ;;  %v9028_v14 = vld [vmem:[%s9777_s10 + $0xccc] ss:$16 sps:$4 sm:$0xff]  }
 0x1b4   : > { %4631 = vmatprep.subr.bf16.mxu0 %v8935_v15  ;;  %5061 = vmatprep.subr.bf16.mxu1 %v8938_v16  ;;  %v9023_v15 = vld [vmem:[%s9777_s10 + $0xcc0] ss:$16 sps:$4 sm:$0xff]   ;;  %v9026_v16 = vld [vmem:[%s9777_s10 + $0xcc8] ss:$16 sps:$4 sm:$0xff]  }
 0x1b7   : > { %4632 = vmatpush1.bf16.msra.mxu0 %v8933_v17  ;;  %5062 = vmatpush1.bf16.msra.mxu1 %v8936_v18  ;;  %v9031_v17 = vld [vmem:[%s9777_s10 + $0xce4] ss:$16 sps:$4 sm:$0xff]   ;;  %v9034_v18 = vld [vmem:[%s9777_s10 + $0xcec] ss:$16 sps:$4 sm:$0xff]  }
 0x1b8   : > { %4633 = vmatprep.subr.bf16.mxu0 %v8941_v19  ;;  %5063 = vmatprep.subr.bf16.mxu1 %v8944_v20  ;;  %v9029_v19 = vld [vmem:[%s9777_s10 + $0xce0] ss:$16 sps:$4 sm:$0xff]   ;;  %v9032_v20 = vld [vmem:[%s9777_s10 + $0xce8] ss:$16 sps:$4 sm:$0xff]  }
 0x1bb   : > { %4634 = vmatpush1.bf16.msra.mxu0 %v8939_v21  ;;  %5064 = vmatpush1.bf16.msra.mxu1 %v8942_v22  ;;  %v9037_v21 = vld [vmem:[%s9777_s10 + $0xd04] ss:$16 sps:$4 sm:$0xff]   ;;  %v9040_v22 = vld [vmem:[%s9777_s10 + $0xd0c] ss:$16 sps:$4 sm:$0xff]  }
 0x1bc   : > { %4635 = vmatprep.subr.bf16.mxu0 %v8947_v23  ;;  %5065 = vmatprep.subr.bf16.mxu1 %v8950_v24  ;;  %v9035_v23 = vld [vmem:[%s9777_s10 + $0xd00] ss:$16 sps:$4 sm:$0xff]   ;;  %v9038_v24 = vld [vmem:[%s9777_s10 + $0xd08] ss:$16 sps:$4 sm:$0xff]  }
 0x1bf   : > { %4636 = vmatpush1.bf16.msra.mxu0 %v8945_v25  ;;  %5066 = vmatpush1.bf16.msra.mxu1 %v8948_v26  ;;  %v9043_v25 = vld [vmem:[%s9777_s10 + $0xd24] ss:$16 sps:$4 sm:$0xff]   ;;  %v9046_v26 = vld [vmem:[%s9777_s10 + $0xd2c] ss:$16 sps:$4 sm:$0xff]  }
 0x1c0   : > { %4637 = vmatprep.subr.bf16.mxu0 %v8953_v27  ;;  %5067 = vmatprep.subr.bf16.mxu1 %v8956_v28  ;;  %v9041_v27 = vld [vmem:[%s9777_s10 + $0xd20] ss:$16 sps:$4 sm:$0xff]   ;;  %v9044_v28 = vld [vmem:[%s9777_s10 + $0xd28] ss:$16 sps:$4 sm:$0xff]  }
 0x1c3   : > { %4638 = vmatpush1.bf16.msra.mxu0 %v8951_v29  ;;  %5068 = vmatpush1.bf16.msra.mxu1 %v8954_v30  ;;  %v9049_v29 = vld [vmem:[%s9777_s10 + $0xd44] ss:$16 sps:$4 sm:$0xff]   ;;  %v9052_v30 = vld [vmem:[%s9777_s10 + $0xd4c] ss:$16 sps:$4 sm:$0xff]  }
 0x1c4   : > { %4639 = vmatprep.subr.bf16.mxu0 %v8959_v31  ;;  %5069 = vmatprep.subr.bf16.mxu1 %v8962_v32  ;;  %v9047_v31 = vld [vmem:[%s9777_s10 + $0xd40] ss:$16 sps:$4 sm:$0xff]   ;;  %v9050_v32 = vld [vmem:[%s9777_s10 + $0xd48] ss:$16 sps:$4 sm:$0xff]  }
 0x1c7   : > { %4640 = vmatpush1.bf16.msra.mxu0 %v8957_v33  ;;  %5070 = vmatpush1.bf16.msra.mxu1 %v8960_v34  ;;  %v9055_v33 = vld [vmem:[%s9777_s10 + $0xd64] ss:$16 sps:$4 sm:$0xff]   ;;  %v9058_v34 = vld [vmem:[%s9777_s10 + $0xd6c] ss:$16 sps:$4 sm:$0xff]  }
 0x1c8   : > { %4641 = vmatprep.subr.bf16.mxu0 %v8965_v35  ;;  %5071 = vmatprep.subr.bf16.mxu1 %v8968_v36  ;;  %v9053_v35 = vld [vmem:[%s9777_s10 + $0xd60] ss:$16 sps:$4 sm:$0xff]   ;;  %v9056_v36 = vld [vmem:[%s9777_s10 + $0xd68] ss:$16 sps:$4 sm:$0xff]  }
 0x1cb   : > { %4642 = vmatpush1.bf16.msra.mxu0 %v8963_v37  ;;  %5072 = vmatpush1.bf16.msra.mxu1 %v8966_v38  ;;  %v9061_v37 = vld [vmem:[%s9777_s10 + $0xd84] ss:$16 sps:$4 sm:$0xff]   ;;  %v9064_v38 = vld [vmem:[%s9777_s10 + $0xd8c] ss:$16 sps:$4 sm:$0xff]  }
 0x1cc   : > { %4643 = vmatprep.subr.bf16.mxu0 %v8971_v39  ;;  %5073 = vmatprep.subr.bf16.mxu1 %v8974_v40  ;;  %v9059_v39 = vld [vmem:[%s9777_s10 + $0xd80] ss:$16 sps:$4 sm:$0xff]   ;;  %v9062_v40 = vld [vmem:[%s9777_s10 + $0xd88] ss:$16 sps:$4 sm:$0xff]  }
 0x1cf   : > { %4644 = vmatpush1.bf16.msra.mxu0 %v8969_v41  ;;  %5074 = vmatpush1.bf16.msra.mxu1 %v8972_v42  ;;  %v9067_v41 = vld [vmem:[%s9777_s10 + $0xda4] ss:$16 sps:$4 sm:$0xff]   ;;  %v9070_v42 = vld [vmem:[%s9777_s10 + $0xdac] ss:$16 sps:$4 sm:$0xff]  }
 0x1d0   : > { %4645 = vmatprep.subr.bf16.mxu0 %v8977_v43  ;;  %5075 = vmatprep.subr.bf16.mxu1 %v8980_v44  ;;  %v9065_v43 = vld [vmem:[%s9777_s10 + $0xda0] ss:$16 sps:$4 sm:$0xff]   ;;  %v9068_v44 = vld [vmem:[%s9777_s10 + $0xda8] ss:$16 sps:$4 sm:$0xff]  }
 0x1d3   : > { %4646 = vmatpush1.bf16.msra.mxu0 %v8975_v45  ;;  %5076 = vmatpush1.bf16.msra.mxu1 %v8978_v46  ;;  %v9073_v45 = vld [vmem:[%s9777_s10 + $0xdc4] ss:$16 sps:$4 sm:$0xff]   ;;  %v9076_v46 = vld [vmem:[%s9777_s10 + $0xdcc] ss:$16 sps:$4 sm:$0xff]  }
 0x1d4   : > { %4647 = vmatprep.subr.bf16.mxu0 %v8983_v47  ;;  %5077 = vmatprep.subr.bf16.mxu1 %v8986_v48  ;;  %v9071_v47 = vld [vmem:[%s9777_s10 + $0xdc0] ss:$16 sps:$4 sm:$0xff]   ;;  %v9074_v48 = vld [vmem:[%s9777_s10 + $0xdc8] ss:$16 sps:$4 sm:$0xff]  }
 0x1d7   : > { %4648 = vmatpush1.bf16.msra.mxu0 %v8981_v49  ;;  %5078 = vmatpush1.bf16.msra.mxu1 %v8984_v50  ;;  %v9079_v49 = vld [vmem:[%s9777_s10 + $0xde4] ss:$16 sps:$4 sm:$0xff]   ;;  %v9082_v50 = vld [vmem:[%s9777_s10 + $0xdec] ss:$16 sps:$4 sm:$0xff]  }
 0x1d8   : > { %4660 = vmatprep.subr.bf16.mxu0 %v8989_v51  ;;  %5090 = vmatprep.subr.bf16.mxu1 %v8992_v52  ;;  %v9077_v51 = vld [vmem:[%s9777_s10 + $0xde0] ss:$16 sps:$4 sm:$0xff]   ;;  %v9080_v52 = vld [vmem:[%s9777_s10 + $0xde8] ss:$16 sps:$4 sm:$0xff]  }
 0x1da   : > { %4650 = vmatmul.mubr.bf16.vlgmr.msra.gmra.mrb[0].mxu0 %v530_v55  ;;  %5080 = vmatmul.mubr.bf16.vlgmr.msra.gmra.mrb[0].mxu1 %v530_v55  ;;  %v9083_v55 = vld [vmem:[%s9777_s10 + $0xe00] ss:$16 sps:$4 sm:$0xff]  }
 0x1db   : > { %4661 = vmatpush1.bf16.msra.mxu0 %v8987_v53  ;;  %5091 = vmatpush1.bf16.msra.mxu1 %v8990_v54  ;;  %v9085_v53 = vld [vmem:[%s9777_s10 + $0xe04] ss:$16 sps:$4 sm:$0xff]   ;;  %v9088_v54 = vld [vmem:[%s9777_s10 + $0xe0c] ss:$16 sps:$4 sm:$0xff]  }
 0x1dc   : > { %4662 = vmatprep.subr.bf16.mxu0 %v8995_v56  ;;  %5092 = vmatprep.subr.bf16.mxu1 %v8998_v57  ;;  %v9086_v56 = vld [vmem:[%s9777_s10 + $0xe08] ss:$16 sps:$4 sm:$0xff]   ;;  %v532_v57 = vld [vmem:[#allocation2 + $0x60] sm:$0xff] }
 0x1dd   : > { %4692 = vmatprep.mubr.bf16.mxu0 %v533_v58  ;;  %5122 = vmatprep.mubr.bf16.mxu1 %v533_v58  ;;  %v9091_v58 = vld [vmem:[%s9777_s10 + $0xe24] ss:$16 sps:$4 sm:$0xff]  }
 0x1df   : > { %4663 = vmatpush1.bf16.msra.mxu0 %v8993_v59  ;;  %5093 = vmatpush1.bf16.msra.mxu1 %v8996_v60  ;;  %v9094_v59 = vld [vmem:[%s9777_s10 + $0xe2c] ss:$16 sps:$4 sm:$0xff]  }
 0x1e0   : > { %4664 = vmatprep.subr.bf16.mxu0 %v9001_v61  ;;  %5094 = vmatprep.subr.bf16.mxu1 %v9004_v62  ;;  %v535_v60 = vld [vmem:[#allocation2 + $0x78] sm:$0xff]  ;;  %v9089_v61 = vld [vmem:[%s9777_s10 + $0xe20] ss:$16 sps:$4 sm:$0xff]  }
 0x1e1   : > { %v9092_v62 = vld [vmem:[%s9777_s10 + $0xe28] ss:$16 sps:$4 sm:$0xff]  }
 0x1e3   : > { %4665 = vmatpush1.bf16.msra.mxu0 %v8999_v63  ;;  %5095 = vmatpush1.bf16.msra.mxu1 %v9002_v0  ;;  %v9097_v63 = vld [vmem:[%s9777_s10 + $0xe44] ss:$16 sps:$4 sm:$0xff]   ;;  %v9100_v0 = vld [vmem:[%s9777_s10 + $0xe4c] ss:$16 sps:$4 sm:$0xff]  }
 0x1e4   : > { %4666 = vmatprep.subr.bf16.mxu0 %v9007_v1  ;;  %5096 = vmatprep.subr.bf16.mxu1 %v9010_v2  ;;  %v9095_v1 = vld [vmem:[%s9777_s10 + $0xe40] ss:$16 sps:$4 sm:$0xff]   ;;  %v9098_v2 = vld [vmem:[%s9777_s10 + $0xe48] ss:$16 sps:$4 sm:$0xff]  }
 0x1e7   : > { %4667 = vmatpush1.bf16.msra.mxu0 %v9005_v3  ;;  %5097 = vmatpush1.bf16.msra.mxu1 %v9008_v4  ;;  %v9103_v3 = vld [vmem:[%s9777_s10 + $0xe64] ss:$16 sps:$4 sm:$0xff]   ;;  %v9106_v4 = vld [vmem:[%s9777_s10 + $0xe6c] ss:$16 sps:$4 sm:$0xff]  }
 0x1e8   : > { %4668 = vmatprep.subr.bf16.mxu0 %v9013_v5  ;;  %5098 = vmatprep.subr.bf16.mxu1 %v9016_v6  ;;  %v9101_v5 = vld [vmem:[%s9777_s10 + $0xe60] ss:$16 sps:$4 sm:$0xff]   ;;  %v9104_v6 = vld [vmem:[%s9777_s10 + $0xe68] ss:$16 sps:$4 sm:$0xff]  }
 0x1eb   : > { %4669 = vmatpush1.bf16.msra.mxu0 %v9011_v7  ;;  %5099 = vmatpush1.bf16.msra.mxu1 %v9014_v8  ;;  %v9109_v7 = vld [vmem:[%s9777_s10 + $0xe84] ss:$16 sps:$4 sm:$0xff]   ;;  %v9112_v8 = vld [vmem:[%s9777_s10 + $0xe8c] ss:$16 sps:$4 sm:$0xff]  }
 0x1ec   : > { %4670 = vmatprep.subr.bf16.mxu0 %v9019_v9  ;;  %5100 = vmatprep.subr.bf16.mxu1 %v9022_v10  ;;  %v9107_v9 = vld [vmem:[%s9777_s10 + $0xe80] ss:$16 sps:$4 sm:$0xff]   ;;  %v9110_v10 = vld [vmem:[%s9777_s10 + $0xe88] ss:$16 sps:$4 sm:$0xff]  }
 0x1ef   : > { %4671 = vmatpush1.bf16.msra.mxu0 %v9017_v11  ;;  %5101 = vmatpush1.bf16.msra.mxu1 %v9020_v12  ;;  %v9115_v11 = vld [vmem:[%s9777_s10 + $0xea4] ss:$16 sps:$4 sm:$0xff]   ;;  %v9118_v12 = vld [vmem:[%s9777_s10 + $0xeac] ss:$16 sps:$4 sm:$0xff]  }
 0x1f0   : > { %4672 = vmatprep.subr.bf16.mxu0 %v9025_v13  ;;  %5102 = vmatprep.subr.bf16.mxu1 %v9028_v14  ;;  %v9113_v13 = vld [vmem:[%s9777_s10 + $0xea0] ss:$16 sps:$4 sm:$0xff]   ;;  %v9116_v14 = vld [vmem:[%s9777_s10 + $0xea8] ss:$16 sps:$4 sm:$0xff]  }
 0x1f3   : > { %4673 = vmatpush1.bf16.msra.mxu0 %v9023_v15  ;;  %5103 = vmatpush1.bf16.msra.mxu1 %v9026_v16  ;;  %v9121_v15 = vld [vmem:[%s9777_s10 + $0xec4] ss:$16 sps:$4 sm:$0xff]   ;;  %v9124_v16 = vld [vmem:[%s9777_s10 + $0xecc] ss:$16 sps:$4 sm:$0xff]  }
 0x1f4   : > { %4674 = vmatprep.subr.bf16.mxu0 %v9031_v17  ;;  %5104 = vmatprep.subr.bf16.mxu1 %v9034_v18  ;;  %v9119_v17 = vld [vmem:[%s9777_s10 + $0xec0] ss:$16 sps:$4 sm:$0xff]   ;;  %v9122_v18 = vld [vmem:[%s9777_s10 + $0xec8] ss:$16 sps:$4 sm:$0xff]  }
 0x1f7   : > { %4675 = vmatpush1.bf16.msra.mxu0 %v9029_v19  ;;  %5105 = vmatpush1.bf16.msra.mxu1 %v9032_v20  ;;  %v9127_v19 = vld [vmem:[%s9777_s10 + $0xee4] ss:$16 sps:$4 sm:$0xff]   ;;  %v9130_v20 = vld [vmem:[%s9777_s10 + $0xeec] ss:$16 sps:$4 sm:$0xff]  }
 0x1f8   : > { %4676 = vmatprep.subr.bf16.mxu0 %v9037_v21  ;;  %5106 = vmatprep.subr.bf16.mxu1 %v9040_v22  ;;  %v9125_v21 = vld [vmem:[%s9777_s10 + $0xee0] ss:$16 sps:$4 sm:$0xff]   ;;  %v9128_v22 = vld [vmem:[%s9777_s10 + $0xee8] ss:$16 sps:$4 sm:$0xff]  }
 0x1fb   : > { %4677 = vmatpush1.bf16.msra.mxu0 %v9035_v23  ;;  %5107 = vmatpush1.bf16.msra.mxu1 %v9038_v24  ;;  %v9133_v23 = vld [vmem:[%s9777_s10 + $0xf04] ss:$16 sps:$4 sm:$0xff]   ;;  %v9136_v24 = vld [vmem:[%s9777_s10 + $0xf0c] ss:$16 sps:$4 sm:$0xff]  }
 0x1fc   : > { %4678 = vmatprep.subr.bf16.mxu0 %v9043_v25  ;;  %5108 = vmatprep.subr.bf16.mxu1 %v9046_v26  ;;  %v9131_v25 = vld [vmem:[%s9777_s10 + $0xf00] ss:$16 sps:$4 sm:$0xff]   ;;  %v9134_v26 = vld [vmem:[%s9777_s10 + $0xf08] ss:$16 sps:$4 sm:$0xff]  }
 0x1ff   : > { %4679 = vmatpush1.bf16.msra.mxu0 %v9041_v27  ;;  %5109 = vmatpush1.bf16.msra.mxu1 %v9044_v28  ;;  %v9139_v27 = vld [vmem:[%s9777_s10 + $0xf24] ss:$16 sps:$4 sm:$0xff]   ;;  %v9142_v28 = vld [vmem:[%s9777_s10 + $0xf2c] ss:$16 sps:$4 sm:$0xff]  }
 0x200   : > { %4680 = vmatprep.subr.bf16.mxu0 %v9049_v29  ;;  %5110 = vmatprep.subr.bf16.mxu1 %v9052_v30  ;;  %v9137_v29 = vld [vmem:[%s9777_s10 + $0xf20] ss:$16 sps:$4 sm:$0xff]   ;;  %v9140_v30 = vld [vmem:[%s9777_s10 + $0xf28] ss:$16 sps:$4 sm:$0xff]  }
 0x203   : > { %4681 = vmatpush1.bf16.msra.mxu0 %v9047_v31  ;;  %5111 = vmatpush1.bf16.msra.mxu1 %v9050_v32  ;;  %v9145_v31 = vld [vmem:[%s9777_s10 + $0xf44] ss:$16 sps:$4 sm:$0xff]   ;;  %v9148_v32 = vld [vmem:[%s9777_s10 + $0xf4c] ss:$16 sps:$4 sm:$0xff]  }
 0x204   : > { %4682 = vmatprep.subr.bf16.mxu0 %v9055_v33  ;;  %5112 = vmatprep.subr.bf16.mxu1 %v9058_v34  ;;  %v9143_v33 = vld [vmem:[%s9777_s10 + $0xf40] ss:$16 sps:$4 sm:$0xff]   ;;  %v9146_v34 = vld [vmem:[%s9777_s10 + $0xf48] ss:$16 sps:$4 sm:$0xff]  }
 0x207   : > { %4683 = vmatpush1.bf16.msra.mxu0 %v9053_v35  ;;  %5113 = vmatpush1.bf16.msra.mxu1 %v9056_v36  ;;  %v9151_v35 = vld [vmem:[%s9777_s10 + $0xf64] ss:$16 sps:$4 sm:$0xff]   ;;  %v9154_v36 = vld [vmem:[%s9777_s10 + $0xf6c] ss:$16 sps:$4 sm:$0xff]  }
 0x208   : > { %4684 = vmatprep.subr.bf16.mxu0 %v9061_v37  ;;  %5114 = vmatprep.subr.bf16.mxu1 %v9064_v38  ;;  %v9149_v37 = vld [vmem:[%s9777_s10 + $0xf60] ss:$16 sps:$4 sm:$0xff]   ;;  %v9152_v38 = vld [vmem:[%s9777_s10 + $0xf68] ss:$16 sps:$4 sm:$0xff]  }
 0x20b   : > { %4685 = vmatpush1.bf16.msra.mxu0 %v9059_v39  ;;  %5115 = vmatpush1.bf16.msra.mxu1 %v9062_v40  ;;  %v9157_v39 = vld [vmem:[%s9777_s10 + $0xf84] ss:$16 sps:$4 sm:$0xff]   ;;  %v9160_v40 = vld [vmem:[%s9777_s10 + $0xf8c] ss:$16 sps:$4 sm:$0xff]  }
 0x20c   : > { %4686 = vmatprep.subr.bf16.mxu0 %v9067_v41  ;;  %5116 = vmatprep.subr.bf16.mxu1 %v9070_v42  ;;  %v9155_v41 = vld [vmem:[%s9777_s10 + $0xf80] ss:$16 sps:$4 sm:$0xff]   ;;  %v9158_v42 = vld [vmem:[%s9777_s10 + $0xf88] ss:$16 sps:$4 sm:$0xff]  }
 0x20f   : > { %4687 = vmatpush1.bf16.msra.mxu0 %v9065_v43  ;;  %5117 = vmatpush1.bf16.msra.mxu1 %v9068_v44  ;;  %v9163_v43 = vld [vmem:[%s9777_s10 + $0xfa4] ss:$16 sps:$4 sm:$0xff]   ;;  %v9166_v44 = vld [vmem:[%s9777_s10 + $0xfac] ss:$16 sps:$4 sm:$0xff]  }
 0x210   : > { %4688 = vmatprep.subr.bf16.mxu0 %v9073_v45  ;;  %5118 = vmatprep.subr.bf16.mxu1 %v9076_v46  ;;  %v9161_v45 = vld [vmem:[%s9777_s10 + $0xfa0] ss:$16 sps:$4 sm:$0xff]   ;;  %v9164_v46 = vld [vmem:[%s9777_s10 + $0xfa8] ss:$16 sps:$4 sm:$0xff]  }
 0x213   : > { %4689 = vmatpush1.bf16.msra.mxu0 %v9071_v47  ;;  %5119 = vmatpush1.bf16.msra.mxu1 %v9074_v48  ;;  %v9169_v47 = vld [vmem:[%s9777_s10 + $0xfc4] ss:$16 sps:$4 sm:$0xff]   ;;  %v9172_v48 = vld [vmem:[%s9777_s10 + $0xfcc] ss:$16 sps:$4 sm:$0xff]  }
 0x214   : > { %4690 = vmatprep.subr.bf16.mxu0 %v9079_v49  ;;  %5120 = vmatprep.subr.bf16.mxu1 %v9082_v50  ;;  %v9167_v49 = vld [vmem:[%s9777_s10 + $0xfc0] ss:$16 sps:$4 sm:$0xff]   ;;  %v9170_v50 = vld [vmem:[%s9777_s10 + $0xfc8] ss:$16 sps:$4 sm:$0xff]  }
 0x217   : > { %4691 = vmatpush1.bf16.msra.mxu0 %v9077_v51  ;;  %5121 = vmatpush1.bf16.msra.mxu1 %v9080_v52  ;;  %v9175_v51 = vld [vmem:[%s9777_s10 + $0xfe4] ss:$16 sps:$4 sm:$0xff]   ;;  %v9178_v52 = vld [vmem:[%s9777_s10 + $0xfec] ss:$16 sps:$4 sm:$0xff]  }
 0x218   : > { %4703 = vmatprep.subr.bf16.mxu0 %v9085_v53  ;;  %5133 = vmatprep.subr.bf16.mxu1 %v9088_v54  ;;  %v9173_v53 = vld [vmem:[%s9777_s10 + $0xfe0] ss:$16 sps:$4 sm:$0xff]   ;;  %v9176_v54 = vld [vmem:[%s9777_s10 + $0xfe8] ss:$16 sps:$4 sm:$0xff]  }
 0x21a   : > { %4693 = vmatmul.mubr.bf16.vlgmr.msra.gmra.mrb[0].mxu0 %v532_v57  ;;  %5123 = vmatmul.mubr.bf16.vlgmr.msra.gmra.mrb[0].mxu1 %v532_v57  ;;  %v9179_v57 = vld [vmem:[%s9777_s10 + $0x1000] ss:$16 sps:$4 sm:$0xff]  }
 0x21b   : > { %4704 = vmatpush1.bf16.msra.mxu0 %v9083_v55  ;;  %5134 = vmatpush1.bf16.msra.mxu1 %v9086_v56  ;;  %v9181_v55 = vld [vmem:[%s9777_s10 + $0x1004] ss:$16 sps:$4 sm:$0xff]   ;;  %v9184_v56 = vld [vmem:[%s9777_s10 + $0x100c] ss:$16 sps:$4 sm:$0xff]  }
 0x21c   : > { %4705 = vmatprep.subr.bf16.mxu0 %v9091_v58  ;;  %5135 = vmatprep.subr.bf16.mxu1 %v9094_v59  ;;  %v9182_v58 = vld [vmem:[%s9777_s10 + $0x1008] ss:$16 sps:$4 sm:$0xff]   ;;  %v534_v59 = vld [vmem:[#allocation2 + $0x70] sm:$0xff] }
 0x21d   : > { %4735 = vmatprep.mubr.bf16.mxu0 %v535_v60  ;;  %5165 = vmatprep.mubr.bf16.mxu1 %v535_v60  ;;  %v9187_v60 = vld [vmem:[%s9777_s10 + $0x1024] ss:$16 sps:$4 sm:$0xff]  }
 0x21f   : > { %4706 = vmatpush1.bf16.msra.mxu0 %v9089_v61  ;;  %5136 = vmatpush1.bf16.msra.mxu1 %v9092_v62  ;;  %v9190_v61 = vld [vmem:[%s9777_s10 + $0x102c] ss:$16 sps:$4 sm:$0xff]  }
 0x220   : > { %4707 = vmatprep.subr.bf16.mxu0 %v9097_v63  ;;  %5137 = vmatprep.subr.bf16.mxu1 %v9100_v0  ;;  %v537_v62 = vld [vmem:[#allocation2 + $0x88] sm:$0xff]  ;;  %v9185_v63 = vld [vmem:[%s9777_s10 + $0x1020] ss:$16 sps:$4 sm:$0xff]  }
 0x221   : > { %v9188_v0 = vld [vmem:[%s9777_s10 + $0x1028] ss:$16 sps:$4 sm:$0xff]  }
 0x223   : > { %4708 = vmatpush1.bf16.msra.mxu0 %v9095_v1  ;;  %5138 = vmatpush1.bf16.msra.mxu1 %v9098_v2  ;;  %v9193_v1 = vld [vmem:[%s9777_s10 + $0x1044] ss:$16 sps:$4 sm:$0xff]   ;;  %v9196_v2 = vld [vmem:[%s9777_s10 + $0x104c] ss:$16 sps:$4 sm:$0xff]  }
 0x224   : > { %4709 = vmatprep.subr.bf16.mxu0 %v9103_v3  ;;  %5139 = vmatprep.subr.bf16.mxu1 %v9106_v4  ;;  %v9191_v3 = vld [vmem:[%s9777_s10 + $0x1040] ss:$16 sps:$4 sm:$0xff]   ;;  %v9194_v4 = vld [vmem:[%s9777_s10 + $0x1048] ss:$16 sps:$4 sm:$0xff]  }
 0x227   : > { %4710 = vmatpush1.bf16.msra.mxu0 %v9101_v5  ;;  %5140 = vmatpush1.bf16.msra.mxu1 %v9104_v6  ;;  %v9199_v5 = vld [vmem:[%s9777_s10 + $0x1064] ss:$16 sps:$4 sm:$0xff]   ;;  %v9202_v6 = vld [vmem:[%s9777_s10 + $0x106c] ss:$16 sps:$4 sm:$0xff]  }
 0x228   : > { %4711 = vmatprep.subr.bf16.mxu0 %v9109_v7  ;;  %5141 = vmatprep.subr.bf16.mxu1 %v9112_v8  ;;  %v9197_v7 = vld [vmem:[%s9777_s10 + $0x1060] ss:$16 sps:$4 sm:$0xff]   ;;  %v9200_v8 = vld [vmem:[%s9777_s10 + $0x1068] ss:$16 sps:$4 sm:$0xff]  }
 0x22b   : > { %4712 = vmatpush1.bf16.msra.mxu0 %v9107_v9  ;;  %5142 = vmatpush1.bf16.msra.mxu1 %v9110_v10  ;;  %v9205_v9 = vld [vmem:[%s9777_s10 + $0x1084] ss:$16 sps:$4 sm:$0xff]   ;;  %v9208_v10 = vld [vmem:[%s9777_s10 + $0x108c] ss:$16 sps:$4 sm:$0xff]  }
 0x22c   : > { %4713 = vmatprep.subr.bf16.mxu0 %v9115_v11  ;;  %5143 = vmatprep.subr.bf16.mxu1 %v9118_v12  ;;  %v9203_v11 = vld [vmem:[%s9777_s10 + $0x1080] ss:$16 sps:$4 sm:$0xff]   ;;  %v9206_v12 = vld [vmem:[%s9777_s10 + $0x1088] ss:$16 sps:$4 sm:$0xff]  }
 0x22f   : > { %4714 = vmatpush1.bf16.msra.mxu0 %v9113_v13  ;;  %5144 = vmatpush1.bf16.msra.mxu1 %v9116_v14  ;;  %v9211_v13 = vld [vmem:[%s9777_s10 + $0x10a4] ss:$16 sps:$4 sm:$0xff]   ;;  %v9214_v14 = vld [vmem:[%s9777_s10 + $0x10ac] ss:$16 sps:$4 sm:$0xff]  }
 0x230   : > { %4715 = vmatprep.subr.bf16.mxu0 %v9121_v15  ;;  %5145 = vmatprep.subr.bf16.mxu1 %v9124_v16  ;;  %v9209_v15 = vld [vmem:[%s9777_s10 + $0x10a0] ss:$16 sps:$4 sm:$0xff]   ;;  %v9212_v16 = vld [vmem:[%s9777_s10 + $0x10a8] ss:$16 sps:$4 sm:$0xff]  }
 0x233   : > { %4716 = vmatpush1.bf16.msra.mxu0 %v9119_v17  ;;  %5146 = vmatpush1.bf16.msra.mxu1 %v9122_v18  ;;  %v9217_v17 = vld [vmem:[%s9777_s10 + $0x10c4] ss:$16 sps:$4 sm:$0xff]   ;;  %v9220_v18 = vld [vmem:[%s9777_s10 + $0x10cc] ss:$16 sps:$4 sm:$0xff]  }
 0x234   : > { %4717 = vmatprep.subr.bf16.mxu0 %v9127_v19  ;;  %5147 = vmatprep.subr.bf16.mxu1 %v9130_v20  ;;  %v9215_v19 = vld [vmem:[%s9777_s10 + $0x10c0] ss:$16 sps:$4 sm:$0xff]   ;;  %v9218_v20 = vld [vmem:[%s9777_s10 + $0x10c8] ss:$16 sps:$4 sm:$0xff]  }
 0x237   : > { %4718 = vmatpush1.bf16.msra.mxu0 %v9125_v21  ;;  %5148 = vmatpush1.bf16.msra.mxu1 %v9128_v22  ;;  %v9223_v21 = vld [vmem:[%s9777_s10 + $0x10e4] ss:$16 sps:$4 sm:$0xff]   ;;  %v9226_v22 = vld [vmem:[%s9777_s10 + $0x10ec] ss:$16 sps:$4 sm:$0xff]  }
 0x238   : > { %4719 = vmatprep.subr.bf16.mxu0 %v9133_v23  ;;  %5149 = vmatprep.subr.bf16.mxu1 %v9136_v24  ;;  %v9221_v23 = vld [vmem:[%s9777_s10 + $0x10e0] ss:$16 sps:$4 sm:$0xff]   ;;  %v9224_v24 = vld [vmem:[%s9777_s10 + $0x10e8] ss:$16 sps:$4 sm:$0xff]  }
 0x23b   : > { %4720 = vmatpush1.bf16.msra.mxu0 %v9131_v25  ;;  %5150 = vmatpush1.bf16.msra.mxu1 %v9134_v26  ;;  %v9229_v25 = vld [vmem:[%s9777_s10 + $0x1104] ss:$16 sps:$4 sm:$0xff]   ;;  %v9232_v26 = vld [vmem:[%s9777_s10 + $0x110c] ss:$16 sps:$4 sm:$0xff]  }
 0x23c   : > { %4721 = vmatprep.subr.bf16.mxu0 %v9139_v27  ;;  %5151 = vmatprep.subr.bf16.mxu1 %v9142_v28  ;;  %v9227_v27 = vld [vmem:[%s9777_s10 + $0x1100] ss:$16 sps:$4 sm:$0xff]   ;;  %v9230_v28 = vld [vmem:[%s9777_s10 + $0x1108] ss:$16 sps:$4 sm:$0xff]  }
 0x23f   : > { %4722 = vmatpush1.bf16.msra.mxu0 %v9137_v29  ;;  %5152 = vmatpush1.bf16.msra.mxu1 %v9140_v30  ;;  %v9235_v29 = vld [vmem:[%s9777_s10 + $0x1124] ss:$16 sps:$4 sm:$0xff]   ;;  %v9238_v30 = vld [vmem:[%s9777_s10 + $0x112c] ss:$16 sps:$4 sm:$0xff]  }
 0x240   : > { %4723 = vmatprep.subr.bf16.mxu0 %v9145_v31  ;;  %5153 = vmatprep.subr.bf16.mxu1 %v9148_v32  ;;  %v9233_v31 = vld [vmem:[%s9777_s10 + $0x1120] ss:$16 sps:$4 sm:$0xff]   ;;  %v9236_v32 = vld [vmem:[%s9777_s10 + $0x1128] ss:$16 sps:$4 sm:$0xff]  }
 0x243   : > { %4724 = vmatpush1.bf16.msra.mxu0 %v9143_v33  ;;  %5154 = vmatpush1.bf16.msra.mxu1 %v9146_v34  ;;  %v9241_v33 = vld [vmem:[%s9777_s10 + $0x1144] ss:$16 sps:$4 sm:$0xff]   ;;  %v9244_v34 = vld [vmem:[%s9777_s10 + $0x114c] ss:$16 sps:$4 sm:$0xff]  }
 0x244   : > { %4725 = vmatprep.subr.bf16.mxu0 %v9151_v35  ;;  %5155 = vmatprep.subr.bf16.mxu1 %v9154_v36  ;;  %v9239_v35 = vld [vmem:[%s9777_s10 + $0x1140] ss:$16 sps:$4 sm:$0xff]   ;;  %v9242_v36 = vld [vmem:[%s9777_s10 + $0x1148] ss:$16 sps:$4 sm:$0xff]  }
 0x247   : > { %4726 = vmatpush1.bf16.msra.mxu0 %v9149_v37  ;;  %5156 = vmatpush1.bf16.msra.mxu1 %v9152_v38  ;;  %v9247_v37 = vld [vmem:[%s9777_s10 + $0x1164] ss:$16 sps:$4 sm:$0xff]   ;;  %v9250_v38 = vld [vmem:[%s9777_s10 + $0x116c] ss:$16 sps:$4 sm:$0xff]  }
 0x248   : > { %4727 = vmatprep.subr.bf16.mxu0 %v9157_v39  ;;  %5157 = vmatprep.subr.bf16.mxu1 %v9160_v40  ;;  %v9245_v39 = vld [vmem:[%s9777_s10 + $0x1160] ss:$16 sps:$4 sm:$0xff]   ;;  %v9248_v40 = vld [vmem:[%s9777_s10 + $0x1168] ss:$16 sps:$4 sm:$0xff]  }
 0x24b   : > { %4728 = vmatpush1.bf16.msra.mxu0 %v9155_v41  ;;  %5158 = vmatpush1.bf16.msra.mxu1 %v9158_v42  ;;  %v9253_v41 = vld [vmem:[%s9777_s10 + $0x1184] ss:$16 sps:$4 sm:$0xff]   ;;  %v9256_v42 = vld [vmem:[%s9777_s10 + $0x118c] ss:$16 sps:$4 sm:$0xff]  }
 0x24c   : > { %4729 = vmatprep.subr.bf16.mxu0 %v9163_v43  ;;  %5159 = vmatprep.subr.bf16.mxu1 %v9166_v44  ;;  %v9251_v43 = vld [vmem:[%s9777_s10 + $0x1180] ss:$16 sps:$4 sm:$0xff]   ;;  %v9254_v44 = vld [vmem:[%s9777_s10 + $0x1188] ss:$16 sps:$4 sm:$0xff]  }
 0x24f   : > { %4730 = vmatpush1.bf16.msra.mxu0 %v9161_v45  ;;  %5160 = vmatpush1.bf16.msra.mxu1 %v9164_v46  ;;  %v9259_v45 = vld [vmem:[%s9777_s10 + $0x11a4] ss:$16 sps:$4 sm:$0xff]   ;;  %v9262_v46 = vld [vmem:[%s9777_s10 + $0x11ac] ss:$16 sps:$4 sm:$0xff]  }
 0x250   : > { %4731 = vmatprep.subr.bf16.mxu0 %v9169_v47  ;;  %5161 = vmatprep.subr.bf16.mxu1 %v9172_v48  ;;  %v9257_v47 = vld [vmem:[%s9777_s10 + $0x11a0] ss:$16 sps:$4 sm:$0xff]   ;;  %v9260_v48 = vld [vmem:[%s9777_s10 + $0x11a8] ss:$16 sps:$4 sm:$0xff]  }
 0x253   : > { %4732 = vmatpush1.bf16.msra.mxu0 %v9167_v49  ;;  %5162 = vmatpush1.bf16.msra.mxu1 %v9170_v50  ;;  %v9265_v49 = vld [vmem:[%s9777_s10 + $0x11c4] ss:$16 sps:$4 sm:$0xff]   ;;  %v9268_v50 = vld [vmem:[%s9777_s10 + $0x11cc] ss:$16 sps:$4 sm:$0xff]  }
 0x254   : > { %4733 = vmatprep.subr.bf16.mxu0 %v9175_v51  ;;  %5163 = vmatprep.subr.bf16.mxu1 %v9178_v52  ;;  %v9263_v51 = vld [vmem:[%s9777_s10 + $0x11c0] ss:$16 sps:$4 sm:$0xff]   ;;  %v9266_v52 = vld [vmem:[%s9777_s10 + $0x11c8] ss:$16 sps:$4 sm:$0xff]  }
 0x257   : > { %4734 = vmatpush1.bf16.msra.mxu0 %v9173_v53  ;;  %5164 = vmatpush1.bf16.msra.mxu1 %v9176_v54  ;;  %v9271_v53 = vld [vmem:[%s9777_s10 + $0x11e4] ss:$16 sps:$4 sm:$0xff]   ;;  %v9274_v54 = vld [vmem:[%s9777_s10 + $0x11ec] ss:$16 sps:$4 sm:$0xff]  }
 0x258   : > { %4746 = vmatprep.subr.bf16.mxu0 %v9181_v55  ;;  %5176 = vmatprep.subr.bf16.mxu1 %v9184_v56  ;;  %v9269_v55 = vld [vmem:[%s9777_s10 + $0x11e0] ss:$16 sps:$4 sm:$0xff]   ;;  %v9272_v56 = vld [vmem:[%s9777_s10 + $0x11e8] ss:$16 sps:$4 sm:$0xff]  }
 0x25a   : > { %4736 = vmatmul.mubr.bf16.vlgmr.msra.gmra.mrb[0].mxu0 %v534_v59  ;;  %5166 = vmatmul.mubr.bf16.vlgmr.msra.gmra.mrb[0].mxu1 %v534_v59  ;;  %v9275_v59 = vld [vmem:[%s9777_s10 + $0x1200] ss:$16 sps:$4 sm:$0xff]  }
 0x25b   : > { %4747 = vmatpush1.bf16.msra.mxu0 %v9179_v57  ;;  %5177 = vmatpush1.bf16.msra.mxu1 %v9182_v58  ;;  %v9277_v57 = vld [vmem:[%s9777_s10 + $0x1204] ss:$16 sps:$4 sm:$0xff]   ;;  %v9280_v58 = vld [vmem:[%s9777_s10 + $0x120c] ss:$16 sps:$4 sm:$0xff]  }
 0x25c   : > { %4748 = vmatprep.subr.bf16.mxu0 %v9187_v60  ;;  %5178 = vmatprep.subr.bf16.mxu1 %v9190_v61  ;;  %v9278_v60 = vld [vmem:[%s9777_s10 + $0x1208] ss:$16 sps:$4 sm:$0xff]   ;;  %v536_v61 = vld [vmem:[#allocation2 + $0x80] sm:$0xff] }
 0x25d   : > { %4778 = vmatprep.mubr.bf16.mxu0 %v537_v62  ;;  %5208 = vmatprep.mubr.bf16.mxu1 %v537_v62  ;;  %v9283_v62 = vld [vmem:[%s9777_s10 + $0x1224] ss:$16 sps:$4 sm:$0xff]  }
 0x25f   : > { %4749 = vmatpush1.bf16.msra.mxu0 %v9185_v63  ;;  %5179 = vmatpush1.bf16.msra.mxu1 %v9188_v0  ;;  %v9286_v63 = vld [vmem:[%s9777_s10 + $0x122c] ss:$16 sps:$4 sm:$0xff]  }
 0x260   : > { %4750 = vmatprep.subr.bf16.mxu0 %v9193_v1  ;;  %5180 = vmatprep.subr.bf16.mxu1 %v9196_v2  ;;  %v539_v0 = vld [vmem:[#allocation2 + $0x98] sm:$0xff]  ;;  %v9281_v1 = vld [vmem:[%s9777_s10 + $0x1220] ss:$16 sps:$4 sm:$0xff]  }
 0x261   : > { %v9284_v2 = vld [vmem:[%s9777_s10 + $0x1228] ss:$16 sps:$4 sm:$0xff]  }
 0x263   : > { %4751 = vmatpush1.bf16.msra.mxu0 %v9191_v3  ;;  %5181 = vmatpush1.bf16.msra.mxu1 %v9194_v4  ;;  %v9289_v3 = vld [vmem:[%s9777_s10 + $0x1244] ss:$16 sps:$4 sm:$0xff]   ;;  %v9292_v4 = vld [vmem:[%s9777_s10 + $0x124c] ss:$16 sps:$4 sm:$0xff]  }
 0x264   : > { %4752 = vmatprep.subr.bf16.mxu0 %v9199_v5  ;;  %5182 = vmatprep.subr.bf16.mxu1 %v9202_v6  ;;  %v9287_v5 = vld [vmem:[%s9777_s10 + $0x1240] ss:$16 sps:$4 sm:$0xff]   ;;  %v9290_v6 = vld [vmem:[%s9777_s10 + $0x1248] ss:$16 sps:$4 sm:$0xff]  }
 0x267   : > { %4753 = vmatpush1.bf16.msra.mxu0 %v9197_v7  ;;  %5183 = vmatpush1.bf16.msra.mxu1 %v9200_v8  ;;  %v9295_v7 = vld [vmem:[%s9777_s10 + $0x1264] ss:$16 sps:$4 sm:$0xff]   ;;  %v9298_v8 = vld [vmem:[%s9777_s10 + $0x126c] ss:$16 sps:$4 sm:$0xff]  }
 0x268   : > { %4754 = vmatprep.subr.bf16.mxu0 %v9205_v9  ;;  %5184 = vmatprep.subr.bf16.mxu1 %v9208_v10  ;;  %v9293_v9 = vld [vmem:[%s9777_s10 + $0x1260] ss:$16 sps:$4 sm:$0xff]   ;;  %v9296_v10 = vld [vmem:[%s9777_s10 + $0x1268] ss:$16 sps:$4 sm:$0xff]  }
 0x26b   : > { %4755 = vmatpush1.bf16.msra.mxu0 %v9203_v11  ;;  %5185 = vmatpush1.bf16.msra.mxu1 %v9206_v12  ;;  %v9301_v11 = vld [vmem:[%s9777_s10 + $0x1284] ss:$16 sps:$4 sm:$0xff]   ;;  %v9304_v12 = vld [vmem:[%s9777_s10 + $0x128c] ss:$16 sps:$4 sm:$0xff]  }
 0x26c   : > { %4756 = vmatprep.subr.bf16.mxu0 %v9211_v13  ;;  %5186 = vmatprep.subr.bf16.mxu1 %v9214_v14  ;;  %v9299_v13 = vld [vmem:[%s9777_s10 + $0x1280] ss:$16 sps:$4 sm:$0xff]   ;;  %v9302_v14 = vld [vmem:[%s9777_s10 + $0x1288] ss:$16 sps:$4 sm:$0xff]  }
 0x26f   : > { %4757 = vmatpush1.bf16.msra.mxu0 %v9209_v15  ;;  %5187 = vmatpush1.bf16.msra.mxu1 %v9212_v16  ;;  %v9307_v15 = vld [vmem:[%s9777_s10 + $0x12a4] ss:$16 sps:$4 sm:$0xff]   ;;  %v9310_v16 = vld [vmem:[%s9777_s10 + $0x12ac] ss:$16 sps:$4 sm:$0xff]  }
 0x270   : > { %4758 = vmatprep.subr.bf16.mxu0 %v9217_v17  ;;  %5188 = vmatprep.subr.bf16.mxu1 %v9220_v18  ;;  %v9305_v17 = vld [vmem:[%s9777_s10 + $0x12a0] ss:$16 sps:$4 sm:$0xff]   ;;  %v9308_v18 = vld [vmem:[%s9777_s10 + $0x12a8] ss:$16 sps:$4 sm:$0xff]  }
 0x273   : > { %4759 = vmatpush1.bf16.msra.mxu0 %v9215_v19  ;;  %5189 = vmatpush1.bf16.msra.mxu1 %v9218_v20  ;;  %v9313_v19 = vld [vmem:[%s9777_s10 + $0x12c4] ss:$16 sps:$4 sm:$0xff]   ;;  %v9316_v20 = vld [vmem:[%s9777_s10 + $0x12cc] ss:$16 sps:$4 sm:$0xff]  }
 0x274   : > { %4760 = vmatprep.subr.bf16.mxu0 %v9223_v21  ;;  %5190 = vmatprep.subr.bf16.mxu1 %v9226_v22  ;;  %v9311_v21 = vld [vmem:[%s9777_s10 + $0x12c0] ss:$16 sps:$4 sm:$0xff]   ;;  %v9314_v22 = vld [vmem:[%s9777_s10 + $0x12c8] ss:$16 sps:$4 sm:$0xff]  }
 0x277   : > { %4761 = vmatpush1.bf16.msra.mxu0 %v9221_v23  ;;  %5191 = vmatpush1.bf16.msra.mxu1 %v9224_v24  ;;  %v9319_v23 = vld [vmem:[%s9777_s10 + $0x12e4] ss:$16 sps:$4 sm:$0xff]   ;;  %v9322_v24 = vld [vmem:[%s9777_s10 + $0x12ec] ss:$16 sps:$4 sm:$0xff]  }
 0x278   : > { %4762 = vmatprep.subr.bf16.mxu0 %v9229_v25  ;;  %5192 = vmatprep.subr.bf16.mxu1 %v9232_v26  ;;  %v9317_v25 = vld [vmem:[%s9777_s10 + $0x12e0] ss:$16 sps:$4 sm:$0xff]   ;;  %v9320_v26 = vld [vmem:[%s9777_s10 + $0x12e8] ss:$16 sps:$4 sm:$0xff]  }
 0x27b   : > { %4763 = vmatpush1.bf16.msra.mxu0 %v9227_v27  ;;  %5193 = vmatpush1.bf16.msra.mxu1 %v9230_v28  ;;  %v9325_v27 = vld [vmem:[%s9777_s10 + $0x1304] ss:$16 sps:$4 sm:$0xff]   ;;  %v9328_v28 = vld [vmem:[%s9777_s10 + $0x130c] ss:$16 sps:$4 sm:$0xff]  }
 0x27c   : > { %4764 = vmatprep.subr.bf16.mxu0 %v9235_v29  ;;  %5194 = vmatprep.subr.bf16.mxu1 %v9238_v30  ;;  %v9323_v29 = vld [vmem:[%s9777_s10 + $0x1300] ss:$16 sps:$4 sm:$0xff]   ;;  %v9326_v30 = vld [vmem:[%s9777_s10 + $0x1308] ss:$16 sps:$4 sm:$0xff]  }
 0x27f   : > { %4765 = vmatpush1.bf16.msra.mxu0 %v9233_v31  ;;  %5195 = vmatpush1.bf16.msra.mxu1 %v9236_v32  ;;  %v9331_v31 = vld [vmem:[%s9777_s10 + $0x1324] ss:$16 sps:$4 sm:$0xff]   ;;  %v9334_v32 = vld [vmem:[%s9777_s10 + $0x132c] ss:$16 sps:$4 sm:$0xff]  }
 0x280   : > { %4766 = vmatprep.subr.bf16.mxu0 %v9241_v33  ;;  %5196 = vmatprep.subr.bf16.mxu1 %v9244_v34  ;;  %v9329_v33 = vld [vmem:[%s9777_s10 + $0x1320] ss:$16 sps:$4 sm:$0xff]   ;;  %v9332_v34 = vld [vmem:[%s9777_s10 + $0x1328] ss:$16 sps:$4 sm:$0xff]  }
 0x283   : > { %4767 = vmatpush1.bf16.msra.mxu0 %v9239_v35  ;;  %5197 = vmatpush1.bf16.msra.mxu1 %v9242_v36  ;;  %v9337_v35 = vld [vmem:[%s9777_s10 + $0x1344] ss:$16 sps:$4 sm:$0xff]   ;;  %v9340_v36 = vld [vmem:[%s9777_s10 + $0x134c] ss:$16 sps:$4 sm:$0xff]  }
 0x284   : > { %4768 = vmatprep.subr.bf16.mxu0 %v9247_v37  ;;  %5198 = vmatprep.subr.bf16.mxu1 %v9250_v38  ;;  %v9335_v37 = vld [vmem:[%s9777_s10 + $0x1340] ss:$16 sps:$4 sm:$0xff]   ;;  %v9338_v38 = vld [vmem:[%s9777_s10 + $0x1348] ss:$16 sps:$4 sm:$0xff]  }
 0x287   : > { %4769 = vmatpush1.bf16.msra.mxu0 %v9245_v39  ;;  %5199 = vmatpush1.bf16.msra.mxu1 %v9248_v40  ;;  %v9343_v39 = vld [vmem:[%s9777_s10 + $0x1364] ss:$16 sps:$4 sm:$0xff]   ;;  %v9346_v40 = vld [vmem:[%s9777_s10 + $0x136c] ss:$16 sps:$4 sm:$0xff]  }
 0x288   : > { %4770 = vmatprep.subr.bf16.mxu0 %v9253_v41  ;;  %5200 = vmatprep.subr.bf16.mxu1 %v9256_v42  ;;  %v9341_v41 = vld [vmem:[%s9777_s10 + $0x1360] ss:$16 sps:$4 sm:$0xff]   ;;  %v9344_v42 = vld [vmem:[%s9777_s10 + $0x1368] ss:$16 sps:$4 sm:$0xff]  }
 0x28b   : > { %4771 = vmatpush1.bf16.msra.mxu0 %v9251_v43  ;;  %5201 = vmatpush1.bf16.msra.mxu1 %v9254_v44  ;;  %v9349_v43 = vld [vmem:[%s9777_s10 + $0x1384] ss:$16 sps:$4 sm:$0xff]   ;;  %v9352_v44 = vld [vmem:[%s9777_s10 + $0x138c] ss:$16 sps:$4 sm:$0xff]  }
 0x28c   : > { %4772 = vmatprep.subr.bf16.mxu0 %v9259_v45  ;;  %5202 = vmatprep.subr.bf16.mxu1 %v9262_v46  ;;  %v9347_v45 = vld [vmem:[%s9777_s10 + $0x1380] ss:$16 sps:$4 sm:$0xff]   ;;  %v9350_v46 = vld [vmem:[%s9777_s10 + $0x1388] ss:$16 sps:$4 sm:$0xff]  }
 0x28f   : > { %4773 = vmatpush1.bf16.msra.mxu0 %v9257_v47  ;;  %5203 = vmatpush1.bf16.msra.mxu1 %v9260_v48  ;;  %v9355_v47 = vld [vmem:[%s9777_s10 + $0x13a4] ss:$16 sps:$4 sm:$0xff]   ;;  %v9358_v48 = vld [vmem:[%s9777_s10 + $0x13ac] ss:$16 sps:$4 sm:$0xff]  }
 0x290   : > { %4774 = vmatprep.subr.bf16.mxu0 %v9265_v49  ;;  %5204 = vmatprep.subr.bf16.mxu1 %v9268_v50  ;;  %v9353_v49 = vld [vmem:[%s9777_s10 + $0x13a0] ss:$16 sps:$4 sm:$0xff]   ;;  %v9356_v50 = vld [vmem:[%s9777_s10 + $0x13a8] ss:$16 sps:$4 sm:$0xff]  }
 0x293   : > { %4775 = vmatpush1.bf16.msra.mxu0 %v9263_v51  ;;  %5205 = vmatpush1.bf16.msra.mxu1 %v9266_v52  ;;  %v9361_v51 = vld [vmem:[%s9777_s10 + $0x13c4] ss:$16 sps:$4 sm:$0xff]   ;;  %v9364_v52 = vld [vmem:[%s9777_s10 + $0x13cc] ss:$16 sps:$4 sm:$0xff]  }
 0x294   : > { %4776 = vmatprep.subr.bf16.mxu0 %v9271_v53  ;;  %5206 = vmatprep.subr.bf16.mxu1 %v9274_v54  ;;  %v9359_v53 = vld [vmem:[%s9777_s10 + $0x13c0] ss:$16 sps:$4 sm:$0xff]   ;;  %v9362_v54 = vld [vmem:[%s9777_s10 + $0x13c8] ss:$16 sps:$4 sm:$0xff]  }
 0x297   : > { %4777 = vmatpush1.bf16.msra.mxu0 %v9269_v55  ;;  %5207 = vmatpush1.bf16.msra.mxu1 %v9272_v56  ;;  %v9367_v55 = vld [vmem:[%s9777_s10 + $0x13e4] ss:$16 sps:$4 sm:$0xff]   ;;  %v9370_v56 = vld [vmem:[%s9777_s10 + $0x13ec] ss:$16 sps:$4 sm:$0xff]  }
 0x298   : > { %4789 = vmatprep.subr.bf16.mxu0 %v9277_v57  ;;  %5219 = vmatprep.subr.bf16.mxu1 %v9280_v58  ;;  %v9365_v57 = vld [vmem:[%s9777_s10 + $0x13e0] ss:$16 sps:$4 sm:$0xff]   ;;  %v9368_v58 = vld [vmem:[%s9777_s10 + $0x13e8] ss:$16 sps:$4 sm:$0xff]  }
 0x29a   : > { %4779 = vmatmul.mubr.bf16.vlgmr.msra.gmra.mrb[0].mxu0 %v536_v61  ;;  %5209 = vmatmul.mubr.bf16.vlgmr.msra.gmra.mrb[0].mxu1 %v536_v61 }
 0x29b   : > { %4790 = vmatpush1.bf16.msra.mxu0 %v9275_v59  ;;  %5220 = vmatpush1.bf16.msra.mxu1 %v9278_v60  ;;  %v538_v59 = vld [vmem:[#allocation2 + $0x90] sm:$0xff]  ;;  %v1182_v60 = vlaneseq }
 0x29c   : > { %4791 = vmatprep.subr.bf16.mxu0 %v9283_v62  ;;  %5221 = vmatprep.subr.bf16.mxu1 %v9286_v63 }
 0x29d   : > { %4821 = vmatprep.mubr.bf16.mxu0 %v539_v0  ;;  %5251 = vmatprep.mubr.bf16.mxu1 %v539_v0  ;;  %v1183_v61 = vshrl.u32 %v1182_v60, 7  ;;  %v1180_v0 = vld [vmem:[%s320_s30] sm:$0xf] }
 0x29f   : > { %4792 = vmatpush1.bf16.msra.mxu0 %v9281_v1  ;;  %5222 = vmatpush1.bf16.msra.mxu1 %v9284_v2  ;;  %v1184_v62 = vsub.s32 0, %v1183_v61  ;;  %v1192_v63 = vsub.s32 2, %v1183_v61  ;;  %v1188_v1 = vsub.s32 1, %v1183_v61  ;;  %v1196_v2 = vsub.s32 3, %v1183_v61 }
 0x2a0   : > { %4793 = vmatprep.subr.bf16.mxu0 %v9289_v3  ;;  %5223 = vmatprep.subr.bf16.mxu1 %v9292_v4 }
 0x2a1   : > { %v1185_v3 = vrot.slane %v1180_v0, %v1184_v62  ;;  %v1193_v4 = vrot.slane %v1180_v0, %v1192_v63 }
 0x2a3   : > { %4794 = vmatpush1.bf16.msra.mxu0 %v9287_v5  ;;  %5224 = vmatpush1.bf16.msra.mxu1 %v9290_v6  ;;  %v1189_v5 = vrot.slane %v1180_v0, %v1188_v1  ;;  %v1197_v6 = vrot.slane %v1180_v0, %v1196_v2 }
 0x2a4   : > { %4795 = vmatprep.subr.bf16.mxu0 %v9295_v7  ;;  %5225 = vmatprep.subr.bf16.mxu1 %v9298_v8 }
 0x2a7   : > { %4796 = vmatpush1.bf16.msra.mxu0 %v9293_v9  ;;  %5226 = vmatpush1.bf16.msra.mxu1 %v9296_v10 }
 0x2a8   : > { %4797 = vmatprep.subr.bf16.mxu0 %v9301_v11  ;;  %5227 = vmatprep.subr.bf16.mxu1 %v9304_v12 }
 0x2ab   : > { %4798 = vmatpush1.bf16.msra.mxu0 %v9299_v13  ;;  %5228 = vmatpush1.bf16.msra.mxu1 %v9302_v14 }
 0x2ac   : > { %4799 = vmatprep.subr.bf16.mxu0 %v9307_v15  ;;  %5229 = vmatprep.subr.bf16.mxu1 %v9310_v16 }
 0x2af   : > { %4800 = vmatpush1.bf16.msra.mxu0 %v9305_v17  ;;  %5230 = vmatpush1.bf16.msra.mxu1 %v9308_v18 }
 0x2b0   : > { %4801 = vmatprep.subr.bf16.mxu0 %v9313_v19  ;;  %5231 = vmatprep.subr.bf16.mxu1 %v9316_v20 }
 0x2b3   : > { %4802 = vmatpush1.bf16.msra.mxu0 %v9311_v21  ;;  %5232 = vmatpush1.bf16.msra.mxu1 %v9314_v22 }
 0x2b4   : > { %4803 = vmatprep.subr.bf16.mxu0 %v9319_v23  ;;  %5233 = vmatprep.subr.bf16.mxu1 %v9322_v24 }
 0x2b7   : > { %4804 = vmatpush1.bf16.msra.mxu0 %v9317_v25  ;;  %5234 = vmatpush1.bf16.msra.mxu1 %v9320_v26 }
 0x2b8   : > { %4805 = vmatprep.subr.bf16.mxu0 %v9325_v27  ;;  %5235 = vmatprep.subr.bf16.mxu1 %v9328_v28 }
 0x2bb   : > { %4806 = vmatpush1.bf16.msra.mxu0 %v9323_v29  ;;  %5236 = vmatpush1.bf16.msra.mxu1 %v9326_v30 }
 0x2bc   : > { %4807 = vmatprep.subr.bf16.mxu0 %v9331_v31  ;;  %5237 = vmatprep.subr.bf16.mxu1 %v9334_v32 }
 0x2bf   : > { %4808 = vmatpush1.bf16.msra.mxu0 %v9329_v33  ;;  %5238 = vmatpush1.bf16.msra.mxu1 %v9332_v34 }
 0x2c0   : > { %4809 = vmatprep.subr.bf16.mxu0 %v9337_v35  ;;  %5239 = vmatprep.subr.bf16.mxu1 %v9340_v36 }
 0x2c3   : > { %4810 = vmatpush1.bf16.msra.mxu0 %v9335_v37  ;;  %5240 = vmatpush1.bf16.msra.mxu1 %v9338_v38 }
 0x2c4   : > { %4811 = vmatprep.subr.bf16.mxu0 %v9343_v39  ;;  %5241 = vmatprep.subr.bf16.mxu1 %v9346_v40 }
 0x2c7   : > { %4812 = vmatpush1.bf16.msra.mxu0 %v9341_v41  ;;  %5242 = vmatpush1.bf16.msra.mxu1 %v9344_v42 }
 0x2c8   : > { %4813 = vmatprep.subr.bf16.mxu0 %v9349_v43  ;;  %5243 = vmatprep.subr.bf16.mxu1 %v9352_v44 }
 0x2cb   : > { %4814 = vmatpush1.bf16.msra.mxu0 %v9347_v45  ;;  %5244 = vmatpush1.bf16.msra.mxu1 %v9350_v46 }
 0x2cc   : > { %4815 = vmatprep.subr.bf16.mxu0 %v9355_v47  ;;  %5245 = vmatprep.subr.bf16.mxu1 %v9358_v48 }
 0x2cf   : > { %4816 = vmatpush1.bf16.msra.mxu0 %v9353_v49  ;;  %5246 = vmatpush1.bf16.msra.mxu1 %v9356_v50 }
 0x2d0   : > { %4817 = vmatprep.subr.bf16.mxu0 %v9361_v51  ;;  %5247 = vmatprep.subr.bf16.mxu1 %v9364_v52 }
 0x2d3   : > { %4818 = vmatpush1.bf16.msra.mxu0 %v9359_v53  ;;  %5248 = vmatpush1.bf16.msra.mxu1 %v9362_v54 }
 0x2d4   : > { %4819 = vmatprep.subr.bf16.mxu0 %v9367_v55  ;;  %5249 = vmatprep.subr.bf16.mxu1 %v9370_v56 }
 0x2d7   : > { %4820 = vmatpush1.bf16.msra.mxu0 %v9365_v57  ;;  %5250 = vmatpush1.bf16.msra.mxu1 %v9368_v58 }
 0x2da   : > { %4822 = vmatmul.mubr.bf16.vlgmr.msra.gmra.mrb[0].mxu0 %v538_v59  ;;  %5252 = vmatmul.mubr.bf16.vlgmr.msra.gmra.mrb[0].mxu1 %v538_v59 }
 0x3ad   : > { %v4823_v7 = vpop.f32.mrb[0].mxu0  ;;  %v5253_v8 = vpop.f32.mrb[0].mxu1 }
 0x3ae   : > { %v8223_v9 = vadd.f32 %v4823_v7, %v1185_v3  ;;  %v8227_v10 = vadd.f32 %v5253_v8, %v1193_v4  ;;  %v4825_v11 = vpop.f32.mrb[1].mxu0  ;;  %v5255_v12 = vpop.f32.mrb[1].mxu1 }
 0x3af   : > { %v8224_v13 = vadd.f32 %v4825_v11, %v1189_v5  ;;  %v8228_v14 = vadd.f32 %v5255_v12, %v1197_v6  ;;  %v4827_v15 = vpop.f32.mrb[2].mxu0  ;;  %v5257_v16 = vpop.f32.mrb[2].mxu1 }
 0x3b0   : > { %vm5262_vm0 = vcmp.gt.f32.partialorder %v8223_v9, 0.0  ;;  %v5270_v17 = vmul.f32 0.01, %v8223_v9  ;;  %vm5264_vm1 = vcmp.gt.f32.partialorder %v8227_v10, 0.0  ;;  %v5272_v18 = vmul.f32 0.01, %v8227_v10 }
 0x3b1   : > { %vm5263_vm2 = vcmp.gt.f32.partialorder %v8224_v13, 0.0  ;;  %v5271_v19 = vmul.f32 0.01, %v8224_v13  ;;  %vm5265_vm3 = vcmp.gt.f32.partialorder %v8228_v14, 0.0  ;;  %v5273_v20 = vmul.f32 0.01, %v8228_v14 }
 0x3b2   : > { %v8225_v21 = vadd.f32 %v4827_v15, %v1185_v3  ;;  %v8229_v22 = vadd.f32 %v5257_v16, %v1193_v4  ;;  %v4829_v23 = vpop.f32.mrb[3].mxu0  ;;  %v5259_v24 = vpop.f32.mrb[3].mxu1  ;;  %v5278_v25 = vsel %vm5262_vm0, %v8223_v9, %v5270_v17  ;;  %v5280_v26 = vsel %vm5264_vm1, %v8227_v10, %v5272_v18  ;;  %5292 = sbr.rel (%p7833_p13) target bundleno = 955 (0x3bb), region = 56 }
 0x3b3   : > { %v8226_v27 = vadd.f32 %v4829_v23, %v1189_v5  ;;  %v8230_v28 = vadd.f32 %v5259_v24, %v1197_v6  ;;  %v5279_v33 = vsel %vm5263_vm2, %v8224_v13, %v5271_v19  ;;  %v5281_v34 = vsel %vm5265_vm3, %v8228_v14, %v5273_v20 }
 0x3b4   : > { %vm5266_vm4 = vcmp.gt.f32.partialorder %v8225_v21, 0.0  ;;  %v5274_v29 = vmul.f32 0.01, %v8225_v21  ;;  %vm5268_vm5 = vcmp.gt.f32.partialorder %v8229_v22, 0.0  ;;  %v5276_v30 = vmul.f32 0.01, %v8229_v22 }
 0x3b5   : > { %vm5267_vm6 = vcmp.gt.f32.partialorder %v8226_v27, 0.0  ;;  %v5275_v31 = vmul.f32 0.01, %v8226_v27  ;;  %vm5269_vm7 = vcmp.gt.f32.partialorder %v8230_v28, 0.0  ;;  %v5277_v32 = vmul.f32 0.01, %v8230_v28 }
 0x3b6   : > { %v5282_v35 = vsel %vm5266_vm4, %v8225_v21, %v5274_v29  ;;  %v5284_v36 = vsel %vm5268_vm5, %v8229_v22, %v5276_v30 }
 0x3b7   : > { %v5286_v37 = vpack.c.bf16 %v5282_v35, %v5278_v25  ;;  %v5288_v38 = vpack.c.bf16 %v5284_v36, %v5280_v26  ;;  %v5283_v39 = vsel %vm5267_vm6, %v8226_v27, %v5275_v31  ;;  %v5285_v40 = vsel %vm5269_vm7, %v8230_v28, %v5277_v32 }
 0x3b8   : > { %v5287_v41 = vpack.c.bf16 %v5283_v39, %v5279_v33  ;;  %v5289_v42 = vpack.c.bf16 %v5285_v40, %v5281_v34 }
 0x3b9   : > { %5293 = vst [vmem:[#allocation3] sm:$0xff] %v5286_v37  ;;  %5295 = vst [vmem:[#allocation3 + $0x10] sm:$0xff] %v5288_v38 }
 0x3ba   : > { %5294 = vst [vmem:[#allocation3 + $0x8] sm:$0xff] %v5287_v41  ;;  %5296 = vst [vmem:[#allocation3 + $0x18] sm:$0xff] %v5289_v42 }
 0x3bb PF: > { %p7834_p1 = scmp.ne.s32.totalorder %s9611_s21, 1 }
 0x3bc   : > { %5301 = vst [vmem:[#allocation3 + $0x20] sm:$0xff] (!%p7834_p1), %v5286_v37  ;;  %5302 = vst [vmem:[#allocation3 + $0x28] sm:$0xff] (!%p7834_p1), %v5287_v41 }
 0x3bd   : > { %5300 = sbr.rel (%p7834_p1) target bundleno = 964 (0x3c4), region = 60  ;;  %5303 = vst [vmem:[#allocation3 + $0x30] sm:$0xff] (!%p7834_p1), %v5288_v38  ;;  %5304 = vst [vmem:[#allocation3 + $0x38] sm:$0xff] (!%p7834_p1), %v5289_v42 }
 0x3c4 PF: > { %p7835_p2 = scmp.ne.s32.totalorder %s9611_s21, 2 }
 0x3c5   : > { %5309 = vst [vmem:[#allocation3 + $0x40] sm:$0xff] (!%p7835_p2), %v5286_v37  ;;  %5310 = vst [vmem:[#allocation3 + $0x48] sm:$0xff] (!%p7835_p2), %v5287_v41 }
 0x3c6   : > { %5308 = sbr.rel (%p7835_p2) target bundleno = 973 (0x3cd), region = 64  ;;  %5311 = vst [vmem:[#allocation3 + $0x50] sm:$0xff] (!%p7835_p2), %v5288_v38  ;;  %5312 = vst [vmem:[#allocation3 + $0x58] sm:$0xff] (!%p7835_p2), %v5289_v42 }
 0x3cd PF: > { %p7836_p3 = scmp.ne.s32.totalorder %s9611_s21, 3 }
 0x3ce   : > { %5317 = vst [vmem:[#allocation3 + $0x60] sm:$0xff] (!%p7836_p3), %v5286_v37  ;;  %5318 = vst [vmem:[#allocation3 + $0x68] sm:$0xff] (!%p7836_p3), %v5287_v41 }
 0x3cf   : > { %5316 = sbr.rel (%p7836_p3) target bundleno = 982 (0x3d6), region = 68  ;;  %5319 = vst [vmem:[#allocation3 + $0x70] sm:$0xff] (!%p7836_p3), %v5288_v38  ;;  %5320 = vst [vmem:[#allocation3 + $0x78] sm:$0xff] (!%p7836_p3), %v5289_v42 }
 0x3d6 PF: > { %p5321_p12 = scmp.eq.s32.totalorder %s9611_s21, 4  ;;  %p7837_p0 = scmp.ne.s32.totalorder %s9611_s21, 4 }
 0x3d7   : > { %5325 = vst [vmem:[#allocation3 + $0x80] sm:$0xff] (!%p7837_p0), %v5286_v37  ;;  %5326 = vst [vmem:[#allocation3 + $0x88] sm:$0xff] (!%p7837_p0), %v5287_v41 }
 0x3d8   : > { %5324 = sbr.rel (%p7837_p0) target bundleno = 991 (0x3df), region = 72  ;;  %5327 = vst [vmem:[#allocation3 + $0x90] sm:$0xff] (!%p7837_p0), %v5288_v38  ;;  %5328 = vst [vmem:[#allocation3 + $0x98] sm:$0xff] (!%p7837_p0), %v5289_v42 }
 0x3df PF: > { %p5329_p4 = scmp.eq.s32.totalorder %s9615_s22, 1 }
 0x3e1   : > { %p5330_p10 = pnand %p5329_p4, %p5321_p12 }
 0x3e2   : > { %v9371_v43 = vld [vmem:[%s11029_s3 + $0x40] sm:$0xff] (!%p5330_p10)   ;;  %v9375_v47 = vld [vmem:[%s11029_s3 + $0x48] sm:$0xff] (!%p5330_p10)   ;;  %v9379_v51 = vld [vmem:[%s11029_s3 + $0x50] sm:$0xff] (!%p5330_p10)  }
 0x3e3   : > { %5333 = sbr.rel (%p5330_p10) target bundleno = 1378 (0x562), region = 76  ;;  %v9372_v44 = vld [vmem:[%s11029_s3 + $0xc0] sm:$0xff] (!%p5330_p10)   ;;  %8003 = vmatprep.subr.bf16.mxu0 (!%p5330_p10), %v9371_v43  ;;  %v9376_v48 = vld [vmem:[%s11029_s3 + $0xc8] sm:$0xff] (!%p5330_p10)   ;;  %v9380_v52 = vld [vmem:[%s11029_s3 + $0xd0] sm:$0xff] (!%p5330_p10)  }
 0x3e4   : > { %v9373_v45 = vld [vmem:[%s11029_s3] sm:$0xff] (!%p5330_p10)   ;;  %8025 = vmatprep.subr.bf16.mxu1 (!%p5330_p10), %v9372_v44  ;;  %v9377_v49 = vld [vmem:[%s11029_s3 + $0x8] sm:$0xff] (!%p5330_p10)   ;;  %v9381_v53 = vld [vmem:[%s11029_s3 + $0x10] sm:$0xff] (!%p5330_p10)  }
 0x3e5   : > { %v9374_v46 = vld [vmem:[%s11029_s3 + $0x80] sm:$0xff] (!%p5330_p10)   ;;  %8004 = vmatpush3.bf16.msra.mxu0 (!%p5330_p10), %v9373_v45  ;;  %v9378_v50 = vld [vmem:[%s11029_s3 + $0x88] sm:$0xff] (!%p5330_p10)   ;;  %v9382_v54 = vld [vmem:[%s11029_s3 + $0x90] sm:$0xff] (!%p5330_p10)  }
 0x3e6   : > { %8026 = vmatpush3.bf16.msra.mxu1 (!%p5330_p10), %v9374_v46  ;;  %8005 = vmatprep.subr.bf16.mxu0 (!%p5330_p10), %v9375_v47  ;;  %v9383_v55 = vld [vmem:[%s11029_s3 + $0x58] sm:$0xff] (!%p5330_p10)   ;;  %v9387_v59 = vld [vmem:[%s11029_s3 + $0x60] sm:$0xff] (!%p5330_p10)   ;;  %v9391_v63 = vld [vmem:[%s11029_s3 + $0x68] sm:$0xff] (!%p5330_p10)  }
 0x3e7   : > { %8027 = vmatprep.subr.bf16.mxu1 (!%p5330_p10), %v9376_v48  ;;  %v9384_v56 = vld [vmem:[%s11029_s3 + $0xd8] sm:$0xff] (!%p5330_p10)   ;;  %v9388_v60 = vld [vmem:[%s11029_s3 + $0xe0] sm:$0xff] (!%p5330_p10)   ;;  %v9392_v0 = vld [vmem:[%s11029_s3 + $0xe8] sm:$0xff] (!%p5330_p10)  }
 0x3e8   : > { %v9385_v57 = vld [vmem:[%s11029_s3 + $0x18] sm:$0xff] (!%p5330_p10)   ;;  %v9389_v61 = vld [vmem:[%s11029_s3 + $0x20] sm:$0xff] (!%p5330_p10)   ;;  %v9393_v1 = vld [vmem:[%s11029_s3 + $0x28] sm:$0xff] (!%p5330_p10)  }
 0x3e9   : > { %8006 = vmatpush3.bf16.msra.mxu0 (!%p5330_p10), %v9377_v49  ;;  %v9386_v58 = vld [vmem:[%s11029_s3 + $0x98] sm:$0xff] (!%p5330_p10)   ;;  %v9390_v62 = vld [vmem:[%s11029_s3 + $0xa0] sm:$0xff] (!%p5330_p10)   ;;  %v9394_v2 = vld [vmem:[%s11029_s3 + $0xa8] sm:$0xff] (!%p5330_p10)  }
 0x3ea   : > { %8028 = vmatpush3.bf16.msra.mxu1 %v9378_v50  ;;  %8007 = vmatprep.subr.bf16.mxu0 %v9379_v51  ;;  %v9395_v3 = vld [vmem:[%s11029_s3 + $0x70] sm:$0xff]   ;;  %v9399_v7 = vld [vmem:[%s11029_s3 + $0x78] sm:$0xff]   ;;  %v5335_v11 = vld [vmem:[#allocation3 + $0x8] sm:$0xff] }
 0x3eb   : > { %8029 = vmatprep.subr.bf16.mxu1 %v9380_v52  ;;  %v9396_v4 = vld [vmem:[%s11029_s3 + $0xf0] sm:$0xff]   ;;  %v9400_v8 = vld [vmem:[%s11029_s3 + $0xf8] sm:$0xff]   ;;  %v5334_v13 = vld [vmem:[#allocation3] sm:$0xff]  ;;  %6673 = vmatprep.mubr.bf16.mxu0 %v5335_v11 }
 0x3ec   : > { %v9397_v5 = vld [vmem:[%s11029_s3 + $0x30] sm:$0xff]   ;;  %v9401_v9 = vld [vmem:[%s11029_s3 + $0x38] sm:$0xff]   ;;  %v9403_v15 = vld [vmem:[%s11029_s3 + $0x140] sm:$0xff]  }
 0x3ed   : > { %8008 = vmatpush3.bf16.msra.mxu0 %v9381_v53  ;;  %v9398_v6 = vld [vmem:[%s11029_s3 + $0xb0] sm:$0xff]   ;;  %v9402_v10 = vld [vmem:[%s11029_s3 + $0xb8] sm:$0xff]   ;;  %v9404_v16 = vld [vmem:[%s11029_s3 + $0x1c0] sm:$0xff]  }
 0x3ee   : > { %8030 = vmatpush3.bf16.msra.mxu1 %v9382_v54  ;;  %8009 = vmatprep.subr.bf16.mxu0 %v9383_v55  ;;  %v5337_v12 = vld [vmem:[#allocation3 + $0x18] sm:$0xff]  ;;  %v5336_v14 = vld [vmem:[#allocation3 + $0x10] sm:$0xff]  ;;  %v9405_v17 = vld [vmem:[%s11029_s3 + $0x100] sm:$0xff]  }
 0x3ef   : > { %8031 = vmatprep.subr.bf16.mxu1 %v9384_v56  ;;  %6714 = vmatprep.mubr.bf16.mxu1 %v5337_v12  ;;  %v9406_v18 = vld [vmem:[%s11029_s3 + $0x180] sm:$0xff]   ;;  %v9407_v19 = vld [vmem:[%s11029_s3 + $0x148] sm:$0xff]   ;;  %v9411_v23 = vld [vmem:[%s11029_s3 + $0x150] sm:$0xff]  }
 0x3f0   : > { %v9408_v20 = vld [vmem:[%s11029_s3 + $0x1c8] sm:$0xff]   ;;  %v9412_v24 = vld [vmem:[%s11029_s3 + $0x1d0] sm:$0xff]   ;;  %v9415_v27 = vld [vmem:[%s11029_s3 + $0x158] sm:$0xff]  }
 0x3f1   : > { %8010 = vmatpush3.bf16.msra.mxu0 %v9385_v57  ;;  %v9409_v21 = vld [vmem:[%s11029_s3 + $0x108] sm:$0xff]   ;;  %v9413_v25 = vld [vmem:[%s11029_s3 + $0x110] sm:$0xff]   ;;  %v9416_v28 = vld [vmem:[%s11029_s3 + $0x1d8] sm:$0xff]  }
 0x3f2   : > { %8032 = vmatpush3.bf16.msra.mxu1 %v9386_v58  ;;  %8011 = vmatprep.subr.bf16.mxu0 %v9387_v59  ;;  %v9410_v22 = vld [vmem:[%s11029_s3 + $0x188] sm:$0xff]   ;;  %v9414_v26 = vld [vmem:[%s11029_s3 + $0x190] sm:$0xff]   ;;  %v9417_v29 = vld [vmem:[%s11029_s3 + $0x118] sm:$0xff]  }
 0x3f3   : > { %8033 = vmatprep.subr.bf16.mxu1 %v9388_v60  ;;  %v9418_v30 = vld [vmem:[%s11029_s3 + $0x198] sm:$0xff]   ;;  %v9419_v31 = vld [vmem:[%s11029_s3 + $0x160] sm:$0xff]   ;;  %v9423_v35 = vld [vmem:[%s11029_s3 + $0x168] sm:$0xff]  }
 0x3f4   : > { %v9420_v32 = vld [vmem:[%s11029_s3 + $0x1e0] sm:$0xff]   ;;  %v9424_v36 = vld [vmem:[%s11029_s3 + $0x1e8] sm:$0xff]   ;;  %v9427_v39 = vld [vmem:[%s11029_s3 + $0x170] sm:$0xff]  }
 0x3f5   : > { %8012 = vmatpush3.bf16.msra.mxu0 %v9389_v61  ;;  %v9421_v33 = vld [vmem:[%s11029_s3 + $0x120] sm:$0xff]   ;;  %v9425_v37 = vld [vmem:[%s11029_s3 + $0x128] sm:$0xff]   ;;  %v9428_v40 = vld [vmem:[%s11029_s3 + $0x1f0] sm:$0xff]  }
 0x3f6   : > { %8034 = vmatpush3.bf16.msra.mxu1 %v9390_v62  ;;  %8013 = vmatprep.subr.bf16.mxu0 %v9391_v63  ;;  %v9422_v34 = vld [vmem:[%s11029_s3 + $0x1a0] sm:$0xff]   ;;  %v9426_v38 = vld [vmem:[%s11029_s3 + $0x1a8] sm:$0xff]   ;;  %v9429_v41 = vld [vmem:[%s11029_s3 + $0x130] sm:$0xff]  }
 0x3f7   : > { %8035 = vmatprep.subr.bf16.mxu1 %v9392_v0  ;;  %v9430_v42 = vld [vmem:[%s11029_s3 + $0x1b0] sm:$0xff]   ;;  %v9431_v43 = vld [vmem:[%s11029_s3 + $0x178] sm:$0xff]   ;;  %v5339_v47 = vld [vmem:[#allocation3 + $0x28] sm:$0xff] }
 0x3f8   : > { %v9432_v44 = vld [vmem:[%s11029_s3 + $0x1f8] sm:$0xff]   ;;  %v5338_v49 = vld [vmem:[#allocation3 + $0x20] sm:$0xff]  ;;  %v5340_v50 = vld [vmem:[#allocation3 + $0x30] sm:$0xff] }
 0x3f9   : > { %8014 = vmatpush3.bf16.msra.mxu0 %v9393_v1  ;;  %v9433_v45 = vld [vmem:[%s11029_s3 + $0x138] sm:$0xff]   ;;  %v9435_v51 = vld [vmem:[%s11029_s3 + $0x240] sm:$0xff]   ;;  %v9439_v55 = vld [vmem:[%s11029_s3 + $0x248] sm:$0xff]  }
 0x3fa   : > { %8036 = vmatpush3.bf16.msra.mxu1 %v9394_v2  ;;  %8015 = vmatprep.subr.bf16.mxu0 %v9395_v3  ;;  %v9434_v46 = vld [vmem:[%s11029_s3 + $0x1b8] sm:$0xff]   ;;  %v9436_v52 = vld [vmem:[%s11029_s3 + $0x2c0] sm:$0xff]   ;;  %v9440_v56 = vld [vmem:[%s11029_s3 + $0x2c8] sm:$0xff]  }
 0x3fb   : > { %8037 = vmatprep.subr.bf16.mxu1 %v9396_v4  ;;  %v5341_v48 = vld [vmem:[#allocation3 + $0x38] sm:$0xff]  ;;  %v9437_v53 = vld [vmem:[%s11029_s3 + $0x200] sm:$0xff]   ;;  %v9441_v57 = vld [vmem:[%s11029_s3 + $0x208] sm:$0xff]  }
 0x3fc   : > { %v9438_v54 = vld [vmem:[%s11029_s3 + $0x280] sm:$0xff]   ;;  %v9442_v58 = vld [vmem:[%s11029_s3 + $0x288] sm:$0xff]   ;;  %v9443_v59 = vld [vmem:[%s11029_s3 + $0x250] sm:$0xff]  }
 0x3fd   : > { %8016 = vmatpush3.bf16.msra.mxu0 %v9397_v5  ;;  %v9444_v60 = vld [vmem:[%s11029_s3 + $0x2d0] sm:$0xff]   ;;  %v9447_v63 = vld [vmem:[%s11029_s3 + $0x258] sm:$0xff]   ;;  %v9451_v3 = vld [vmem:[%s11029_s3 + $0x260] sm:$0xff]  }
 0x3fe   : > { %8038 = vmatpush3.bf16.msra.mxu1 %v9398_v6  ;;  %8017 = vmatprep.subr.bf16.mxu0 %v9399_v7  ;;  %v9445_v61 = vld [vmem:[%s11029_s3 + $0x210] sm:$0xff]   ;;  %v9448_v0 = vld [vmem:[%s11029_s3 + $0x2d8] sm:$0xff]   ;;  %v9452_v4 = vld [vmem:[%s11029_s3 + $0x2e0] sm:$0xff]  }
 0x3ff   : > { %8039 = vmatprep.subr.bf16.mxu1 %v9400_v8  ;;  %v9446_v62 = vld [vmem:[%s11029_s3 + $0x290] sm:$0xff]   ;;  %v9449_v1 = vld [vmem:[%s11029_s3 + $0x218] sm:$0xff]   ;;  %v9453_v5 = vld [vmem:[%s11029_s3 + $0x220] sm:$0xff]  }
 0x400   : > { %v9450_v2 = vld [vmem:[%s11029_s3 + $0x298] sm:$0xff]   ;;  %v9454_v6 = vld [vmem:[%s11029_s3 + $0x2a0] sm:$0xff]   ;;  %v9455_v7 = vld [vmem:[%s11029_s3 + $0x268] sm:$0xff]  }
 0x401   : > { %8018 = vmatpush3.bf16.msra.mxu0 %v9401_v9  ;;  %v9456_v8 = vld [vmem:[%s11029_s3 + $0x2e8] sm:$0xff]   ;;  %v9459_v11 = vld [vmem:[%s11029_s3 + $0x270] sm:$0xff]  }
 0x402   : > { %8040 = vmatpush3.bf16.msra.mxu1 %v9402_v10  ;;  %8047 = vmatprep.subr.bf16.mxu0 %v9403_v15  ;;  %v9457_v9 = vld [vmem:[%s11029_s3 + $0x228] sm:$0xff]   ;;  %v9460_v12 = vld [vmem:[%s11029_s3 + $0x2f0] sm:$0xff]   ;;  %v9463_v15 = vld [vmem:[%s11029_s3 + $0x278] sm:$0xff]  }
 0x403   : > { %8069 = vmatprep.subr.bf16.mxu1 %v9404_v16  ;;  %v9458_v10 = vld [vmem:[%s11029_s3 + $0x2a8] sm:$0xff]   ;;  %v9464_v16 = vld [vmem:[%s11029_s3 + $0x2f8] sm:$0xff]  }
 0x404   : > { %6674 = vmatmul.mubr.bf16.vlgmr.msra.gmra.mrb[0].mxu0 %v5334_v13  ;;  %v9461_v13 = vld [vmem:[%s11029_s3 + $0x230] sm:$0xff]  }
 0x405   : > { %6715 = vmatmul.mubr.bf16.vlgmr.msra.gmra.mrb[0].mxu1 %v5336_v14  ;;  %8048 = vmatpush3.bf16.msra.mxu0 %v9405_v17  ;;  %v9462_v14 = vld [vmem:[%s11029_s3 + $0x2b0] sm:$0xff]   ;;  %v9465_v17 = vld [vmem:[%s11029_s3 + $0x238] sm:$0xff]  }
 0x406   : > { %8070 = vmatpush3.bf16.msra.mxu1 %v9406_v18  ;;  %8049 = vmatprep.subr.bf16.mxu0 %v9407_v19  ;;  %v9466_v18 = vld [vmem:[%s11029_s3 + $0x2b8] sm:$0xff]   ;;  %v5343_v19 = vld [vmem:[#allocation3 + $0x48] sm:$0xff] }
 0x407   : > { %8071 = vmatprep.subr.bf16.mxu1 %v9408_v20  ;;  %6755 = vmatprep.mubr.bf16.mxu0 %v5339_v47  ;;  %v5345_v20 = vld [vmem:[#allocation3 + $0x58] sm:$0xff]  ;;  %v9491_v47 = vld [vmem:[%s11029_s3 + $0x370] sm:$0xff]  }
 0x408   : > { %6796 = vmatprep.mubr.bf16.mxu1 %v5341_v48  ;;  %v9492_v48 = vld [vmem:[%s11029_s3 + $0x3f0] sm:$0xff]  }
 0x409   : > { %8050 = vmatpush3.bf16.msra.mxu0 %v9409_v21  ;;  %v5342_v21 = vld [vmem:[#allocation3 + $0x40] sm:$0xff] }
 0x40a   : > { %8072 = vmatpush3.bf16.msra.mxu1 %v9410_v22  ;;  %8051 = vmatprep.subr.bf16.mxu0 %v9411_v23  ;;  %v5344_v22 = vld [vmem:[#allocation3 + $0x50] sm:$0xff]  ;;  %v9467_v23 = vld [vmem:[%s11029_s3 + $0x340] sm:$0xff]  }
 0x40b   : > { %8073 = vmatprep.subr.bf16.mxu1 %v9412_v24  ;;  %v9468_v24 = vld [vmem:[%s11029_s3 + $0x3c0] sm:$0xff]  }
 0x40d   : > { %8052 = vmatpush3.bf16.msra.mxu0 %v9413_v25  ;;  %v9469_v25 = vld [vmem:[%s11029_s3 + $0x300] sm:$0xff]  }
 0x40e   : > { %8074 = vmatpush3.bf16.msra.mxu1 %v9414_v26  ;;  %8053 = vmatprep.subr.bf16.mxu0 %v9415_v27  ;;  %v9470_v26 = vld [vmem:[%s11029_s3 + $0x380] sm:$0xff]   ;;  %v9471_v27 = vld [vmem:[%s11029_s3 + $0x348] sm:$0xff]  }
 0x40f   : > { %8075 = vmatprep.subr.bf16.mxu1 %v9416_v28  ;;  %v9472_v28 = vld [vmem:[%s11029_s3 + $0x3c8] sm:$0xff]  }
 0x411   : > { %8054 = vmatpush3.bf16.msra.mxu0 %v9417_v29  ;;  %v9473_v29 = vld [vmem:[%s11029_s3 + $0x308] sm:$0xff]  }
 0x412   : > { %8076 = vmatpush3.bf16.msra.mxu1 %v9418_v30  ;;  %8055 = vmatprep.subr.bf16.mxu0 %v9419_v31  ;;  %v9474_v30 = vld [vmem:[%s11029_s3 + $0x388] sm:$0xff]   ;;  %v9475_v31 = vld [vmem:[%s11029_s3 + $0x350] sm:$0xff]  }
 0x413   : > { %8077 = vmatprep.subr.bf16.mxu1 %v9420_v32  ;;  %v9476_v32 = vld [vmem:[%s11029_s3 + $0x3d0] sm:$0xff]  }
 0x415   : > { %8056 = vmatpush3.bf16.msra.mxu0 %v9421_v33  ;;  %v9477_v33 = vld [vmem:[%s11029_s3 + $0x310] sm:$0xff]  }
 0x416   : > { %8078 = vmatpush3.bf16.msra.mxu1 %v9422_v34  ;;  %8057 = vmatprep.subr.bf16.mxu0 %v9423_v35  ;;  %v9478_v34 = vld [vmem:[%s11029_s3 + $0x390] sm:$0xff]   ;;  %v9479_v35 = vld [vmem:[%s11029_s3 + $0x358] sm:$0xff]  }
 0x417   : > { %8079 = vmatprep.subr.bf16.mxu1 %v9424_v36  ;;  %v9480_v36 = vld [vmem:[%s11029_s3 + $0x3d8] sm:$0xff]  }
 0x419   : > { %8058 = vmatpush3.bf16.msra.mxu0 %v9425_v37  ;;  %v9481_v37 = vld [vmem:[%s11029_s3 + $0x318] sm:$0xff]  }
 0x41a   : > { %8080 = vmatpush3.bf16.msra.mxu1 %v9426_v38  ;;  %8059 = vmatprep.subr.bf16.mxu0 %v9427_v39  ;;  %v9482_v38 = vld [vmem:[%s11029_s3 + $0x398] sm:$0xff]   ;;  %v9483_v39 = vld [vmem:[%s11029_s3 + $0x360] sm:$0xff]  }
 0x41b   : > { %8081 = vmatprep.subr.bf16.mxu1 %v9428_v40  ;;  %v9484_v40 = vld [vmem:[%s11029_s3 + $0x3e0] sm:$0xff]  }
 0x41d   : > { %8060 = vmatpush3.bf16.msra.mxu0 %v9429_v41  ;;  %v9485_v41 = vld [vmem:[%s11029_s3 + $0x320] sm:$0xff]  }
 0x41e   : > { %8082 = vmatpush3.bf16.msra.mxu1 %v9430_v42  ;;  %8061 = vmatprep.subr.bf16.mxu0 %v9431_v43  ;;  %v9486_v42 = vld [vmem:[%s11029_s3 + $0x3a0] sm:$0xff]   ;;  %v9487_v43 = vld [vmem:[%s11029_s3 + $0x368] sm:$0xff]  }
 0x41f   : > { %8083 = vmatprep.subr.bf16.mxu1 %v9432_v44  ;;  %v9488_v44 = vld [vmem:[%s11029_s3 + $0x3e8] sm:$0xff]  }
 0x421   : > { %8062 = vmatpush3.bf16.msra.mxu0 %v9433_v45  ;;  %v9489_v45 = vld [vmem:[%s11029_s3 + $0x328] sm:$0xff]  }
 0x422   : > { %8084 = vmatpush3.bf16.msra.mxu1 %v9434_v46  ;;  %8091 = vmatprep.subr.bf16.mxu0 %v9435_v51  ;;  %v9490_v46 = vld [vmem:[%s11029_s3 + $0x3a8] sm:$0xff]   ;;  %v9495_v51 = vld [vmem:[%s11029_s3 + $0x378] sm:$0xff]  }
 0x423   : > { %8113 = vmatprep.subr.bf16.mxu1 %v9436_v52  ;;  %v9496_v52 = vld [vmem:[%s11029_s3 + $0x3f8] sm:$0xff]  }
 0x424   : > { %6756 = vmatmul.mubr.bf16.vlgmr.msra.gmra.mrb[4].mxu0 %v5338_v49  ;;  %v9493_v49 = vld [vmem:[%s11029_s3 + $0x330] sm:$0xff]  }
 0x425   : > { %6797 = vmatmul.mubr.bf16.vlgmr.msra.gmra.mrb[4].mxu1 %v5340_v50  ;;  %8092 = vmatpush3.bf16.msra.mxu0 %v9437_v53  ;;  %v9494_v50 = vld [vmem:[%s11029_s3 + $0x3b0] sm:$0xff]   ;;  %v9497_v53 = vld [vmem:[%s11029_s3 + $0x338] sm:$0xff]  }
 0x426   : > { %8114 = vmatpush3.bf16.msra.mxu1 %v9438_v54  ;;  %8093 = vmatprep.subr.bf16.mxu0 %v9439_v55  ;;  %v9498_v54 = vld [vmem:[%s11029_s3 + $0x3b8] sm:$0xff]   ;;  %v5347_v55 = vld [vmem:[#allocation3 + $0x68] sm:$0xff] }
 0x427   : > { %8115 = vmatprep.subr.bf16.mxu1 %v9440_v56  ;;  %6837 = vmatprep.mubr.bf16.mxu0 %v5343_v19  ;;  %v5349_v56 = vld [vmem:[#allocation3 + $0x78] sm:$0xff]  ;;  %v9523_v19 = vld [vmem:[%s11029_s3 + $0x470] sm:$0xff]  }
 0x428   : > { %6878 = vmatprep.mubr.bf16.mxu1 %v5345_v20  ;;  %v9524_v20 = vld [vmem:[%s11029_s3 + $0x4f0] sm:$0xff]  }
 0x429   : > { %8094 = vmatpush3.bf16.msra.mxu0 %v9441_v57  ;;  %v5346_v57 = vld [vmem:[#allocation3 + $0x60] sm:$0xff] }
 0x42a   : > { %8116 = vmatpush3.bf16.msra.mxu1 %v9442_v58  ;;  %8095 = vmatprep.subr.bf16.mxu0 %v9443_v59  ;;  %v5348_v58 = vld [vmem:[#allocation3 + $0x70] sm:$0xff]  ;;  %v9499_v59 = vld [vmem:[%s11029_s3 + $0x440] sm:$0xff]  }
 0x42b   : > { %8117 = vmatprep.subr.bf16.mxu1 %v9444_v60  ;;  %v9500_v60 = vld [vmem:[%s11029_s3 + $0x4c0] sm:$0xff]  }
 0x42d   : > { %8096 = vmatpush3.bf16.msra.mxu0 %v9445_v61  ;;  %v9501_v61 = vld [vmem:[%s11029_s3 + $0x400] sm:$0xff]  }
 0x42e   : > { %8118 = vmatpush3.bf16.msra.mxu1 %v9446_v62  ;;  %8097 = vmatprep.subr.bf16.mxu0 %v9447_v63  ;;  %v9502_v62 = vld [vmem:[%s11029_s3 + $0x480] sm:$0xff]   ;;  %v9503_v63 = vld [vmem:[%s11029_s3 + $0x448] sm:$0xff]  }
 0x42f   : > { %8119 = vmatprep.subr.bf16.mxu1 %v9448_v0  ;;  %v9504_v0 = vld [vmem:[%s11029_s3 + $0x4c8] sm:$0xff]  }
 0x431   : > { %8098 = vmatpush3.bf16.msra.mxu0 %v9449_v1  ;;  %v9505_v1 = vld [vmem:[%s11029_s3 + $0x408] sm:$0xff]  }
 0x432   : > { %8120 = vmatpush3.bf16.msra.mxu1 %v9450_v2  ;;  %8099 = vmatprep.subr.bf16.mxu0 %v9451_v3  ;;  %v9506_v2 = vld [vmem:[%s11029_s3 + $0x488] sm:$0xff]   ;;  %v9507_v3 = vld [vmem:[%s11029_s3 + $0x450] sm:$0xff]  }
 0x433   : > { %8121 = vmatprep.subr.bf16.mxu1 %v9452_v4  ;;  %v9508_v4 = vld [vmem:[%s11029_s3 + $0x4d0] sm:$0xff]  }
 0x435   : > { %8100 = vmatpush3.bf16.msra.mxu0 %v9453_v5  ;;  %v9509_v5 = vld [vmem:[%s11029_s3 + $0x410] sm:$0xff]  }
 0x436   : > { %8122 = vmatpush3.bf16.msra.mxu1 %v9454_v6  ;;  %8101 = vmatprep.subr.bf16.mxu0 %v9455_v7  ;;  %v9510_v6 = vld [vmem:[%s11029_s3 + $0x490] sm:$0xff]   ;;  %v9511_v7 = vld [vmem:[%s11029_s3 + $0x458] sm:$0xff]  }
 0x437   : > { %8123 = vmatprep.subr.bf16.mxu1 %v9456_v8  ;;  %v9512_v8 = vld [vmem:[%s11029_s3 + $0x4d8] sm:$0xff]  }
 0x439   : > { %8102 = vmatpush3.bf16.msra.mxu0 %v9457_v9  ;;  %v9513_v9 = vld [vmem:[%s11029_s3 + $0x418] sm:$0xff]  }
 0x43a   : > { %8124 = vmatpush3.bf16.msra.mxu1 %v9458_v10  ;;  %8103 = vmatprep.subr.bf16.mxu0 %v9459_v11  ;;  %v9514_v10 = vld [vmem:[%s11029_s3 + $0x498] sm:$0xff]   ;;  %v9515_v11 = vld [vmem:[%s11029_s3 + $0x460] sm:$0xff]  }
 0x43b   : > { %8125 = vmatprep.subr.bf16.mxu1 %v9460_v12  ;;  %v9516_v12 = vld [vmem:[%s11029_s3 + $0x4e0] sm:$0xff]  }
 0x43d   : > { %8104 = vmatpush3.bf16.msra.mxu0 %v9461_v13  ;;  %v9517_v13 = vld [vmem:[%s11029_s3 + $0x420] sm:$0xff]  }
 0x43e   : > { %8126 = vmatpush3.bf16.msra.mxu1 %v9462_v14  ;;  %8105 = vmatprep.subr.bf16.mxu0 %v9463_v15  ;;  %v9518_v14 = vld [vmem:[%s11029_s3 + $0x4a0] sm:$0xff]   ;;  %v9519_v15 = vld [vmem:[%s11029_s3 + $0x468] sm:$0xff]  }
 0x43f   : > { %8127 = vmatprep.subr.bf16.mxu1 %v9464_v16  ;;  %v9520_v16 = vld [vmem:[%s11029_s3 + $0x4e8] sm:$0xff]  }
 0x441   : > { %8106 = vmatpush3.bf16.msra.mxu0 %v9465_v17  ;;  %v9521_v17 = vld [vmem:[%s11029_s3 + $0x428] sm:$0xff]  }
 0x442   : > { %8128 = vmatpush3.bf16.msra.mxu1 %v9466_v18  ;;  %8135 = vmatprep.subr.bf16.mxu0 %v9467_v23  ;;  %v9522_v18 = vld [vmem:[%s11029_s3 + $0x4a8] sm:$0xff]   ;;  %v9527_v23 = vld [vmem:[%s11029_s3 + $0x478] sm:$0xff]  }
 0x443   : > { %8157 = vmatprep.subr.bf16.mxu1 %v9468_v24  ;;  %v9528_v24 = vld [vmem:[%s11029_s3 + $0x4f8] sm:$0xff]  }
 0x444   : > { %6838 = vmatmul.mubr.bf16.vlgmr.msra.gmra.mrb[8].mxu0 %v5342_v21  ;;  %v9525_v21 = vld [vmem:[%s11029_s3 + $0x430] sm:$0xff]  }
 0x445   : > { %6879 = vmatmul.mubr.bf16.vlgmr.msra.gmra.mrb[8].mxu1 %v5344_v22  ;;  %8136 = vmatpush3.bf16.msra.mxu0 %v9469_v25  ;;  %v9526_v22 = vld [vmem:[%s11029_s3 + $0x4b0] sm:$0xff]   ;;  %v9529_v25 = vld [vmem:[%s11029_s3 + $0x438] sm:$0xff]  }
 0x446   : > { %8158 = vmatpush3.bf16.msra.mxu1 %v9470_v26  ;;  %8137 = vmatprep.subr.bf16.mxu0 %v9471_v27  ;;  %v9530_v26 = vld [vmem:[%s11029_s3 + $0x4b8] sm:$0xff]   ;;  %v5351_v27 = vld [vmem:[#allocation3 + $0x88] sm:$0xff] }
 0x447   : > { %8159 = vmatprep.subr.bf16.mxu1 %v9472_v28  ;;  %6919 = vmatprep.mubr.bf16.mxu0 %v5347_v55  ;;  %v5353_v28 = vld [vmem:[#allocation3 + $0x98] sm:$0xff] }
 0x448   : > { %6960 = vmatprep.mubr.bf16.mxu1 %v5349_v56 }
 0x449   : > { %8138 = vmatpush3.bf16.msra.mxu0 %v9473_v29  ;;  %v5350_v29 = vld [vmem:[#allocation3 + $0x80] sm:$0xff] }
 0x44a   : > { %8160 = vmatpush3.bf16.msra.mxu1 %v9474_v30  ;;  %8139 = vmatprep.subr.bf16.mxu0 %v9475_v31  ;;  %v5352_v30 = vld [vmem:[#allocation3 + $0x90] sm:$0xff] }
 0x44b   : > { %8161 = vmatprep.subr.bf16.mxu1 %v9476_v32 }
 0x44d   : > { %8140 = vmatpush3.bf16.msra.mxu0 %v9477_v33  ;;  %v7838_v33 = vld [vmem:[%s11030_s4] ss:$0 sm:$0xff] }
 0x44e   : > { %8162 = vmatpush3.bf16.msra.mxu1 %v9478_v34  ;;  %8141 = vmatprep.subr.bf16.mxu0 %v9479_v35 }
 0x44f   : > { %8163 = vmatprep.subr.bf16.mxu1 %v9480_v36 }
 0x451   : > { %8142 = vmatpush3.bf16.msra.mxu0 %v9481_v37 }
 0x452   : > { %8164 = vmatpush3.bf16.msra.mxu1 %v9482_v38  ;;  %8143 = vmatprep.subr.bf16.mxu0 %v9483_v39 }
 0x453   : > { %8165 = vmatprep.subr.bf16.mxu1 %v9484_v40 }
 0x455   : > { %8144 = vmatpush3.bf16.msra.mxu0 %v9485_v41 }
 0x456   : > { %8166 = vmatpush3.bf16.msra.mxu1 %v9486_v42  ;;  %8145 = vmatprep.subr.bf16.mxu0 %v9487_v43 }
 0x457   : > { %8167 = vmatprep.subr.bf16.mxu1 %v9488_v44 }
 0x459   : > { %8146 = vmatpush3.bf16.msra.mxu0 %v9489_v45 }
 0x45a   : > { %8168 = vmatpush3.bf16.msra.mxu1 %v9490_v46  ;;  %8147 = vmatprep.subr.bf16.mxu0 %v9491_v47 }
 0x45b   : > { %8169 = vmatprep.subr.bf16.mxu1 %v9492_v48 }
 0x45d   : > { %8148 = vmatpush3.bf16.msra.mxu0 %v9493_v49 }
 0x45e   : > { %8170 = vmatpush3.bf16.msra.mxu1 %v9494_v50  ;;  %8149 = vmatprep.subr.bf16.mxu0 %v9495_v51 }
 0x45f   : > { %8171 = vmatprep.subr.bf16.mxu1 %v9496_v52 }
 0x461   : > { %8150 = vmatpush3.bf16.msra.mxu0 %v9497_v53 }
 0x462   : > { %8172 = vmatpush3.bf16.msra.mxu1 %v9498_v54  ;;  %8179 = vmatprep.subr.bf16.mxu0 %v9499_v59 }
 0x463   : > { %8201 = vmatprep.subr.bf16.mxu1 %v9500_v60 }
 0x464   : > { %6920 = vmatmul.mubr.bf16.vlgmr.msra.gmra.mrb[12].mxu0 %v5346_v57 }
 0x465   : > { %6961 = vmatmul.mubr.bf16.vlgmr.msra.gmra.mrb[12].mxu1 %v5348_v58  ;;  %8180 = vmatpush3.bf16.msra.mxu0 %v9501_v61 }
 0x466   : > { %8202 = vmatpush3.bf16.msra.mxu1 %v9502_v62  ;;  %8181 = vmatprep.subr.bf16.mxu0 %v9503_v63 }
 0x467   : > { %8203 = vmatprep.subr.bf16.mxu1 %v9504_v0  ;;  %7001 = vmatprep.mubr.bf16.mxu0 %v5351_v27 }
 0x468   : > { %7042 = vmatprep.mubr.bf16.mxu1 %v5353_v28 }
 0x469   : > { %8182 = vmatpush3.bf16.msra.mxu0 %v9505_v1 }
 0x46a   : > { %8204 = vmatpush3.bf16.msra.mxu1 %v9506_v2  ;;  %8183 = vmatprep.subr.bf16.mxu0 %v9507_v3 }
 0x46b   : > { %8205 = vmatprep.subr.bf16.mxu1 %v9508_v4 }
 0x46d   : > { %8184 = vmatpush3.bf16.msra.mxu0 %v9509_v5 }
 0x46e   : > { %8206 = vmatpush3.bf16.msra.mxu1 %v9510_v6  ;;  %8185 = vmatprep.subr.bf16.mxu0 %v9511_v7 }
 0x46f   : > { %8207 = vmatprep.subr.bf16.mxu1 %v9512_v8 }
 0x471   : > { %8186 = vmatpush3.bf16.msra.mxu0 %v9513_v9 }
 0x472   : > { %8208 = vmatpush3.bf16.msra.mxu1 %v9514_v10  ;;  %8187 = vmatprep.subr.bf16.mxu0 %v9515_v11 }
 0x473   : > { %8209 = vmatprep.subr.bf16.mxu1 %v9516_v12 }
 0x475   : > { %8188 = vmatpush3.bf16.msra.mxu0 %v9517_v13 }
 0x476   : > { %8210 = vmatpush3.bf16.msra.mxu1 %v9518_v14  ;;  %8189 = vmatprep.subr.bf16.mxu0 %v9519_v15 }
 0x477   : > { %8211 = vmatprep.subr.bf16.mxu1 %v9520_v16 }
 0x479   : > { %8190 = vmatpush3.bf16.msra.mxu0 %v9521_v17 }
 0x47a   : > { %8212 = vmatpush3.bf16.msra.mxu1 %v9522_v18  ;;  %8191 = vmatprep.subr.bf16.mxu0 %v9523_v19 }
 0x47b   : > { %8213 = vmatprep.subr.bf16.mxu1 %v9524_v20 }
 0x47d   : > { %8192 = vmatpush3.bf16.msra.mxu0 %v9525_v21 }
 0x47e   : > { %8214 = vmatpush3.bf16.msra.mxu1 %v9526_v22  ;;  %8193 = vmatprep.subr.bf16.mxu0 %v9527_v23 }
 0x47f   : > { %8215 = vmatprep.subr.bf16.mxu1 %v9528_v24 }
 0x481   : > { %8194 = vmatpush3.bf16.msra.mxu0 %v9529_v25 }
 0x482   : > { %8216 = vmatpush3.bf16.msra.mxu1 %v9530_v26 }
 0x484   : > { %7002 = vmatmul.mubr.bf16.vlgmr.msra.gmra.mrb[16].mxu0 %v5350_v29 }
 0x485   : > { %7043 = vmatmul.mubr.bf16.vlgmr.msra.gmra.mrb[16].mxu1 %v5352_v30 }
 0x4d7   : > { %v8019_v31 = vpop.f32.mrb[0].mxu0 }
 0x4d8   : > { %v8041_v32 = vpop.f32.mrb[0].mxu1  ;;  %v8020_v34 = vpop.f32.mrb[1].mxu0 }
 0x4d9   : > { %v8021_v35 = vadd.f32 %v8020_v34, %v8019_v31  ;;  %v8042_v36 = vpop.f32.mrb[1].mxu1  ;;  %v8022_v37 = vpop.f32.mrb[2].mxu0 }
 0x4da   : > { %v8043_v38 = vadd.f32 %v8042_v36, %v8041_v32  ;;  %v8044_v39 = vpop.f32.mrb[2].mxu1  ;;  %v8023_v40 = vpop.f32.mrb[3].mxu0 }
 0x4db   : > { %v6676_v41 = vadd.f32 %v8021_v35, %v7838_v33  ;;  %v8024_v42 = vadd.f32 %v8023_v40, %v8022_v37  ;;  %v8045_v43 = vpop.f32.mrb[3].mxu1 }
 0x4dc   : > { %v8046_v44 = vadd.f32 %v8045_v43, %v8044_v39 }
 0x4dd   : > { %v6717_v45 = vadd.f32 %v8043_v38, %v6676_v41  ;;  %v6679_v46 = vadd.f32 %v8024_v42, %v7838_v33 }
 0x4df   : > { %v6720_v47 = vadd.f32 %v8046_v44, %v6679_v46 }
 0x4f7   : > { %v8063_v48 = vpop.f32.mrb[4].mxu0 }
 0x4f8   : > { %v8085_v49 = vpop.f32.mrb[4].mxu1  ;;  %v8064_v50 = vpop.f32.mrb[5].mxu0 }
 0x4f9   : > { %v8065_v51 = vadd.f32 %v8064_v50, %v8063_v48  ;;  %v8086_v52 = vpop.f32.mrb[5].mxu1  ;;  %v8066_v53 = vpop.f32.mrb[6].mxu0 }
 0x4fa   : > { %v8087_v54 = vadd.f32 %v8086_v52, %v8085_v49  ;;  %v8088_v55 = vpop.f32.mrb[6].mxu1  ;;  %v8067_v56 = vpop.f32.mrb[7].mxu0 }
 0x4fb   : > { %v6758_v57 = vadd.f32 %v8065_v51, %v6717_v45  ;;  %v8068_v58 = vadd.f32 %v8067_v56, %v8066_v53  ;;  %v8089_v59 = vpop.f32.mrb[7].mxu1 }
 0x4fc   : > { %v8090_v60 = vadd.f32 %v8089_v59, %v8088_v55 }
 0x4fd   : > { %v6799_v61 = vadd.f32 %v8087_v54, %v6758_v57  ;;  %v6761_v62 = vadd.f32 %v8068_v58, %v6720_v47 }
 0x4ff   : > { %v6802_v63 = vadd.f32 %v8090_v60, %v6761_v62 }
 0x517   : > { %v8107_v0 = vpop.f32.mrb[8].mxu0 }
 0x518   : > { %v8129_v1 = vpop.f32.mrb[8].mxu1  ;;  %v8108_v2 = vpop.f32.mrb[9].mxu0 }
 0x519   : > { %v8109_v3 = vadd.f32 %v8108_v2, %v8107_v0  ;;  %v8130_v4 = vpop.f32.mrb[9].mxu1  ;;  %v8110_v5 = vpop.f32.mrb[10].mxu0 }
 0x51a   : > { %v8131_v6 = vadd.f32 %v8130_v4, %v8129_v1  ;;  %v8132_v7 = vpop.f32.mrb[10].mxu1  ;;  %v8111_v8 = vpop.f32.mrb[11].mxu0 }
 0x51b   : > { %v6840_v9 = vadd.f32 %v8109_v3, %v6799_v61  ;;  %v8112_v10 = vadd.f32 %v8111_v8, %v8110_v5  ;;  %v8133_v11 = vpop.f32.mrb[11].mxu1 }
 0x51c   : > { %v8134_v12 = vadd.f32 %v8133_v11, %v8132_v7 }
 0x51d   : > { %v6881_v13 = vadd.f32 %v8131_v6, %v6840_v9  ;;  %v6843_v14 = vadd.f32 %v8112_v10, %v6802_v63 }
 0x51f   : > { %v6884_v15 = vadd.f32 %v8134_v12, %v6843_v14 }
 0x537   : > { %v8151_v16 = vpop.f32.mrb[12].mxu0 }
 0x538   : > { %v8173_v17 = vpop.f32.mrb[12].mxu1  ;;  %v8152_v18 = vpop.f32.mrb[13].mxu0 }
 0x539   : > { %v8153_v19 = vadd.f32 %v8152_v18, %v8151_v16  ;;  %v8174_v20 = vpop.f32.mrb[13].mxu1  ;;  %v8154_v21 = vpop.f32.mrb[14].mxu0 }
 0x53a   : > { %v8175_v22 = vadd.f32 %v8174_v20, %v8173_v17  ;;  %v8176_v23 = vpop.f32.mrb[14].mxu1  ;;  %v8155_v24 = vpop.f32.mrb[15].mxu0 }
 0x53b   : > { %v6922_v25 = vadd.f32 %v8153_v19, %v6881_v13  ;;  %v8156_v26 = vadd.f32 %v8155_v24, %v8154_v21  ;;  %v8177_v27 = vpop.f32.mrb[15].mxu1 }
 0x53c   : > { %v8178_v28 = vadd.f32 %v8177_v27, %v8176_v23 }
 0x53d   : > { %v6963_v29 = vadd.f32 %v8175_v22, %v6922_v25  ;;  %v6925_v30 = vadd.f32 %v8156_v26, %v6884_v15 }
 0x53f   : > { %v6966_v31 = vadd.f32 %v8178_v28, %v6925_v30 }
 0x557   : > { %v8195_v32 = vpop.f32.mrb[16].mxu0 }
 0x558   : > { %v8217_v33 = vpop.f32.mrb[16].mxu1  ;;  %v8196_v34 = vpop.f32.mrb[17].mxu0 }
 0x559   : > { %v8197_v35 = vadd.f32 %v8196_v34, %v8195_v32  ;;  %v8218_v36 = vpop.f32.mrb[17].mxu1  ;;  %v8198_v37 = vpop.f32.mrb[18].mxu0 }
 0x55a   : > { %v8219_v38 = vadd.f32 %v8218_v36, %v8217_v33  ;;  %v8220_v39 = vpop.f32.mrb[18].mxu1  ;;  %v8199_v40 = vpop.f32.mrb[19].mxu0 }
 0x55b   : > { %v7004_v41 = vadd.f32 %v8197_v35, %v6963_v29  ;;  %v8200_v42 = vadd.f32 %v8199_v40, %v8198_v37  ;;  %v8221_v43 = vpop.f32.mrb[19].mxu1 }
 0x55c   : > { %v8222_v44 = vadd.f32 %v8221_v43, %v8220_v39 }
 0x55d   : > { %v7045_v45 = vadd.f32 %v8219_v38, %v7004_v41  ;;  %v7007_v46 = vadd.f32 %v8200_v42, %v6966_v31 }
 0x55f   : > { %7051 = vst [vmem:[%s11031_s5] sm:$0xff] %v7045_v45  ;;  %v7048_v47 = vadd.f32 %v8222_v44, %v7007_v46 }
 0x561   : > { %7052 = vst [vmem:[%s11031_s5 + $0x8] sm:$0xff] %v7048_v47 }
 0x562 PF: > { %s18_s25 = sadd.s32 1, %s9627_s25   ;;  %s11035_s18 = smov %s9603_s19 }
 0x563   : > { %p15_p5 = scmp.ge.s32.totalorder %s18_s25, 12   ;;  %s11036_s19 = smov %s9607_s20 }
 0x564   : > { %s11037_s20 = smov %s9730_s13  ;;  %s11038_s21 = smov %s9619_s23 }
 0x565   : > { %s11039_s22 = smov %s9623_s24  ;;  %s11040_s23 = smov %s11043_s27 }
 0x566   : > { %s11041_s24 = smov %s11047_s28  ;;  %17 = sbr.rel (!%p15_p5) target bundleno = 5 (0x5), region = 118 }
 0x56d   :  { %7075 = vsyncpa [#allocation5], 1 }
 0x56e   :  { %7077 = vsyncpa [#allocation5 + $0x1], 1 }

</bundles_post_ra>
